<compile_context>
chip_gen: v7x
topology: tpu7x:2x2x1
jax: 0.10.0
libtpu: 0.0.40
codegen_flags: <defaults>
</compile_context>

<pallas_src>
import numpy as np
import jax
import jax.numpy as jnp
from jax.experimental import pallas as pl
from jax.experimental.pallas import tpu as pltpu


TILE_N = 640          # column tile of the fusion Linear(1000, 2500); 2500 -> 2560 pad, 4 tiles
N_BUFFERS = 4         # pipeline depth for the tiled fusion weights
BN_EPS = 1e-5         # nn.BatchNorm1d default eps
LEAKY_SLOPE = 0.01    # nn.LeakyReLU default negative_slope


# ----------------------------- kernel helpers --------------------------------

def _sigmoid(x):
    # numerically stable, runs on the EUP (tanh) instead of exp + divide.
    return 0.5 * (jnp.tanh(0.5 * x) + 1.0)


def _leaky(x):
    return jnp.where(x >= 0, x, LEAKY_SLOPE * x)


def _bn(x):
    # training-mode BatchNorm1d: biased batch variance, identity affine.
    m = jnp.mean(x, axis=0, keepdims=True)
    d = x - m
    v = jnp.mean(d * d, axis=0, keepdims=True)
    return d * jax.lax.rsqrt(v + BN_EPS)


def _softmax(x):
    # nn.Softmax() on 2D input -> dim=1; reciprocal goes to the (idle) EUP slot.
    m = jnp.max(x, axis=1, keepdims=True)
    e = jnp.exp(x - m)
    s = jnp.sum(e, axis=1, keepdims=True)
    return e * pl.reciprocal(s, approx=True)


# -------------------------------- kernel --------------------------------------

def encoder_attn_kernel(
        x_ref, wih_ref, whh_ref, lb_ref, img_ref,
        qcw_ref, qcb_ref, icw_ref, icb_ref, acw_ref, acb_ref,
        qfw_ref, qfb_ref, ifw_ref, ifb_ref,
        f1w_ref, f1b_ref, f2w_ref, f2b_ref,
        out_ref,
        qi_ref):
    """Fused LSTM + attention + fusion stack.

    Grid: (n_tiles,) over the padded 2560-wide fusion hidden dim ("arbitrary").
    Step 0 prologue: LSTM recurrence, both attention branches (concatenated),
    quest_fc/image_fc, quest*img product -> qi_ref (VMEM scratch, bf16) and
    out_ref zeroed.
    Every step: one contiguous column tile of fusion Linear-1 (+LeakyReLU+BN)
    and the corresponding row tile of fusion Linear-2, accumulated into out_ref.
    Last step epilogue: bias + BN + LeakyReLU in place on out_ref.
    """
    TB, E = x_ref.shape
    B, F = img_ref.shape
    T = TB // B
    H = whh_ref.shape[0]
    f32 = jnp.float32
    bf16 = jnp.bfloat16

    n = pl.program_id(0)

    @pl.when(n == 0)
    def _prologue():
        # ---- LSTM (nn.LSTM, zero initial state); input projection hoisted ----
        xp = jnp.dot(x_ref[...], wih_ref[...],
                     preferred_element_type=f32) + lb_ref[...]        # (T*B, 4H)
        whh = whh_ref[...]
        h = jnp.zeros((B, H), f32)
        c = jnp.zeros((B, H), f32)
        for t in range(T):   # fully unrolled: T is small and static
            gates = xp[t * B:(t + 1) * B, :] + jnp.dot(
                h.astype(bf16), whh, preferred_element_type=f32)      # (B, 4H)
            # one EUP pass over the whole gates vreg; only g needs its own tanh
            sg = _sigmoid(gates)
            i_g = sg[:, 0:H]
            f_g = sg[:, H:2 * H]
            o_g = sg[:, 3 * H:4 * H]
            g_g = jnp.tanh(gates[:, 2 * H:3 * H])
            c = f_g * c + i_g * g_g
            h = o_g * jnp.tanh(c)
        q = h                                   # (B, E) == torch hidden[0][0]
        img = img_ref[...]                      # (B, F)

        # TODO(synk): Dropout layers (p=0.2/0.3/0.4) are identity here — torch
        # RNG is not reproducible; this matches eval() semantics.

        q_b = q.astype(bf16)
        img_b = img.astype(bf16)

        # ---- attention branches 1 & 2 (weights concatenated branch1||branch2;
        #      BatchNorm1d is per-column so the concatenation is exact) ----
        qf = _bn(_leaky(jnp.dot(q_b, qcw_ref[...],
                                preferred_element_type=f32) + qcb_ref[...]))
        imf = _bn(_leaky(jnp.dot(img_b, icw_ref[...],
                                 preferred_element_type=f32) + icb_ref[...]))
        qi = _bn(qf * imf)                                            # (B, 800)
        logits = _bn(jnp.dot(qi.astype(bf16), acw_ref[...],
                             preferred_element_type=f32) + acb_ref[...])  # (B, 2F)
        attn = _softmax(logits[:, 0:F]) + _softmax(logits[:, F:2 * F])
        img_att = attn * img                                          # (B, F)

        # ---- quest_fc / image_fc ----
        quest_emb = _bn(jnp.dot(q_b, qfw_ref[...],
                                preferred_element_type=f32) + qfb_ref[...])
        img_emb = _bn(jnp.dot(img_att.astype(bf16), ifw_ref[...],
                              preferred_element_type=f32) + ifb_ref[...])
        qi_ref[...] = (img_emb * quest_emb).astype(bf16)              # (B, 1000)
        out_ref[...] = jnp.zeros_like(out_ref)                        # accumulator init

    # ---- fusion, tiled over the packed 2560-wide hidden dim ----
    # per-tile bn/leaky are exact (column-independent); padded columns are
    # identically zero and contribute nothing to the accumulation.
    h1 = _bn(_leaky(jnp.dot(qi_ref[...], f1w_ref[...],
                            preferred_element_type=f32) + f1b_ref[...]))
    out_ref[...] += jnp.dot(h1.astype(bf16), f2w_ref[...],
                            preferred_element_type=f32)

    @pl.when(n == pl.num_programs(0) - 1)
    def _epilogue():
        out_ref[...] = _leaky(_bn(out_ref[...] + f2b_ref[...]))


# ----------------------------- wrappers ---------------------------------------

def _full_spec(shape):
    # whole-array block, constant index map -> fetched once, resident in VMEM.
    return pl.BlockSpec(shape, lambda n: (0, 0))


def prepare_weights(w_ih, w_hh, b_ih, b_hh, params, E, F):
    """Transpose / concatenate / pad / pack / cast torch-layout weights."""
    bf16 = jnp.bfloat16
    w = {}
    w["wih"] = jnp.asarray(w_ih).T.astype(bf16)                       # (E, 4H)
    w["whh"] = jnp.asarray(w_hh).T.astype(bf16)                       # (H, 4H)
    w["lstm_b"] = (jnp.asarray(b_ih) + jnp.asarray(b_hh)).reshape(1, -1).astype(jnp.float32)

    # branch-1 || branch-2 concatenation (BN is per-column, so this is exact)
    w["qc_w"] = jnp.concatenate([params["q1_w"], params["q2_w"]], axis=1).astype(bf16)  # (E, 800)
    w["qc_b"] = jnp.concatenate([params["q1_b"], params["q2_b"]], axis=1)
    w["ic_w"] = jnp.concatenate([params["i1_w"], params["i2_w"]], axis=1).astype(bf16)  # (F, 800)
    w["ic_b"] = jnp.concatenate([params["i1_b"], params["i2_b"]], axis=1)

    K = params["a1_w"].shape[0]                                        # 400
    ac = jnp.zeros((2 * K, 2 * F), jnp.float32)
    ac = ac.at[:K, :F].set(params["a1_w"])
    ac = ac.at[K:, F:].set(params["a2_w"])
    w["ac_w"] = ac.astype(bf16)                                        # (800, 2F) block-diag
    w["ac_b"] = jnp.concatenate([params["a1_b"], params["a2_b"]], axis=1)

    w["qf_w"] = params["qf_w"].astype(bf16)
    w["qf_b"] = params["qf_b"]
    w["if_w"] = params["if_w"].astype(bf16)
    w["if_b"] = params["if_b"]

    K1, N = params["f1_w"].shape                                       # (1000, 2500)
    n_tiles = -(-N // TILE_N)                                          # 4
    n_pad = n_tiles * TILE_N                                           # 2560
    e_pad = ((E + 127) // 128) * 128                                   # 128

    # pack f1_w into contiguous (n_tiles, K1, TILE_N) so each per-step DMA is
    # one long contiguous stream (not a strided column slice of a (K1, 2560)).
    f1 = jnp.pad(params["f1_w"], ((0, 0), (0, n_pad - N))).astype(bf16)
    w["f1_w"] = jnp.transpose(f1.reshape(K1, n_tiles, TILE_N), (1, 0, 2))   # (nt, K1, TILE_N)
    w["f1_b"] = jnp.pad(params["f1_b"], ((0, 0), (0, n_pad - N)))           # (1, n_pad)
    f2 = jnp.pad(params["f2_w"], ((0, n_pad - N), (0, e_pad - E))).astype(bf16)
    w["f2_w"] = f2.reshape(n_tiles, TILE_N, e_pad)                          # (nt, TILE_N, E_pad)
    w["f2_b"] = jnp.pad(params["f2_b"], ((0, 0), (0, e_pad - E)))           # (1, E_pad)
    return w


def run_encoder_attn(x_flat, img, w):
    """x_flat: (T*B, E) bf16 time-major token embeddings; img: (B, F) f32."""
    TB, E = x_flat.shape
    B, F = img.shape
    T = TB // B
    H4 = w["wih"].shape[1]
    n_tiles, K1, TN = w["f1_w"].shape
    e_pad = w["f2_w"].shape[2]
    n_pad = n_tiles * TN

    in_arrays = [x_flat, w["wih"], w["whh"], w["lstm_b"], img,
                 w["qc_w"], w["qc_b"], w["ic_w"], w["ic_b"], w["ac_w"], w["ac_b"],
                 w["qf_w"], w["qf_b"], w["if_w"], w["if_b"],
                 w["f1_w"], w["f1_b"], w["f2_w"], w["f2_b"]]

    flops = 2 * (
        TB * E * H4 + T * B * (H4 // 4) * H4
        + B * (E * w["qc_w"].shape[1] + F * w["ic_w"].shape[1]
               + w["ac_w"].shape[0] * w["ac_w"].shape[1]
               + E * w["qf_w"].shape[1] + F * w["if_w"].shape[1]
               + K1 * n_pad + n_pad * e_pad))
    transcendentals = T * B * 6 * (H4 // 4) + 2 * B * F
    bytes_accessed = int(sum(int(a.nbytes) for a in in_arrays) + B * e_pad * 4)
    ce = pl.CostEstimate(flops=int(flops), transcendentals=int(transcendentals),
                         bytes_accessed=bytes_accessed)

    def build(buffered):
        def tiled_spec(block_shape, index_map):
            if buffered:
                return pl.BlockSpec(block_shape, index_map,
                                    pipeline_mode=pl.Buffered(min(N_BUFFERS, n_tiles)))
            return pl.BlockSpec(block_shape, index_map)

        in_specs = [_full_spec(a.shape) for a in in_arrays[:15]]
        in_specs += [
            tiled_spec((pl.Squeezed(), K1, TN), lambda n: (n, 0, 0)),   # f1_w packed tile
            tiled_spec((1, TN), lambda n: (0, n)),                      # f1_b tile
            tiled_spec((pl.Squeezed(), TN, e_pad), lambda n: (n, 0, 0)),# f2_w packed tile
            _full_spec(w["f2_b"].shape),                                # f2_b
        ]
        return pl.pallas_call(
            encoder_attn_kernel,
            out_shape=jax.ShapeDtypeStruct((B, e_pad), jnp.float32),
            grid_spec=pltpu.PrefetchScalarGridSpec(
                num_scalar_prefetch=0,
                grid=(n_tiles,),
                in_specs=in_specs,
                out_specs=pl.BlockSpec((B, e_pad), lambda n: (0, 0)),
                scratch_shapes=[
                    pltpu.VMEM((B, w["qf_w"].shape[1]), jnp.bfloat16),  # quest*img (B,1000)
                ]),
            compiler_params=pltpu.CompilerParams(
                dimension_semantics=("arbitrary",),
                vmem_limit_bytes=32 * 1024 * 1024),   # headroom for 4-deep tiles on v5e
            cost_estimate=ce,
        )

    try:
        out = build(True)(*in_arrays)        # deep-buffered pipeline (preferred)
    except Exception:
        out = build(False)(*in_arrays)       # fallback: default double-buffering
    return out[:, :E]


# --------------------- pure-JAX reference (same precision) ---------------------

def ref_forward(x_flat, img, w, T):
    """Mirrors the kernel's math (bf16 weights/activation casts) in plain JAX."""
    f32, bf16 = jnp.float32, jnp.bfloat16

    def leaky(v): return jnp.where(v >= 0, v, LEAKY_SLOPE * v)

    def bn(v):
        m = jnp.mean(v, axis=0, keepdims=True)
        d = v - m
        var = jnp.mean(d * d, axis=0, keepdims=True)
        return d * jax.lax.rsqrt(var + BN_EPS)

    def softmax(v):
        m = jnp.max(v, axis=1, keepdims=True)
        e = jnp.exp(v - m)
        return e / jnp.sum(e, axis=1, keepdims=True)

    TB, E = x_flat.shape
    B, F = img.shape
    H = E
    wih = w["wih"].astype(f32)
    whh = w["whh"].astype(f32)
    xp = x_flat.astype(f32) @ wih + w["lstm_b"]
    h = jnp.zeros((B, H), f32)
    c = jnp.zeros((B, H), f32)
    for t in range(T):
        g = xp[t * B:(t + 1) * B] + h.astype(bf16).astype(f32) @ whh
        sg = 0.5 * (jnp.tanh(0.5 * g) + 1.0)
        i_g, f_g, o_g = sg[:, :H], sg[:, H:2 * H], sg[:, 3 * H:]
        g_g = jnp.tanh(g[:, 2 * H:3 * H])
        c = f_g * c + i_g * g_g
        h = o_g * jnp.tanh(c)
    q32 = h.astype(bf16).astype(f32)
    img_b = img.astype(bf16).astype(f32)

    qf = bn(leaky(q32 @ w["qc_w"].astype(f32) + w["qc_b"]))
    imf = bn(leaky(img_b @ w["ic_w"].astype(f32) + w["ic_b"]))
    qi = bn(qf * imf)
    logits = bn(qi.astype(bf16).astype(f32) @ w["ac_w"].astype(f32) + w["ac_b"])
    attn = softmax(logits[:, :F]) + softmax(logits[:, F:])
    img_att = attn * img
    quest_emb = bn(q32 @ w["qf_w"].astype(f32) + w["qf_b"])
    img_emb = bn(img_att.astype(bf16).astype(f32) @ w["if_w"].astype(f32) + w["if_b"])
    qiv = (img_emb * quest_emb).astype(bf16).astype(f32)

    n_tiles, K1, TN = w["f1_w"].shape
    f1w = jnp.transpose(w["f1_w"], (1, 0, 2)).reshape(K1, n_tiles * TN).astype(f32)
    h1 = bn(leaky(qiv @ f1w + w["f1_b"]))
    f2w = w["f2_w"].reshape(n_tiles * TN, -1).astype(f32)
    acc = h1.astype(bf16).astype(f32) @ f2w
    out = leaky(bn(acc + w["f2_b"]))
    return out[:, :E]


# ------------------------------- main ------------------------------------------

if __name__ == "__main__":
    # batch, seq, txt_emb_size, img_feature_size (batch=8: sublane-aligned;
    # throughput scales ~linearly with B since the kernel is weight-DMA bound).
    B, T, E, F = 8, 8, 32, 64
    VOCAB = 50

    key = jax.random.PRNGKey(0)
    keys = iter(jax.random.split(key, 64))

    def lin_init(in_f, out_f):
        # torch nn.Linear default: U(-1/sqrt(fan_in), 1/sqrt(fan_in))
        bound = 1.0 / np.sqrt(in_f)
        wgt = jax.random.uniform(next(keys), (in_f, out_f), jnp.float32, -bound, bound)
        bias = jax.random.uniform(next(keys), (1, out_f), jnp.float32, -bound, bound)
        return wgt, bias

    # external submodules modeled in glue:
    #   text_embedding -> embedding table lookup; img_features -> identity.
    embed_tbl = jax.random.normal(next(keys), (VOCAB, E), jnp.float32)

    # nn.LSTM default init: U(-1/sqrt(H), 1/sqrt(H)), torch layouts.
    kb = 1.0 / np.sqrt(E)
    w_ih = jax.random.uniform(next(keys), (4 * E, E), jnp.float32, -kb, kb)
    w_hh = jax.random.uniform(next(keys), (4 * E, E), jnp.float32, -kb, kb)
    b_ih = jax.random.uniform(next(keys), (4 * E,), jnp.float32, -kb, kb)
    b_hh = jax.random.uniform(next(keys), (4 * E,), jnp.float32, -kb, kb)

    params = {}
    params["q1_w"], params["q1_b"] = lin_init(E, 400)
    params["i1_w"], params["i1_b"] = lin_init(F, 400)
    params["a1_w"], params["a1_b"] = lin_init(400, F)
    params["q2_w"], params["q2_b"] = lin_init(E, 400)
    params["i2_w"], params["i2_b"] = lin_init(F, 400)
    params["a2_w"], params["a2_b"] = lin_init(400, F)
    params["qf_w"], params["qf_b"] = lin_init(E, 1000)
    params["if_w"], params["if_b"] = lin_init(F, 1000)
    params["f1_w"], params["f1_b"] = lin_init(1000, 2500)
    params["f2_w"], params["f2_b"] = lin_init(2500, E)

    # example inputs
    img = jax.random.normal(next(keys), (B, F), jnp.float32)     # precomputed image features
    quest = jax.random.randint(next(keys), (B, T), 0, VOCAB)     # token ids

    # glue: embedding lookup, batch_first -> time-major, flatten for the kernel
    token_embeddings = jnp.take(embed_tbl, quest, axis=0)        # (B, T, E)
    x_tbe = jnp.transpose(token_embeddings, (1, 0, 2))           # (T, B, E)
    x_flat = x_tbe.reshape(T * B, E).astype(jnp.bfloat16)        # (T*B, E)

    w = prepare_weights(w_ih, w_hh, b_ih, b_hh, params, E, F)
    context = run_encoder_attn(x_flat, img, w)                   # (B, E)
    context = jax.block_until_ready(context)

    # tolerance-asserted pure-JAX reference (same bf16 precision choices)
    ref = jax.block_until_ready(ref_forward(x_flat, img, w, T))
    err = float(jnp.max(jnp.abs(context - ref)))

    assert context.shape == (B, E)
    assert bool(jnp.all(jnp.isfinite(context)))
    assert err < 5e-2, f"max abs error vs reference: {err}"
    print("KERNEL_OK")
</pallas_src>

<mosaic_0001>
module attributes {stable_mosaic.version = 11 : i64} {
  func.func @encoder_attn_kernel(%arg0: i32, %arg1: memref<64x32xbf16, #tpu.memory_space<vmem>>, %arg2: memref<32x128xbf16, #tpu.memory_space<vmem>>, %arg3: memref<32x128xbf16, #tpu.memory_space<vmem>>, %arg4: memref<1x128xf32, #tpu.memory_space<vmem>>, %arg5: memref<8x64xf32, #tpu.memory_space<vmem>>, %arg6: memref<32x800xbf16, #tpu.memory_space<vmem>>, %arg7: memref<1x800xf32, #tpu.memory_space<vmem>>, %arg8: memref<64x800xbf16, #tpu.memory_space<vmem>>, %arg9: memref<1x800xf32, #tpu.memory_space<vmem>>, %arg10: memref<800x128xbf16, #tpu.memory_space<vmem>>, %arg11: memref<1x128xf32, #tpu.memory_space<vmem>>, %arg12: memref<32x1000xbf16, #tpu.memory_space<vmem>>, %arg13: memref<1x1000xf32, #tpu.memory_space<vmem>>, %arg14: memref<64x1000xbf16, #tpu.memory_space<vmem>>, %arg15: memref<1x1000xf32, #tpu.memory_space<vmem>>, %arg16: memref<1x1000x640xbf16, #tpu.memory_space<vmem>>, %arg17: memref<1x640xf32, #tpu.memory_space<vmem>>, %arg18: memref<1x640x128xbf16, #tpu.memory_space<vmem>>, %arg19: memref<1x128xf32, #tpu.memory_space<vmem>>, %arg20: memref<8x128xf32, #tpu.memory_space<vmem>>, %arg21: memref<8x1000xbf16, #tpu.memory_space<vmem>>) attributes {dimension_semantics = [#tpu.dimension_semantics<arbitrary>], iteration_bounds = array<i64: 4>, scalar_prefetch = 0 : i64, scratch_operands = 1 : i64, tpu.core_type = #tpu.core_type<tc>, window_params = [{pipeline_mode = #tpu.pipeline_mode<synchronous>, transform_indices = @transform_0, window_bounds = array<i64: 64, 32>}, {pipeline_mode = #tpu.pipeline_mode<synchronous>, transform_indices = @transform_1, window_bounds = array<i64: 32, 128>}, {pipeline_mode = #tpu.pipeline_mode<synchronous>, transform_indices = @transform_2, window_bounds = array<i64: 32, 128>}, {pipeline_mode = #tpu.pipeline_mode<synchronous>, transform_indices = @transform_3, window_bounds = array<i64: 1, 128>}, {pipeline_mode = #tpu.pipeline_mode<synchronous>, transform_indices = @transform_4, window_bounds = array<i64: 8, 64>}, {pipeline_mode = #tpu.pipeline_mode<synchronous>, transform_indices = @transform_5, window_bounds = array<i64: 32, 800>}, {pipeline_mode = #tpu.pipeline_mode<synchronous>, transform_indices = @transform_6, window_bounds = array<i64: 1, 800>}, {pipeline_mode = #tpu.pipeline_mode<synchronous>, transform_indices = @transform_7, window_bounds = array<i64: 64, 800>}, {pipeline_mode = #tpu.pipeline_mode<synchronous>, transform_indices = @transform_8, window_bounds = array<i64: 1, 800>}, {pipeline_mode = #tpu.pipeline_mode<synchronous>, transform_indices = @transform_9, window_bounds = array<i64: 800, 128>}, {pipeline_mode = #tpu.pipeline_mode<synchronous>, transform_indices = @transform_10, window_bounds = array<i64: 1, 128>}, {pipeline_mode = #tpu.pipeline_mode<synchronous>, transform_indices = @transform_11, window_bounds = array<i64: 32, 1000>}, {pipeline_mode = #tpu.pipeline_mode<synchronous>, transform_indices = @transform_12, window_bounds = array<i64: 1, 1000>}, {pipeline_mode = #tpu.pipeline_mode<synchronous>, transform_indices = @transform_13, window_bounds = array<i64: 64, 1000>}, {pipeline_mode = #tpu.pipeline_mode<synchronous>, transform_indices = @transform_14, window_bounds = array<i64: 1, 1000>}, {transform_indices = @transform_15, window_bounds = array<i64: 1, 1000, 640>}, {transform_indices = @transform_16, window_bounds = array<i64: 1, 640>}, {transform_indices = @transform_17, window_bounds = array<i64: 1, 640, 128>}, {pipeline_mode = #tpu.pipeline_mode<synchronous>, transform_indices = @transform_18, window_bounds = array<i64: 1, 128>}, {pipeline_mode = #tpu.pipeline_mode<synchronous>, transform_indices = @transform_19, window_bounds = array<i64: 8, 128>}]} {
    %c0_i32 = arith.constant 0 : i32
    %0 = arith.cmpi eq, %arg0, %c0_i32 : i32
    %1 = arith.extui %0 : i1 to i32
    %c0_i32_0 = arith.constant 0 : i32
    %2 = arith.cmpi ne, %1, %c0_i32_0 : i32
    scf.if %2 {
      %c0_23 = arith.constant 0 : index
      %c0_24 = arith.constant 0 : index
      %41 = vector.load %arg1[%c0_23, %c0_24] : memref<64x32xbf16, #tpu.memory_space<vmem>>, vector<64x32xbf16>
      %c0_25 = arith.constant 0 : index
      %c0_26 = arith.constant 0 : index
      %42 = vector.load %arg2[%c0_25, %c0_26] : memref<32x128xbf16, #tpu.memory_space<vmem>>, vector<32x128xbf16>
      %cst_27 = arith.constant dense<0.000000e+00> : vector<64x128xf32>
      %43 = tpu.matmul %41, %42, %cst_27 {dimension_numbers = #tpu.dot_dimension_numbers<[1], [0], [0], [1], [0, 0, 1, 1], [], []>} : vector<64x32xbf16>, vector<32x128xbf16>, vector<64x128xf32> -> vector<64x128xf32>
      %c0_28 = arith.constant 0 : index
      %c0_29 = arith.constant 0 : index
      %44 = vector.load %arg4[%c0_28, %c0_29] : memref<1x128xf32, #tpu.memory_space<vmem>>, vector<1x128xf32>
      %45 = vector.broadcast %44 : vector<1x128xf32> to vector<64x128xf32>
      %46 = arith.addf %43, %45 : vector<64x128xf32>
      %c0_30 = arith.constant 0 : index
      %c0_31 = arith.constant 0 : index
      %47 = vector.load %arg3[%c0_30, %c0_31] : memref<32x128xbf16, #tpu.memory_space<vmem>>, vector<32x128xbf16>
      %cst_32 = arith.constant 0.000000e+00 : f32
      %48 = vector.broadcast %cst_32 : f32 to vector<8x32xf32>
      %cst_33 = arith.constant 0.000000e+00 : f32
      %49 = vector.broadcast %cst_33 : f32 to vector<8x32xf32>
      %50 = vector.extract_strided_slice %46 {offsets = [0, 0], sizes = [8, 128], strides = [1, 1]} : vector<64x128xf32> to vector<8x128xf32>
      %51 = arith.truncf %48 : vector<8x32xf32> to vector<8x32xbf16>
      %cst_34 = arith.constant dense<0.000000e+00> : vector<8x128xf32>
      %52 = tpu.matmul %51, %47, %cst_34 {dimension_numbers = #tpu.dot_dimension_numbers<[1], [0], [0], [1], [0, 0, 1, 1], [], []>} : vector<8x32xbf16>, vector<32x128xbf16>, vector<8x128xf32> -> vector<8x128xf32>
      %53 = arith.addf %50, %52 : vector<8x128xf32>
      %cst_35 = arith.constant 5.000000e-01 : f32
      %54 = vector.broadcast %cst_35 : f32 to vector<8x128xf32>
      %55 = arith.mulf %54, %53 : vector<8x128xf32>
      %56 = math.tanh %55 : vector<8x128xf32>
      %cst_36 = arith.constant 1.000000e+00 : f32
      %57 = vector.broadcast %cst_36 : f32 to vector<8x128xf32>
      %58 = arith.addf %56, %57 : vector<8x128xf32>
      %cst_37 = arith.constant 5.000000e-01 : f32
      %59 = vector.broadcast %cst_37 : f32 to vector<8x128xf32>
      %60 = arith.mulf %59, %58 : vector<8x128xf32>
      %61 = vector.extract_strided_slice %60 {offsets = [0, 0], sizes = [8, 32], strides = [1, 1]} : vector<8x128xf32> to vector<8x32xf32>
      %62 = vector.extract_strided_slice %60 {offsets = [0, 32], sizes = [8, 32], strides = [1, 1]} : vector<8x128xf32> to vector<8x32xf32>
      %63 = vector.extract_strided_slice %60 {offsets = [0, 96], sizes = [8, 32], strides = [1, 1]} : vector<8x128xf32> to vector<8x32xf32>
      %64 = vector.extract_strided_slice %53 {offsets = [0, 64], sizes = [8, 32], strides = [1, 1]} : vector<8x128xf32> to vector<8x32xf32>
      %65 = math.tanh %64 : vector<8x32xf32>
      %66 = arith.mulf %62, %49 : vector<8x32xf32>
      %67 = arith.mulf %61, %65 : vector<8x32xf32>
      %68 = arith.addf %66, %67 : vector<8x32xf32>
      %69 = math.tanh %68 : vector<8x32xf32>
      %70 = arith.mulf %63, %69 : vector<8x32xf32>
      %71 = vector.extract_strided_slice %46 {offsets = [8, 0], sizes = [8, 128], strides = [1, 1]} : vector<64x128xf32> to vector<8x128xf32>
      %72 = arith.truncf %70 : vector<8x32xf32> to vector<8x32xbf16>
      %cst_38 = arith.constant dense<0.000000e+00> : vector<8x128xf32>
      %73 = tpu.matmul %72, %47, %cst_38 {dimension_numbers = #tpu.dot_dimension_numbers<[1], [0], [0], [1], [0, 0, 1, 1], [], []>} : vector<8x32xbf16>, vector<32x128xbf16>, vector<8x128xf32> -> vector<8x128xf32>
      %74 = arith.addf %71, %73 : vector<8x128xf32>
      %cst_39 = arith.constant 5.000000e-01 : f32
      %75 = vector.broadcast %cst_39 : f32 to vector<8x128xf32>
      %76 = arith.mulf %75, %74 : vector<8x128xf32>
      %77 = math.tanh %76 : vector<8x128xf32>
      %cst_40 = arith.constant 1.000000e+00 : f32
      %78 = vector.broadcast %cst_40 : f32 to vector<8x128xf32>
      %79 = arith.addf %77, %78 : vector<8x128xf32>
      %cst_41 = arith.constant 5.000000e-01 : f32
      %80 = vector.broadcast %cst_41 : f32 to vector<8x128xf32>
      %81 = arith.mulf %80, %79 : vector<8x128xf32>
      %82 = vector.extract_strided_slice %81 {offsets = [0, 0], sizes = [8, 32], strides = [1, 1]} : vector<8x128xf32> to vector<8x32xf32>
      %83 = vector.extract_strided_slice %81 {offsets = [0, 32], sizes = [8, 32], strides = [1, 1]} : vector<8x128xf32> to vector<8x32xf32>
      %84 = vector.extract_strided_slice %81 {offsets = [0, 96], sizes = [8, 32], strides = [1, 1]} : vector<8x128xf32> to vector<8x32xf32>
      %85 = vector.extract_strided_slice %74 {offsets = [0, 64], sizes = [8, 32], strides = [1, 1]} : vector<8x128xf32> to vector<8x32xf32>
      %86 = math.tanh %85 : vector<8x32xf32>
      %87 = arith.mulf %83, %68 : vector<8x32xf32>
      %88 = arith.mulf %82, %86 : vector<8x32xf32>
      %89 = arith.addf %87, %88 : vector<8x32xf32>
      %90 = math.tanh %89 : vector<8x32xf32>
      %91 = arith.mulf %84, %90 : vector<8x32xf32>
      %92 = vector.extract_strided_slice %46 {offsets = [16, 0], sizes = [8, 128], strides = [1, 1]} : vector<64x128xf32> to vector<8x128xf32>
      %93 = arith.truncf %91 : vector<8x32xf32> to vector<8x32xbf16>
      %cst_42 = arith.constant dense<0.000000e+00> : vector<8x128xf32>
      %94 = tpu.matmul %93, %47, %cst_42 {dimension_numbers = #tpu.dot_dimension_numbers<[1], [0], [0], [1], [0, 0, 1, 1], [], []>} : vector<8x32xbf16>, vector<32x128xbf16>, vector<8x128xf32> -> vector<8x128xf32>
      %95 = arith.addf %92, %94 : vector<8x128xf32>
      %cst_43 = arith.constant 5.000000e-01 : f32
      %96 = vector.broadcast %cst_43 : f32 to vector<8x128xf32>
      %97 = arith.mulf %96, %95 : vector<8x128xf32>
      %98 = math.tanh %97 : vector<8x128xf32>
      %cst_44 = arith.constant 1.000000e+00 : f32
      %99 = vector.broadcast %cst_44 : f32 to vector<8x128xf32>
      %100 = arith.addf %98, %99 : vector<8x128xf32>
      %cst_45 = arith.constant 5.000000e-01 : f32
      %101 = vector.broadcast %cst_45 : f32 to vector<8x128xf32>
      %102 = arith.mulf %101, %100 : vector<8x128xf32>
      %103 = vector.extract_strided_slice %102 {offsets = [0, 0], sizes = [8, 32], strides = [1, 1]} : vector<8x128xf32> to vector<8x32xf32>
      %104 = vector.extract_strided_slice %102 {offsets = [0, 32], sizes = [8, 32], strides = [1, 1]} : vector<8x128xf32> to vector<8x32xf32>
      %105 = vector.extract_strided_slice %102 {offsets = [0, 96], sizes = [8, 32], strides = [1, 1]} : vector<8x128xf32> to vector<8x32xf32>
      %106 = vector.extract_strided_slice %95 {offsets = [0, 64], sizes = [8, 32], strides = [1, 1]} : vector<8x128xf32> to vector<8x32xf32>
      %107 = math.tanh %106 : vector<8x32xf32>
      %108 = arith.mulf %104, %89 : vector<8x32xf32>
      %109 = arith.mulf %103, %107 : vector<8x32xf32>
      %110 = arith.addf %108, %109 : vector<8x32xf32>
      %111 = math.tanh %110 : vector<8x32xf32>
      %112 = arith.mulf %105, %111 : vector<8x32xf32>
      %113 = vector.extract_strided_slice %46 {offsets = [24, 0], sizes = [8, 128], strides = [1, 1]} : vector<64x128xf32> to vector<8x128xf32>
      %114 = arith.truncf %112 : vector<8x32xf32> to vector<8x32xbf16>
      %cst_46 = arith.constant dense<0.000000e+00> : vector<8x128xf32>
      %115 = tpu.matmul %114, %47, %cst_46 {dimension_numbers = #tpu.dot_dimension_numbers<[1], [0], [0], [1], [0, 0, 1, 1], [], []>} : vector<8x32xbf16>, vector<32x128xbf16>, vector<8x128xf32> -> vector<8x128xf32>
      %116 = arith.addf %113, %115 : vector<8x128xf32>
      %cst_47 = arith.constant 5.000000e-01 : f32
      %117 = vector.broadcast %cst_47 : f32 to vector<8x128xf32>
      %118 = arith.mulf %117, %116 : vector<8x128xf32>
      %119 = math.tanh %118 : vector<8x128xf32>
      %cst_48 = arith.constant 1.000000e+00 : f32
      %120 = vector.broadcast %cst_48 : f32 to vector<8x128xf32>
      %121 = arith.addf %119, %120 : vector<8x128xf32>
      %cst_49 = arith.constant 5.000000e-01 : f32
      %122 = vector.broadcast %cst_49 : f32 to vector<8x128xf32>
      %123 = arith.mulf %122, %121 : vector<8x128xf32>
      %124 = vector.extract_strided_slice %123 {offsets = [0, 0], sizes = [8, 32], strides = [1, 1]} : vector<8x128xf32> to vector<8x32xf32>
      %125 = vector.extract_strided_slice %123 {offsets = [0, 32], sizes = [8, 32], strides = [1, 1]} : vector<8x128xf32> to vector<8x32xf32>
      %126 = vector.extract_strided_slice %123 {offsets = [0, 96], sizes = [8, 32], strides = [1, 1]} : vector<8x128xf32> to vector<8x32xf32>
      %127 = vector.extract_strided_slice %116 {offsets = [0, 64], sizes = [8, 32], strides = [1, 1]} : vector<8x128xf32> to vector<8x32xf32>
      %128 = math.tanh %127 : vector<8x32xf32>
      %129 = arith.mulf %125, %110 : vector<8x32xf32>
      %130 = arith.mulf %124, %128 : vector<8x32xf32>
      %131 = arith.addf %129, %130 : vector<8x32xf32>
      %132 = math.tanh %131 : vector<8x32xf32>
      %133 = arith.mulf %126, %132 : vector<8x32xf32>
      %134 = vector.extract_strided_slice %46 {offsets = [32, 0], sizes = [8, 128], strides = [1, 1]} : vector<64x128xf32> to vector<8x128xf32>
      %135 = arith.truncf %133 : vector<8x32xf32> to vector<8x32xbf16>
      %cst_50 = arith.constant dense<0.000000e+00> : vector<8x128xf32>
      %136 = tpu.matmul %135, %47, %cst_50 {dimension_numbers = #tpu.dot_dimension_numbers<[1], [0], [0], [1], [0, 0, 1, 1], [], []>} : vector<8x32xbf16>, vector<32x128xbf16>, vector<8x128xf32> -> vector<8x128xf32>
      %137 = arith.addf %134, %136 : vector<8x128xf32>
      %cst_51 = arith.constant 5.000000e-01 : f32
      %138 = vector.broadcast %cst_51 : f32 to vector<8x128xf32>
      %139 = arith.mulf %138, %137 : vector<8x128xf32>
      %140 = math.tanh %139 : vector<8x128xf32>
      %cst_52 = arith.constant 1.000000e+00 : f32
      %141 = vector.broadcast %cst_52 : f32 to vector<8x128xf32>
      %142 = arith.addf %140, %141 : vector<8x128xf32>
      %cst_53 = arith.constant 5.000000e-01 : f32
      %143 = vector.broadcast %cst_53 : f32 to vector<8x128xf32>
      %144 = arith.mulf %143, %142 : vector<8x128xf32>
      %145 = vector.extract_strided_slice %144 {offsets = [0, 0], sizes = [8, 32], strides = [1, 1]} : vector<8x128xf32> to vector<8x32xf32>
      %146 = vector.extract_strided_slice %144 {offsets = [0, 32], sizes = [8, 32], strides = [1, 1]} : vector<8x128xf32> to vector<8x32xf32>
      %147 = vector.extract_strided_slice %144 {offsets = [0, 96], sizes = [8, 32], strides = [1, 1]} : vector<8x128xf32> to vector<8x32xf32>
      %148 = vector.extract_strided_slice %137 {offsets = [0, 64], sizes = [8, 32], strides = [1, 1]} : vector<8x128xf32> to vector<8x32xf32>
      %149 = math.tanh %148 : vector<8x32xf32>
      %150 = arith.mulf %146, %131 : vector<8x32xf32>
      %151 = arith.mulf %145, %149 : vector<8x32xf32>
      %152 = arith.addf %150, %151 : vector<8x32xf32>
      %153 = math.tanh %152 : vector<8x32xf32>
      %154 = arith.mulf %147, %153 : vector<8x32xf32>
      %155 = vector.extract_strided_slice %46 {offsets = [40, 0], sizes = [8, 128], strides = [1, 1]} : vector<64x128xf32> to vector<8x128xf32>
      %156 = arith.truncf %154 : vector<8x32xf32> to vector<8x32xbf16>
      %cst_54 = arith.constant dense<0.000000e+00> : vector<8x128xf32>
      %157 = tpu.matmul %156, %47, %cst_54 {dimension_numbers = #tpu.dot_dimension_numbers<[1], [0], [0], [1], [0, 0, 1, 1], [], []>} : vector<8x32xbf16>, vector<32x128xbf16>, vector<8x128xf32> -> vector<8x128xf32>
      %158 = arith.addf %155, %157 : vector<8x128xf32>
      %cst_55 = arith.constant 5.000000e-01 : f32
      %159 = vector.broadcast %cst_55 : f32 to vector<8x128xf32>
      %160 = arith.mulf %159, %158 : vector<8x128xf32>
      %161 = math.tanh %160 : vector<8x128xf32>
      %cst_56 = arith.constant 1.000000e+00 : f32
      %162 = vector.broadcast %cst_56 : f32 to vector<8x128xf32>
      %163 = arith.addf %161, %162 : vector<8x128xf32>
      %cst_57 = arith.constant 5.000000e-01 : f32
      %164 = vector.broadcast %cst_57 : f32 to vector<8x128xf32>
      %165 = arith.mulf %164, %163 : vector<8x128xf32>
      %166 = vector.extract_strided_slice %165 {offsets = [0, 0], sizes = [8, 32], strides = [1, 1]} : vector<8x128xf32> to vector<8x32xf32>
      %167 = vector.extract_strided_slice %165 {offsets = [0, 32], sizes = [8, 32], strides = [1, 1]} : vector<8x128xf32> to vector<8x32xf32>
      %168 = vector.extract_strided_slice %165 {offsets = [0, 96], sizes = [8, 32], strides = [1, 1]} : vector<8x128xf32> to vector<8x32xf32>
      %169 = vector.extract_strided_slice %158 {offsets = [0, 64], sizes = [8, 32], strides = [1, 1]} : vector<8x128xf32> to vector<8x32xf32>
      %170 = math.tanh %169 : vector<8x32xf32>
      %171 = arith.mulf %167, %152 : vector<8x32xf32>
      %172 = arith.mulf %166, %170 : vector<8x32xf32>
      %173 = arith.addf %171, %172 : vector<8x32xf32>
      %174 = math.tanh %173 : vector<8x32xf32>
      %175 = arith.mulf %168, %174 : vector<8x32xf32>
      %176 = vector.extract_strided_slice %46 {offsets = [48, 0], sizes = [8, 128], strides = [1, 1]} : vector<64x128xf32> to vector<8x128xf32>
      %177 = arith.truncf %175 : vector<8x32xf32> to vector<8x32xbf16>
      %cst_58 = arith.constant dense<0.000000e+00> : vector<8x128xf32>
      %178 = tpu.matmul %177, %47, %cst_58 {dimension_numbers = #tpu.dot_dimension_numbers<[1], [0], [0], [1], [0, 0, 1, 1], [], []>} : vector<8x32xbf16>, vector<32x128xbf16>, vector<8x128xf32> -> vector<8x128xf32>
      %179 = arith.addf %176, %178 : vector<8x128xf32>
      %cst_59 = arith.constant 5.000000e-01 : f32
      %180 = vector.broadcast %cst_59 : f32 to vector<8x128xf32>
      %181 = arith.mulf %180, %179 : vector<8x128xf32>
      %182 = math.tanh %181 : vector<8x128xf32>
      %cst_60 = arith.constant 1.000000e+00 : f32
      %183 = vector.broadcast %cst_60 : f32 to vector<8x128xf32>
      %184 = arith.addf %182, %183 : vector<8x128xf32>
      %cst_61 = arith.constant 5.000000e-01 : f32
      %185 = vector.broadcast %cst_61 : f32 to vector<8x128xf32>
      %186 = arith.mulf %185, %184 : vector<8x128xf32>
      %187 = vector.extract_strided_slice %186 {offsets = [0, 0], sizes = [8, 32], strides = [1, 1]} : vector<8x128xf32> to vector<8x32xf32>
      %188 = vector.extract_strided_slice %186 {offsets = [0, 32], sizes = [8, 32], strides = [1, 1]} : vector<8x128xf32> to vector<8x32xf32>
      %189 = vector.extract_strided_slice %186 {offsets = [0, 96], sizes = [8, 32], strides = [1, 1]} : vector<8x128xf32> to vector<8x32xf32>
      %190 = vector.extract_strided_slice %179 {offsets = [0, 64], sizes = [8, 32], strides = [1, 1]} : vector<8x128xf32> to vector<8x32xf32>
      %191 = math.tanh %190 : vector<8x32xf32>
      %192 = arith.mulf %188, %173 : vector<8x32xf32>
      %193 = arith.mulf %187, %191 : vector<8x32xf32>
      %194 = arith.addf %192, %193 : vector<8x32xf32>
      %195 = math.tanh %194 : vector<8x32xf32>
      %196 = arith.mulf %189, %195 : vector<8x32xf32>
      %197 = vector.extract_strided_slice %46 {offsets = [56, 0], sizes = [8, 128], strides = [1, 1]} : vector<64x128xf32> to vector<8x128xf32>
      %198 = arith.truncf %196 : vector<8x32xf32> to vector<8x32xbf16>
      %cst_62 = arith.constant dense<0.000000e+00> : vector<8x128xf32>
      %199 = tpu.matmul %198, %47, %cst_62 {dimension_numbers = #tpu.dot_dimension_numbers<[1], [0], [0], [1], [0, 0, 1, 1], [], []>} : vector<8x32xbf16>, vector<32x128xbf16>, vector<8x128xf32> -> vector<8x128xf32>
      %200 = arith.addf %197, %199 : vector<8x128xf32>
      %cst_63 = arith.constant 5.000000e-01 : f32
      %201 = vector.broadcast %cst_63 : f32 to vector<8x128xf32>
      %202 = arith.mulf %201, %200 : vector<8x128xf32>
      %203 = math.tanh %202 : vector<8x128xf32>
      %cst_64 = arith.constant 1.000000e+00 : f32
      %204 = vector.broadcast %cst_64 : f32 to vector<8x128xf32>
      %205 = arith.addf %203, %204 : vector<8x128xf32>
      %cst_65 = arith.constant 5.000000e-01 : f32
      %206 = vector.broadcast %cst_65 : f32 to vector<8x128xf32>
      %207 = arith.mulf %206, %205 : vector<8x128xf32>
      %208 = vector.extract_strided_slice %207 {offsets = [0, 0], sizes = [8, 32], strides = [1, 1]} : vector<8x128xf32> to vector<8x32xf32>
      %209 = vector.extract_strided_slice %207 {offsets = [0, 32], sizes = [8, 32], strides = [1, 1]} : vector<8x128xf32> to vector<8x32xf32>
      %210 = vector.extract_strided_slice %207 {offsets = [0, 96], sizes = [8, 32], strides = [1, 1]} : vector<8x128xf32> to vector<8x32xf32>
      %211 = vector.extract_strided_slice %200 {offsets = [0, 64], sizes = [8, 32], strides = [1, 1]} : vector<8x128xf32> to vector<8x32xf32>
      %212 = math.tanh %211 : vector<8x32xf32>
      %213 = arith.mulf %209, %194 : vector<8x32xf32>
      %214 = arith.mulf %208, %212 : vector<8x32xf32>
      %215 = arith.addf %213, %214 : vector<8x32xf32>
      %216 = math.tanh %215 : vector<8x32xf32>
      %217 = arith.mulf %210, %216 : vector<8x32xf32>
      %c0_66 = arith.constant 0 : index
      %c0_67 = arith.constant 0 : index
      %218 = vector.load %arg5[%c0_66, %c0_67] : memref<8x64xf32, #tpu.memory_space<vmem>>, vector<8x64xf32>
      %219 = arith.truncf %217 : vector<8x32xf32> to vector<8x32xbf16>
      %220 = arith.truncf %218 : vector<8x64xf32> to vector<8x64xbf16>
      %c0_68 = arith.constant 0 : index
      %c0_69 = arith.constant 0 : index
      %221 = vector.load %arg6[%c0_68, %c0_69] : memref<32x800xbf16, #tpu.memory_space<vmem>>, vector<32x800xbf16>
      %cst_70 = arith.constant dense<0.000000e+00> : vector<8x800xf32>
      %222 = tpu.matmul %219, %221, %cst_70 {dimension_numbers = #tpu.dot_dimension_numbers<[1], [0], [0], [1], [0, 0, 1, 1], [], []>} : vector<8x32xbf16>, vector<32x800xbf16>, vector<8x800xf32> -> vector<8x800xf32>
      %c0_71 = arith.constant 0 : index
      %c0_72 = arith.constant 0 : index
      %223 = vector.load %arg7[%c0_71, %c0_72] : memref<1x800xf32, #tpu.memory_space<vmem>>, vector<1x800xf32>
      %224 = vector.broadcast %223 : vector<1x800xf32> to vector<8x800xf32>
      %225 = arith.addf %222, %224 : vector<8x800xf32>
      %cst_73 = arith.constant 0.000000e+00 : f32
      %226 = vector.broadcast %cst_73 : f32 to vector<8x800xf32>
      %227 = arith.cmpf oge, %225, %226 : vector<8x800xf32>
      %cst_74 = arith.constant 0.00999999977 : f32
      %228 = vector.broadcast %cst_74 : f32 to vector<8x800xf32>
      %229 = arith.mulf %228, %225 : vector<8x800xf32>
      %230 = arith.select %227, %225, %229 : vector<8x800xi1>, vector<8x800xf32>
      %cst_75 = arith.constant dense<0.000000e+00> : vector<800xf32>
      %231 = vector.multi_reduction <add>, %230, %cst_75 [0] : vector<8x800xf32> to vector<800xf32>
      %232 = vector.shape_cast %231 : vector<800xf32> to vector<1x800xf32>
      %cst_76 = arith.constant 8.000000e+00 : f32
      %233 = vector.broadcast %cst_76 : f32 to vector<1x800xf32>
      %234 = arith.divf %232, %233 : vector<1x800xf32>
      %235 = vector.broadcast %234 : vector<1x800xf32> to vector<8x800xf32>
      %236 = arith.subf %230, %235 : vector<8x800xf32>
      %237 = arith.mulf %236, %236 : vector<8x800xf32>
      %cst_77 = arith.constant dense<0.000000e+00> : vector<800xf32>
      %238 = vector.multi_reduction <add>, %237, %cst_77 [0] : vector<8x800xf32> to vector<800xf32>
      %239 = vector.shape_cast %238 : vector<800xf32> to vector<1x800xf32>
      %cst_78 = arith.constant 8.000000e+00 : f32
      %240 = vector.broadcast %cst_78 : f32 to vector<1x800xf32>
      %241 = arith.divf %239, %240 : vector<1x800xf32>
      %cst_79 = arith.constant 9.99999974E-6 : f32
      %242 = vector.broadcast %cst_79 : f32 to vector<1x800xf32>
      %243 = arith.addf %241, %242 : vector<1x800xf32>
      %244 = math.rsqrt %243 : vector<1x800xf32>
      %245 = vector.broadcast %244 : vector<1x800xf32> to vector<8x800xf32>
      %246 = arith.mulf %236, %245 : vector<8x800xf32>
      %c0_80 = arith.constant 0 : index
      %c0_81 = arith.constant 0 : index
      %247 = vector.load %arg8[%c0_80, %c0_81] : memref<64x800xbf16, #tpu.memory_space<vmem>>, vector<64x800xbf16>
      %cst_82 = arith.constant dense<0.000000e+00> : vector<8x800xf32>
      %248 = tpu.matmul %220, %247, %cst_82 {dimension_numbers = #tpu.dot_dimension_numbers<[1], [0], [0], [1], [0, 0, 1, 1], [], []>} : vector<8x64xbf16>, vector<64x800xbf16>, vector<8x800xf32> -> vector<8x800xf32>
      %c0_83 = arith.constant 0 : index
      %c0_84 = arith.constant 0 : index
      %249 = vector.load %arg9[%c0_83, %c0_84] : memref<1x800xf32, #tpu.memory_space<vmem>>, vector<1x800xf32>
      %250 = vector.broadcast %249 : vector<1x800xf32> to vector<8x800xf32>
      %251 = arith.addf %248, %250 : vector<8x800xf32>
      %cst_85 = arith.constant 0.000000e+00 : f32
      %252 = vector.broadcast %cst_85 : f32 to vector<8x800xf32>
      %253 = arith.cmpf oge, %251, %252 : vector<8x800xf32>
      %cst_86 = arith.constant 0.00999999977 : f32
      %254 = vector.broadcast %cst_86 : f32 to vector<8x800xf32>
      %255 = arith.mulf %254, %251 : vector<8x800xf32>
      %256 = arith.select %253, %251, %255 : vector<8x800xi1>, vector<8x800xf32>
      %cst_87 = arith.constant dense<0.000000e+00> : vector<800xf32>
      %257 = vector.multi_reduction <add>, %256, %cst_87 [0] : vector<8x800xf32> to vector<800xf32>
      %258 = vector.shape_cast %257 : vector<800xf32> to vector<1x800xf32>
      %cst_88 = arith.constant 8.000000e+00 : f32
      %259 = vector.broadcast %cst_88 : f32 to vector<1x800xf32>
      %260 = arith.divf %258, %259 : vector<1x800xf32>
      %261 = vector.broadcast %260 : vector<1x800xf32> to vector<8x800xf32>
      %262 = arith.subf %256, %261 : vector<8x800xf32>
      %263 = arith.mulf %262, %262 : vector<8x800xf32>
      %cst_89 = arith.constant dense<0.000000e+00> : vector<800xf32>
      %264 = vector.multi_reduction <add>, %263, %cst_89 [0] : vector<8x800xf32> to vector<800xf32>
      %265 = vector.shape_cast %264 : vector<800xf32> to vector<1x800xf32>
      %cst_90 = arith.constant 8.000000e+00 : f32
      %266 = vector.broadcast %cst_90 : f32 to vector<1x800xf32>
      %267 = arith.divf %265, %266 : vector<1x800xf32>
      %cst_91 = arith.constant 9.99999974E-6 : f32
      %268 = vector.broadcast %cst_91 : f32 to vector<1x800xf32>
      %269 = arith.addf %267, %268 : vector<1x800xf32>
      %270 = math.rsqrt %269 : vector<1x800xf32>
      %271 = vector.broadcast %270 : vector<1x800xf32> to vector<8x800xf32>
      %272 = arith.mulf %262, %271 : vector<8x800xf32>
      %273 = arith.mulf %246, %272 : vector<8x800xf32>
      %cst_92 = arith.constant dense<0.000000e+00> : vector<800xf32>
      %274 = vector.multi_reduction <add>, %273, %cst_92 [0] : vector<8x800xf32> to vector<800xf32>
      %275 = vector.shape_cast %274 : vector<800xf32> to vector<1x800xf32>
      %cst_93 = arith.constant 8.000000e+00 : f32
      %276 = vector.broadcast %cst_93 : f32 to vector<1x800xf32>
      %277 = arith.divf %275, %276 : vector<1x800xf32>
      %278 = vector.broadcast %277 : vector<1x800xf32> to vector<8x800xf32>
      %279 = arith.subf %273, %278 : vector<8x800xf32>
      %280 = arith.mulf %279, %279 : vector<8x800xf32>
      %cst_94 = arith.constant dense<0.000000e+00> : vector<800xf32>
      %281 = vector.multi_reduction <add>, %280, %cst_94 [0] : vector<8x800xf32> to vector<800xf32>
      %282 = vector.shape_cast %281 : vector<800xf32> to vector<1x800xf32>
      %cst_95 = arith.constant 8.000000e+00 : f32
      %283 = vector.broadcast %cst_95 : f32 to vector<1x800xf32>
      %284 = arith.divf %282, %283 : vector<1x800xf32>
      %cst_96 = arith.constant 9.99999974E-6 : f32
      %285 = vector.broadcast %cst_96 : f32 to vector<1x800xf32>
      %286 = arith.addf %284, %285 : vector<1x800xf32>
      %287 = math.rsqrt %286 : vector<1x800xf32>
      %288 = vector.broadcast %287 : vector<1x800xf32> to vector<8x800xf32>
      %289 = arith.mulf %279, %288 : vector<8x800xf32>
      %290 = arith.truncf %289 : vector<8x800xf32> to vector<8x800xbf16>
      %c0_97 = arith.constant 0 : index
      %c0_98 = arith.constant 0 : index
      %291 = vector.load %arg10[%c0_97, %c0_98] : memref<800x128xbf16, #tpu.memory_space<vmem>>, vector<800x128xbf16>
      %cst_99 = arith.constant dense<0.000000e+00> : vector<8x128xf32>
      %292 = tpu.matmul %290, %291, %cst_99 {dimension_numbers = #tpu.dot_dimension_numbers<[1], [0], [0], [1], [0, 0, 1, 1], [], []>} : vector<8x800xbf16>, vector<800x128xbf16>, vector<8x128xf32> -> vector<8x128xf32>
      %c0_100 = arith.constant 0 : index
      %c0_101 = arith.constant 0 : index
      %293 = vector.load %arg11[%c0_100, %c0_101] : memref<1x128xf32, #tpu.memory_space<vmem>>, vector<1x128xf32>
      %294 = vector.broadcast %293 : vector<1x128xf32> to vector<8x128xf32>
      %295 = arith.addf %292, %294 : vector<8x128xf32>
      %cst_102 = arith.constant dense<0.000000e+00> : vector<128xf32>
      %296 = vector.multi_reduction <add>, %295, %cst_102 [0] : vector<8x128xf32> to vector<128xf32>
      %297 = vector.shape_cast %296 : vector<128xf32> to vector<1x128xf32>
      %cst_103 = arith.constant 8.000000e+00 : f32
      %298 = vector.broadcast %cst_103 : f32 to vector<1x128xf32>
      %299 = arith.divf %297, %298 : vector<1x128xf32>
      %300 = vector.broadcast %299 : vector<1x128xf32> to vector<8x128xf32>
      %301 = arith.subf %295, %300 : vector<8x128xf32>
      %302 = arith.mulf %301, %301 : vector<8x128xf32>
      %cst_104 = arith.constant dense<0.000000e+00> : vector<128xf32>
      %303 = vector.multi_reduction <add>, %302, %cst_104 [0] : vector<8x128xf32> to vector<128xf32>
      %304 = vector.shape_cast %303 : vector<128xf32> to vector<1x128xf32>
      %cst_105 = arith.constant 8.000000e+00 : f32
      %305 = vector.broadcast %cst_105 : f32 to vector<1x128xf32>
      %306 = arith.divf %304, %305 : vector<1x128xf32>
      %cst_106 = arith.constant 9.99999974E-6 : f32
      %307 = vector.broadcast %cst_106 : f32 to vector<1x128xf32>
      %308 = arith.addf %306, %307 : vector<1x128xf32>
      %309 = math.rsqrt %308 : vector<1x128xf32>
      %310 = vector.broadcast %309 : vector<1x128xf32> to vector<8x128xf32>
      %311 = arith.mulf %301, %310 : vector<8x128xf32>
      %312 = vector.extract_strided_slice %311 {offsets = [0, 0], sizes = [8, 64], strides = [1, 1]} : vector<8x128xf32> to vector<8x64xf32>
      %cst_107 = arith.constant dense<0xFF800000> : vector<8xf32>
      %313 = vector.multi_reduction <maximumf>, %312, %cst_107 [1] : vector<8x64xf32> to vector<8xf32>
      %314 = vector.shape_cast %313 : vector<8xf32> to vector<8x1xf32>
      %315 = vector.broadcast %314 : vector<8x1xf32> to vector<8x64xf32>
      %316 = arith.subf %312, %315 : vector<8x64xf32>
      %317 = math.exp %316 : vector<8x64xf32>
      %cst_108 = arith.constant dense<0.000000e+00> : vector<8xf32>
      %318 = vector.multi_reduction <add>, %317, %cst_108 [1] : vector<8x64xf32> to vector<8xf32>
      %319 = vector.shape_cast %318 : vector<8xf32> to vector<8x1xf32>
      %320 = tpu.reciprocal %319 {approx = true} : vector<8x1xf32> -> vector<8x1xf32>
      %321 = vector.broadcast %320 : vector<8x1xf32> to vector<8x64xf32>
      %322 = arith.mulf %317, %321 : vector<8x64xf32>
      %323 = vector.extract_strided_slice %311 {offsets = [0, 64], sizes = [8, 64], strides = [1, 1]} : vector<8x128xf32> to vector<8x64xf32>
      %cst_109 = arith.constant dense<0xFF800000> : vector<8xf32>
      %324 = vector.multi_reduction <maximumf>, %323, %cst_109 [1] : vector<8x64xf32> to vector<8xf32>
      %325 = vector.shape_cast %324 : vector<8xf32> to vector<8x1xf32>
      %326 = vector.broadcast %325 : vector<8x1xf32> to vector<8x64xf32>
      %327 = arith.subf %323, %326 : vector<8x64xf32>
      %328 = math.exp %327 : vector<8x64xf32>
      %cst_110 = arith.constant dense<0.000000e+00> : vector<8xf32>
      %329 = vector.multi_reduction <add>, %328, %cst_110 [1] : vector<8x64xf32> to vector<8xf32>
      %330 = vector.shape_cast %329 : vector<8xf32> to vector<8x1xf32>
      %331 = tpu.reciprocal %330 {approx = true} : vector<8x1xf32> -> vector<8x1xf32>
      %332 = vector.broadcast %331 : vector<8x1xf32> to vector<8x64xf32>
      %333 = arith.mulf %328, %332 : vector<8x64xf32>
      %334 = arith.addf %322, %333 : vector<8x64xf32>
      %335 = arith.mulf %334, %218 : vector<8x64xf32>
      %c0_111 = arith.constant 0 : index
      %c0_112 = arith.constant 0 : index
      %336 = vector.load %arg12[%c0_111, %c0_112] : memref<32x1000xbf16, #tpu.memory_space<vmem>>, vector<32x1000xbf16>
      %cst_113 = arith.constant dense<0.000000e+00> : vector<8x1000xf32>
      %337 = tpu.matmul %219, %336, %cst_113 {dimension_numbers = #tpu.dot_dimension_numbers<[1], [0], [0], [1], [0, 0, 1, 1], [], []>} : vector<8x32xbf16>, vector<32x1000xbf16>, vector<8x1000xf32> -> vector<8x1000xf32>
      %c0_114 = arith.constant 0 : index
      %c0_115 = arith.constant 0 : index
      %338 = vector.load %arg13[%c0_114, %c0_115] : memref<1x1000xf32, #tpu.memory_space<vmem>>, vector<1x1000xf32>
      %339 = vector.broadcast %338 : vector<1x1000xf32> to vector<8x1000xf32>
      %340 = arith.addf %337, %339 : vector<8x1000xf32>
      %cst_116 = arith.constant dense<0.000000e+00> : vector<1000xf32>
      %341 = vector.multi_reduction <add>, %340, %cst_116 [0] : vector<8x1000xf32> to vector<1000xf32>
      %342 = vector.shape_cast %341 : vector<1000xf32> to vector<1x1000xf32>
      %cst_117 = arith.constant 8.000000e+00 : f32
      %343 = vector.broadcast %cst_117 : f32 to vector<1x1000xf32>
      %344 = arith.divf %342, %343 : vector<1x1000xf32>
      %345 = vector.broadcast %344 : vector<1x1000xf32> to vector<8x1000xf32>
      %346 = arith.subf %340, %345 : vector<8x1000xf32>
      %347 = arith.mulf %346, %346 : vector<8x1000xf32>
      %cst_118 = arith.constant dense<0.000000e+00> : vector<1000xf32>
      %348 = vector.multi_reduction <add>, %347, %cst_118 [0] : vector<8x1000xf32> to vector<1000xf32>
      %349 = vector.shape_cast %348 : vector<1000xf32> to vector<1x1000xf32>
      %cst_119 = arith.constant 8.000000e+00 : f32
      %350 = vector.broadcast %cst_119 : f32 to vector<1x1000xf32>
      %351 = arith.divf %349, %350 : vector<1x1000xf32>
      %cst_120 = arith.constant 9.99999974E-6 : f32
      %352 = vector.broadcast %cst_120 : f32 to vector<1x1000xf32>
      %353 = arith.addf %351, %352 : vector<1x1000xf32>
      %354 = math.rsqrt %353 : vector<1x1000xf32>
      %355 = vector.broadcast %354 : vector<1x1000xf32> to vector<8x1000xf32>
      %356 = arith.mulf %346, %355 : vector<8x1000xf32>
      %357 = arith.truncf %335 : vector<8x64xf32> to vector<8x64xbf16>
      %c0_121 = arith.constant 0 : index
      %c0_122 = arith.constant 0 : index
      %358 = vector.load %arg14[%c0_121, %c0_122] : memref<64x1000xbf16, #tpu.memory_space<vmem>>, vector<64x1000xbf16>
      %cst_123 = arith.constant dense<0.000000e+00> : vector<8x1000xf32>
      %359 = tpu.matmul %357, %358, %cst_123 {dimension_numbers = #tpu.dot_dimension_numbers<[1], [0], [0], [1], [0, 0, 1, 1], [], []>} : vector<8x64xbf16>, vector<64x1000xbf16>, vector<8x1000xf32> -> vector<8x1000xf32>
      %c0_124 = arith.constant 0 : index
      %c0_125 = arith.constant 0 : index
      %360 = vector.load %arg15[%c0_124, %c0_125] : memref<1x1000xf32, #tpu.memory_space<vmem>>, vector<1x1000xf32>
      %361 = vector.broadcast %360 : vector<1x1000xf32> to vector<8x1000xf32>
      %362 = arith.addf %359, %361 : vector<8x1000xf32>
      %cst_126 = arith.constant dense<0.000000e+00> : vector<1000xf32>
      %363 = vector.multi_reduction <add>, %362, %cst_126 [0] : vector<8x1000xf32> to vector<1000xf32>
      %364 = vector.shape_cast %363 : vector<1000xf32> to vector<1x1000xf32>
      %cst_127 = arith.constant 8.000000e+00 : f32
      %365 = vector.broadcast %cst_127 : f32 to vector<1x1000xf32>
      %366 = arith.divf %364, %365 : vector<1x1000xf32>
      %367 = vector.broadcast %366 : vector<1x1000xf32> to vector<8x1000xf32>
      %368 = arith.subf %362, %367 : vector<8x1000xf32>
      %369 = arith.mulf %368, %368 : vector<8x1000xf32>
      %cst_128 = arith.constant dense<0.000000e+00> : vector<1000xf32>
      %370 = vector.multi_reduction <add>, %369, %cst_128 [0] : vector<8x1000xf32> to vector<1000xf32>
      %371 = vector.shape_cast %370 : vector<1000xf32> to vector<1x1000xf32>
      %cst_129 = arith.constant 8.000000e+00 : f32
      %372 = vector.broadcast %cst_129 : f32 to vector<1x1000xf32>
      %373 = arith.divf %371, %372 : vector<1x1000xf32>
      %cst_130 = arith.constant 9.99999974E-6 : f32
      %374 = vector.broadcast %cst_130 : f32 to vector<1x1000xf32>
      %375 = arith.addf %373, %374 : vector<1x1000xf32>
      %376 = math.rsqrt %375 : vector<1x1000xf32>
      %377 = vector.broadcast %376 : vector<1x1000xf32> to vector<8x1000xf32>
      %378 = arith.mulf %368, %377 : vector<8x1000xf32>
      %379 = arith.mulf %378, %356 : vector<8x1000xf32>
      %380 = arith.truncf %379 : vector<8x1000xf32> to vector<8x1000xbf16>
      %c0_131 = arith.constant 0 : index
      %c0_132 = arith.constant 0 : index
      %381 = vector.load %arg21[%c0_131, %c0_132] : memref<8x1000xbf16, #tpu.memory_space<vmem>>, vector<8x1000xbf16>
      tpu.vector_store %arg21[%c0_131, %c0_132], %380 {strides = array<i32>} : memref<8x1000xbf16, #tpu.memory_space<vmem>>, vector<8x1000xbf16>,
      %cst_133 = arith.constant 0.000000e+00 : f32
      %382 = vector.broadcast %cst_133 : f32 to vector<8x128xf32>
      %c0_134 = arith.constant 0 : index
      %c0_135 = arith.constant 0 : index
      %383 = vector.load %arg20[%c0_134, %c0_135] : memref<8x128xf32, #tpu.memory_space<vmem>>, vector<8x128xf32>
      tpu.vector_store %arg20[%c0_134, %c0_135], %382 {strides = array<i32>} : memref<8x128xf32, #tpu.memory_space<vmem>>, vector<8x128xf32>,
    } else {
    }
    %c0 = arith.constant 0 : index
    %c0_1 = arith.constant 0 : index
    %3 = vector.load %arg21[%c0, %c0_1] : memref<8x1000xbf16, #tpu.memory_space<vmem>>, vector<8x1000xbf16>
    %c0_2 = arith.constant 0 : index
    %c0_3 = arith.constant 0 : index
    %c0_4 = arith.constant 0 : index
    %4 = vector.load %arg16[%c0_2, %c0_3, %c0_4] : memref<1x1000x640xbf16, #tpu.memory_space<vmem>>, vector<1x1000x640xbf16>
    %5 = vector.shape_cast %4 : vector<1x1000x640xbf16> to vector<1000x640xbf16>
    %cst = arith.constant dense<0.000000e+00> : vector<8x640xf32>
    %6 = tpu.matmul %3, %5, %cst {dimension_numbers = #tpu.dot_dimension_numbers<[1], [0], [0], [1], [0, 0, 1, 1], [], []>} : vector<8x1000xbf16>, vector<1000x640xbf16>, vector<8x640xf32> -> vector<8x640xf32>
    %c0_5 = arith.constant 0 : index
    %c0_6 = arith.constant 0 : index
    %7 = vector.load %arg17[%c0_5, %c0_6] : memref<1x640xf32, #tpu.memory_space<vmem>>, vector<1x640xf32>
    %8 = vector.broadcast %7 : vector<1x640xf32> to vector<8x640xf32>
    %9 = arith.addf %6, %8 : vector<8x640xf32>
    %cst_7 = arith.constant 0.000000e+00 : f32
    %10 = vector.broadcast %cst_7 : f32 to vector<8x640xf32>
    %11 = arith.cmpf oge, %9, %10 : vector<8x640xf32>
    %cst_8 = arith.constant 0.00999999977 : f32
    %12 = vector.broadcast %cst_8 : f32 to vector<8x640xf32>
    %13 = arith.mulf %12, %9 : vector<8x640xf32>
    %14 = arith.select %11, %9, %13 : vector<8x640xi1>, vector<8x640xf32>
    %cst_9 = arith.constant dense<0.000000e+00> : vector<640xf32>
    %15 = vector.multi_reduction <add>, %14, %cst_9 [0] : vector<8x640xf32> to vector<640xf32>
    %16 = vector.shape_cast %15 : vector<640xf32> to vector<1x640xf32>
    %cst_10 = arith.constant 8.000000e+00 : f32
    %17 = vector.broadcast %cst_10 : f32 to vector<1x640xf32>
    %18 = arith.divf %16, %17 : vector<1x640xf32>
    %19 = vector.broadcast %18 : vector<1x640xf32> to vector<8x640xf32>
    %20 = arith.subf %14, %19 : vector<8x640xf32>
    %21 = arith.mulf %20, %20 : vector<8x640xf32>
    %cst_11 = arith.constant dense<0.000000e+00> : vector<640xf32>
    %22 = vector.multi_reduction <add>, %21, %cst_11 [0] : vector<8x640xf32> to vector<640xf32>
    %23 = vector.shape_cast %22 : vector<640xf32> to vector<1x640xf32>
    %cst_12 = arith.constant 8.000000e+00 : f32
    %24 = vector.broadcast %cst_12 : f32 to vector<1x640xf32>
    %25 = arith.divf %23, %24 : vector<1x640xf32>
    %cst_13 = arith.constant 9.99999974E-6 : f32
    %26 = vector.broadcast %cst_13 : f32 to vector<1x640xf32>
    %27 = arith.addf %25, %26 : vector<1x640xf32>
    %28 = math.rsqrt %27 : vector<1x640xf32>
    %29 = vector.broadcast %28 : vector<1x640xf32> to vector<8x640xf32>
    %30 = arith.mulf %20, %29 : vector<8x640xf32>
    %c0_14 = arith.constant 0 : index
    %c0_15 = arith.constant 0 : index
    %31 = vector.load %arg20[%c0_14, %c0_15] : memref<8x128xf32, #tpu.memory_space<vmem>>, vector<8x128xf32>
    %32 = arith.truncf %30 : vector<8x640xf32> to vector<8x640xbf16>
    %c0_16 = arith.constant 0 : index
    %c0_17 = arith.constant 0 : index
    %c0_18 = arith.constant 0 : index
    %33 = vector.load %arg18[%c0_16, %c0_17, %c0_18] : memref<1x640x128xbf16, #tpu.memory_space<vmem>>, vector<1x640x128xbf16>
    %34 = vector.shape_cast %33 : vector<1x640x128xbf16> to vector<640x128xbf16>
    %cst_19 = arith.constant dense<0.000000e+00> : vector<8x128xf32>
    %35 = tpu.matmul %32, %34, %cst_19 {dimension_numbers = #tpu.dot_dimension_numbers<[1], [0], [0], [1], [0, 0, 1, 1], [], []>} : vector<8x640xbf16>, vector<640x128xbf16>, vector<8x128xf32> -> vector<8x128xf32>
    %36 = arith.addf %31, %35 : vector<8x128xf32>
    %c0_20 = arith.constant 0 : index
    %c0_21 = arith.constant 0 : index
    %37 = vector.load %arg20[%c0_20, %c0_21] : memref<8x128xf32, #tpu.memory_space<vmem>>, vector<8x128xf32>
    tpu.vector_store %arg20[%c0_20, %c0_21], %36 {strides = array<i32>} : memref<8x128xf32, #tpu.memory_space<vmem>>, vector<8x128xf32>,
    %c3_i32 = arith.constant 3 : i32
    %38 = arith.cmpi eq, %arg0, %c3_i32 : i32
    %39 = arith.extui %38 : i1 to i32
    %c0_i32_22 = arith.constant 0 : i32
    %40 = arith.cmpi ne, %39, %c0_i32_22 : i32
    scf.if %40 {
      %c0_23 = arith.constant 0 : index
      %c0_24 = arith.constant 0 : index
      %41 = vector.load %arg20[%c0_23, %c0_24] : memref<8x128xf32, #tpu.memory_space<vmem>>, vector<8x128xf32>
      %c0_25 = arith.constant 0 : index
      %c0_26 = arith.constant 0 : index
      %42 = vector.load %arg19[%c0_25, %c0_26] : memref<1x128xf32, #tpu.memory_space<vmem>>, vector<1x128xf32>
      %43 = vector.broadcast %42 : vector<1x128xf32> to vector<8x128xf32>
      %44 = arith.addf %41, %43 : vector<8x128xf32>
      %cst_27 = arith.constant dense<0.000000e+00> : vector<128xf32>
      %45 = vector.multi_reduction <add>, %44, %cst_27 [0] : vector<8x128xf32> to vector<128xf32>
      %46 = vector.shape_cast %45 : vector<128xf32> to vector<1x128xf32>
      %cst_28 = arith.constant 8.000000e+00 : f32
      %47 = vector.broadcast %cst_28 : f32 to vector<1x128xf32>
      %48 = arith.divf %46, %47 : vector<1x128xf32>
      %49 = vector.broadcast %48 : vector<1x128xf32> to vector<8x128xf32>
      %50 = arith.subf %44, %49 : vector<8x128xf32>
      %51 = arith.mulf %50, %50 : vector<8x128xf32>
      %cst_29 = arith.constant dense<0.000000e+00> : vector<128xf32>
      %52 = vector.multi_reduction <add>, %51, %cst_29 [0] : vector<8x128xf32> to vector<128xf32>
      %53 = vector.shape_cast %52 : vector<128xf32> to vector<1x128xf32>
      %cst_30 = arith.constant 8.000000e+00 : f32
      %54 = vector.broadcast %cst_30 : f32 to vector<1x128xf32>
      %55 = arith.divf %53, %54 : vector<1x128xf32>
      %cst_31 = arith.constant 9.99999974E-6 : f32
      %56 = vector.broadcast %cst_31 : f32 to vector<1x128xf32>
      %57 = arith.addf %55, %56 : vector<1x128xf32>
      %58 = math.rsqrt %57 : vector<1x128xf32>
      %59 = vector.broadcast %58 : vector<1x128xf32> to vector<8x128xf32>
      %60 = arith.mulf %50, %59 : vector<8x128xf32>
      %cst_32 = arith.constant 0.000000e+00 : f32
      %61 = vector.broadcast %cst_32 : f32 to vector<8x128xf32>
      %62 = arith.cmpf oge, %60, %61 : vector<8x128xf32>
      %cst_33 = arith.constant 0.00999999977 : f32
      %63 = vector.broadcast %cst_33 : f32 to vector<8x128xf32>
      %64 = arith.mulf %63, %60 : vector<8x128xf32>
      %65 = arith.select %62, %60, %64 : vector<8x128xi1>, vector<8x128xf32>
      %c0_34 = arith.constant 0 : index
      %c0_35 = arith.constant 0 : index
      %66 = vector.load %arg20[%c0_34, %c0_35] : memref<8x128xf32, #tpu.memory_space<vmem>>, vector<8x128xf32>
      tpu.vector_store %arg20[%c0_34, %c0_35], %65 {strides = array<i32>} : memref<8x128xf32, #tpu.memory_space<vmem>>, vector<8x128xf32>,
    } else {
    }
    return
  }
  func.func @transform_0(%arg0: i32) -> (i32, i32) {
    %c0_i32 = arith.constant 0 : i32
    %c0_i32_0 = arith.constant 0 : i32
    %c0_i32_1 = arith.constant 0 : i32
    return %c0_i32, %c0_i32_0 : i32, i32
  }
  func.func @transform_1(%arg0: i32) -> (i32, i32) {
    %c0_i32 = arith.constant 0 : i32
    %c0_i32_0 = arith.constant 0 : i32
    %c0_i32_1 = arith.constant 0 : i32
    return %c0_i32, %c0_i32_0 : i32, i32
  }
  func.func @transform_2(%arg0: i32) -> (i32, i32) {
    %c0_i32 = arith.constant 0 : i32
    %c0_i32_0 = arith.constant 0 : i32
    %c0_i32_1 = arith.constant 0 : i32
    return %c0_i32, %c0_i32_0 : i32, i32
  }
  func.func @transform_3(%arg0: i32) -> (i32, i32) {
    %c0_i32 = arith.constant 0 : i32
    %c0_i32_0 = arith.constant 0 : i32
    %c0_i32_1 = arith.constant 0 : i32
    return %c0_i32, %c0_i32_0 : i32, i32
  }
  func.func @transform_4(%arg0: i32) -> (i32, i32) {
    %c0_i32 = arith.constant 0 : i32
    %c0_i32_0 = arith.constant 0 : i32
    %c0_i32_1 = arith.constant 0 : i32
    return %c0_i32, %c0_i32_0 : i32, i32
  }
  func.func @transform_5(%arg0: i32) -> (i32, i32) {
    %c0_i32 = arith.constant 0 : i32
    %c0_i32_0 = arith.constant 0 : i32
    %c0_i32_1 = arith.constant 0 : i32
    return %c0_i32, %c0_i32_0 : i32, i32
  }
  func.func @transform_6(%arg0: i32) -> (i32, i32) {
    %c0_i32 = arith.constant 0 : i32
    %c0_i32_0 = arith.constant 0 : i32
    %c0_i32_1 = arith.constant 0 : i32
    return %c0_i32, %c0_i32_0 : i32, i32
  }
  func.func @transform_7(%arg0: i32) -> (i32, i32) {
    %c0_i32 = arith.constant 0 : i32
    %c0_i32_0 = arith.constant 0 : i32
    %c0_i32_1 = arith.constant 0 : i32
    return %c0_i32, %c0_i32_0 : i32, i32
  }
  func.func @transform_8(%arg0: i32) -> (i32, i32) {
    %c0_i32 = arith.constant 0 : i32
    %c0_i32_0 = arith.constant 0 : i32
    %c0_i32_1 = arith.constant 0 : i32
    return %c0_i32, %c0_i32_0 : i32, i32
  }
  func.func @transform_9(%arg0: i32) -> (i32, i32) {
    %c0_i32 = arith.constant 0 : i32
    %c0_i32_0 = arith.constant 0 : i32
    %c0_i32_1 = arith.constant 0 : i32
    return %c0_i32, %c0_i32_0 : i32, i32
  }
  func.func @transform_10(%arg0: i32) -> (i32, i32) {
    %c0_i32 = arith.constant 0 : i32
    %c0_i32_0 = arith.constant 0 : i32
    %c0_i32_1 = arith.constant 0 : i32
    return %c0_i32, %c0_i32_0 : i32, i32
  }
  func.func @transform_11(%arg0: i32) -> (i32, i32) {
    %c0_i32 = arith.constant 0 : i32
    %c0_i32_0 = arith.constant 0 : i32
    %c0_i32_1 = arith.constant 0 : i32
    return %c0_i32, %c0_i32_0 : i32, i32
  }
  func.func @transform_12(%arg0: i32) -> (i32, i32) {
    %c0_i32 = arith.constant 0 : i32
    %c0_i32_0 = arith.constant 0 : i32
    %c0_i32_1 = arith.constant 0 : i32
    return %c0_i32, %c0_i32_0 : i32, i32
  }
  func.func @transform_13(%arg0: i32) -> (i32, i32) {
    %c0_i32 = arith.constant 0 : i32
    %c0_i32_0 = arith.constant 0 : i32
    %c0_i32_1 = arith.constant 0 : i32
    return %c0_i32, %c0_i32_0 : i32, i32
  }
  func.func @transform_14(%arg0: i32) -> (i32, i32) {
    %c0_i32 = arith.constant 0 : i32
    %c0_i32_0 = arith.constant 0 : i32
    %c0_i32_1 = arith.constant 0 : i32
    return %c0_i32, %c0_i32_0 : i32, i32
  }
  func.func @transform_15(%arg0: i32) -> (i32, i32, i32) {
    %c0_i32 = arith.constant 0 : i32
    %c0_i32_0 = arith.constant 0 : i32
    %c0_i32_1 = arith.constant 0 : i32
    return %arg0, %c0_i32, %c0_i32_0 : i32, i32, i32
  }
  func.func @transform_16(%arg0: i32) -> (i32, i32) {
    %c0_i32 = arith.constant 0 : i32
    %c0_i32_0 = arith.constant 0 : i32
    return %c0_i32, %arg0 : i32, i32
  }
  func.func @transform_17(%arg0: i32) -> (i32, i32, i32) {
    %c0_i32 = arith.constant 0 : i32
    %c0_i32_0 = arith.constant 0 : i32
    %c0_i32_1 = arith.constant 0 : i32
    return %arg0, %c0_i32, %c0_i32_0 : i32, i32, i32
  }
  func.func @transform_18(%arg0: i32) -> (i32, i32) {
    %c0_i32 = arith.constant 0 : i32
    %c0_i32_0 = arith.constant 0 : i32
    %c0_i32_1 = arith.constant 0 : i32
    return %c0_i32, %c0_i32_0 : i32, i32
  }
  func.func @transform_19(%arg0: i32) -> (i32, i32) {
    %c0_i32 = arith.constant 0 : i32
    %c0_i32_0 = arith.constant 0 : i32
    %c0_i32_1 = arith.constant 0 : i32
    return %c0_i32, %c0_i32_0 : i32, i32
  }
}

</mosaic_0001>

<bundles_post_ra>
// kernel: tpu_custom_call.1
= control target key start
LH: loop header
LB: loop body
LE: loop exit
PB: predicated region body
PF: predicated region fallthrough
CT: control target
= control target key end

     0   :  { %s12209_s0 = inlined_call_operand.vmem [shape: bf16[64,32], index: 0, kind: input, shape index: {}]   ;;  %s12210_s1 = inlined_call_operand.hbm [shape: bf16[32,128], index: 1, kind: input, shape index: {}]   ;;  %s12211_s2 = inlined_call_operand.hbm [shape: bf16[32,128], index: 2, kind: input, shape index: {}]   ;;  %s12212_s3 = inlined_call_operand.hbm [shape: f32[1,128], index: 3, kind: input, shape index: {}]   ;;  %s12213_s4 = inlined_call_operand.hbm [shape: f32[8,64], index: 4, kind: input, shape index: {}]   ;;  %s12214_s5 = inlined_call_operand.hbm [shape: bf16[32,800], index: 5, kind: input, shape index: {}]   ;;  %s12215_s6 = inlined_call_operand.hbm [shape: f32[1,800], index: 6, kind: input, shape index: {}]   ;;  %s12216_s7 = inlined_call_operand.hbm [shape: bf16[64,800], index: 7, kind: input, shape index: {}]   ;;  %s12217_s8 = inlined_call_operand.hbm [shape: f32[1,800], index: 8, kind: input, shape index: {}]   ;;  %s12218_s9 = inlined_call_operand.hbm [shape: bf16[800,128], index: 9, kind: input, shape index: {}]   ;;  %s12219_s10 = inlined_call_operand.hbm [shape: f32[1,128], index: 10, kind: input, shape index: {}]   ;;  %s12220_s11 = inlined_call_operand.hbm [shape: bf16[32,1000], index: 11, kind: input, shape index: {}]   ;;  %s12221_s12 = inlined_call_operand.hbm [shape: f32[1,1000], index: 12, kind: input, shape index: {}]   ;;  %s12222_s13 = inlined_call_operand.hbm [shape: bf16[64,1000], index: 13, kind: input, shape index: {}]   ;;  %s12223_s14 = inlined_call_operand.hbm [shape: f32[1,1000], index: 14, kind: input, shape index: {}]   ;;  %s12224_s15 = inlined_call_operand.hbm [shape: bf16[4,1000,640], index: 15, kind: input, shape index: {}]   ;;  %s12225_s16 = inlined_call_operand.hbm [shape: f32[1,2560], index: 16, kind: input, shape index: {}]   ;;  %s12226_s17 = inlined_call_operand.hbm [shape: bf16[4,640,128], index: 17, kind: input, shape index: {}]   ;;  %s12227_s18 = inlined_call_operand.hbm [shape: f32[1,128], index: 18, kind: input, shape index: {}]   ;;  %s12228_s19 = inlined_call_operand.hbm [shape: f32[8,128], index: 19, kind: output, shape index: {}]  }
   0x1   :  { %12270 = sst [smem:[#allocation49_spill]] %s12209_s0 }
   0x2   :  { %12271 = sst [smem:[#allocation50_spill]] %s12210_s1 }
   0x3   :  { %12272 = sst [smem:[#allocation51_spill]] %s12211_s2 }
   0x4   :  { %12273 = sst [smem:[#allocation52_spill]] %s12212_s3 }
   0x5   :  { %12274 = sst [smem:[#allocation53_spill]] %s12213_s4 }
   0x6   :  { %12275 = sst [smem:[#allocation54_spill]] %s12214_s5 }
   0x7   :  { %12276 = sst [smem:[#allocation55_spill]] %s12215_s6 }
   0x8   :  { %12277 = sst [smem:[#allocation56_spill]] %s12216_s7 }
   0x9   :  { %12278 = sst [smem:[#allocation57_spill]] %s12217_s8 }
   0xa   :  { %12279 = sst [smem:[#allocation58_spill]] %s12218_s9 }
   0xb   :  { %12280 = sst [smem:[#allocation59_spill]] %s12219_s10 }
   0xc   :  { %12281 = sst [smem:[#allocation60_spill]] %s12220_s11 }
   0xd   :  { %12282 = sst [smem:[#allocation61_spill]] %s12222_s13 }
   0xe   :  { %12283 = sst [smem:[#allocation62_spill]] %s12223_s14 }
   0xf   :  { %12284 = sst [smem:[#allocation63_spill]] %s12224_s15 }
  0x10   :  { %12285 = sst [smem:[#allocation64_spill]] %s12226_s17 }
  0x11   :  { %12286 = sst [smem:[#allocation65_spill]] %s12227_s18 }
  0x12   :  { %12287 = sst [smem:[#allocation66_spill]] %s12228_s19 }
  0x13   :  { %24 = vsyncpa [#allocation4], 0 }
  0x14   :  { %25 = vsyncpa [#allocation7], 0 }
  0x15   :  { %26 = vsyncpa [#allocation10], 0 }
  0x16   :  { %27 = vsyncpa [#allocation13], 0 }
  0x17   :  { %28 = vsyncpa [#allocation16], 0 }
  0x18   :  { %29 = vsyncpa [#allocation19], 0 }
  0x19   :  { %30 = vsyncpa [#allocation22], 0 }
  0x1a   :  { %31 = vsyncpa [#allocation25], 0 }
  0x1b   :  { %32 = vsyncpa [#allocation5], 0  ;;  %s10516_s0 = smov 0   ;;  %s10518_s30 = smov 0  }
  0x1c   :  { %s10520_s20 = smov 0   ;;  %s10522_s21 = smov 0  }
  0x1d LB: > { %12288 = sst [smem:[#allocation42_spill]] %s10371_s30  ;;  %s10381_s1 = smov [#allocation3]   ;;  %s10379_s21 = sphi %s10522_s21, %s12356_s21   ;;  %s10375_s20 = sphi %s10520_s20, %s12359_s20   ;;  %s10371_s30 = sphi %s10518_s30, %s12358_s30   ;;  %s10367_s0 = sphi %s10516_s0, %s12357_s0  }
  0x1e   : > { %12289 = sst [smem:[#allocation43_spill]] %s10375_s20  ;;  %s493_s22 = sshll.u32 %s10381_s1, 4  ;;  %s10543_s22 = int_to_ptr.vmem [resolvable:$true] %s493_s22 }
  0x1f   : > { %s10537_s2 = sadd.s32 4294967295, %s10379_s21   ;;  %p7810_p0 = scmp.ge.s32.totalorder %s10379_s21, 1 }
  0x20   : > { %12290 = sst [smem:[#allocation44_spill]] %s10537_s2  ;;  %p12247_p1 = scmp.eq.s32.totalorder %s10537_s2, 0 }
  0x21   : > { %p478_p2 = scmp.lt.s32.totalorder %s10379_s21, 5  ;;  %s10382_s24 = smov [#allocation6]  }
  0x22   : > { %s506_s25 = sshll.u32 %s10382_s24, 4  ;;  %s12294_s28 = sld [smem:[#allocation50_spill]]  ;;  %s10557_s25 = int_to_ptr.vmem [resolvable:$true] %s506_s25 }
  0x23   : > { %p10545_p4 = pnand %p7810_p0, %p478_p2 }
  0x25   : > { %s12291_s23 = scalar_select %p10545_p4, 1, 0 }
  0x26   : > { %p8864_p5 = pneg %p10545_p4 }
  0x27   : > { %12292 = sst [smem:[#allocation45_spill]] %s12291_s23 }
  0x28   : > { %p10553_p6 = pnand %p8864_p5, %p12247_p1  ;;  %s9769_s29 = scalar_lea.hbm %s12294_s28, 256 }
  0x29   : > { %p9770_p7 = scmp.ne.s32.totalorder %s12294_s28, %s9769_s29  ;;  %p9776_p11 = scmp.lt.u32.totalorder %s9769_s29, %s12294_s28 }
  0x2a   : > { %s12293_s3 = scalar_select %p10553_p6, 1, 0 }
  0x2b   : > { %p10567_p8 = pneg %p10553_p6 }
  0x2d   : > { %s12295_s23 = scalar_select %p10567_p8, 1, 0 }
  0x2e   : > { %p9772_p9 = pnand %p10567_p8, %p9770_p7 }
  0x30   : > { %p9773_p10 = pneg %p9772_p9 }
  0x32   : > { %p9778_p12 = pnand %p9776_p11, %p9773_p10 }
  0x34   : > { %9781 = shalt.err (!%p9778_p12)
}
  0x35   : > { %s9782_s19 = scalar_lea.vmem %s10543_s22, 256  ;;  %p9790_p5 = scmp.lt.s32.totalorder %s10543_s22, %s10543_s22 }
  0x36   : > { %p9783_p13 = scmp.ne.s32.totalorder %s10543_s22, %s9782_s19  ;;  %p9791_p3 = scmp.lt.s32.totalorder %s9782_s19, %s9782_s19 }
  0x38   : > { %p9785_p0 = pnand %p9783_p13, %p10567_p8  ;;  %p9792_p7 = por %p9791_p3, %p9790_p5 }
  0x3a   : > { %p9786_p2 = pneg %p9785_p0 }
  0x3c   : > { %p9793_p9 = pnand %p9792_p7, %p9786_p2 }
  0x3e   : > { %9796 = shalt.err (!%p9793_p9)
}
  0x3f   : > { %s12241_s26 = smov 64   ;;  %s12243_s17 = smov 4  }
  0x40   : > { %8867 = dma.hbm_to_vmem [thread:$0]  (!%p10553_p6), %s12294_s28, 256, %s10543_s22, [#allocation4], %s12241_s26, %s12241_s26, %s12243_s17  }
  0x41   : > { %s12296_s18 = sld [smem:[#allocation51_spill]] }
  0x47   : > { %s9797_s19 = scalar_lea.hbm %s12296_s18, 256 }
  0x48   : > { %p9798_p3 = scmp.ne.s32.totalorder %s12296_s18, %s9797_s19  ;;  %p9804_p12 = scmp.lt.u32.totalorder %s9797_s19, %s12296_s18 }
  0x4a   : > { %p9800_p10 = pnand %p9798_p3, %p10567_p8 }
  0x4c   : > { %p9801_p11 = pneg %p9800_p10 }
  0x4e   : > { %p9806_p13 = pnand %p9804_p12, %p9801_p11 }
  0x50   : > { %9809 = shalt.err (!%p9806_p13)
}
  0x51   : > { %s9810_s22 = scalar_lea.vmem %s10557_s25, 256  ;;  %p9818_p7 = scmp.lt.s32.totalorder %s10557_s25, %s10557_s25 }
  0x52   : > { %p9811_p0 = scmp.ne.s32.totalorder %s10557_s25, %s9810_s22  ;;  %p9819_p9 = scmp.lt.s32.totalorder %s9810_s22, %s9810_s22 }
  0x54   : > { %p9813_p2 = pnand %p9811_p0, %p10567_p8  ;;  %p9820_p3 = por %p9819_p9, %p9818_p7 }
  0x56   : > { %p9814_p5 = pneg %p9813_p2 }
  0x58   : > { %p9821_p10 = pnand %p9820_p3, %p9814_p5 }
  0x5a   : > { %9824 = shalt.err (!%p9821_p10)
}
  0x5b   : > { %8870 = dma.hbm_to_vmem [thread:$0]  (!%p10553_p6), %s12296_s18, 256, %s10557_s25, [#allocation7], %s12241_s26, %s12241_s26, %s12243_s17  }
  0x5c   : > { %s10618_s13 = sadd.s32 1, %s10379_s21   ;;  %s360_s14 = sadd.s32 1, %s10375_s20 }
  0x5d   : > { %12297 = sst [smem:[#allocation46_spill]] %s10618_s13  ;;  %s357_s27 = ssub.s32 %s10379_s21, %s10618_s13 }
  0x5e   : > { %p367_p11 = scmp.ne.s32.totalorder %s10375_s20, %s10371_s30  ;;  %p358_p12 = scmp.eq.s32.totalorder %s357_s27, 0 }
  0x5f   : > { %p368_p13 = scmp.eq.s32.totalorder %s10379_s21, 0  ;;  %p373_p0 = scmp.ne.s32.totalorder %s10371_s30, %s10367_s0 }
  0x60   : > { %p8935_p2 = scmp.lt.s32.totalorder %s10379_s21, 4  ;;  %s673_s24 = sand.u32 1, %s10379_s21  }
  0x61   : > { %s10630_s29 = scalar_select %p358_p12, %s10375_s20, %s360_s14  }
  0x62   : > { %p369_p5 = por %p368_p13, %p367_p11  ;;  %p10634_p7 = por %p12247_p1, %p373_p0 }
  0x63   : > { %12298 = sst [smem:[#allocation47_spill]] %s10630_s29  ;;  %s10640_s25 = sand.u32 1, %s10375_s20  }
  0x64   : > { %s12299_s1 = scalar_select %p10634_p7, 1, 0 }
  0x65   : > { %s8786_s19 = smul.u32 2500, %s10640_s25  ;;  %p10644_p9 = pnand %p8935_p2, %p369_p5 }
  0x66   : > { %12300 = sst [smem:[#allocation48_spill]] %s12299_s1  ;;  %s8787_s22 = smul.u32 40000, %s10379_s21 }
  0x67   : > { %s12301_s9 = scalar_select %p10644_p9, 1, 0 }
  0x68   : > { %s12302_s15 = sld [smem:[#allocation63_spill]]  ;;  %s677_s27 = scalar_lea.vmem [#allocation26], %s8786_s19 }
  0x69   : > { %s684_s26 = sshll.u32 %s677_s27, 4  ;;  %s10655_s17 = scalar_lea.sflag [#allocation4], %s673_s24  ;;  %s10653_s26 = int_to_ptr.vmem [resolvable:$true] %s684_s26 }
  0x6a   : > { %p10661_p10 = pneg %p10644_p9 }
  0x6c   : > { %s12303_s28 = scalar_select %p10661_p10, 1, 0 }
  0x6e   : > { %s10651_s14 = scalar_lea.hbm %s12302_s15, %s8787_s22  ;;  %s9830_s19 = scalar_lea.hbm %s12302_s15, 160000 }
  0x6f   : > { %s9825_s18 = scalar_lea.hbm %s10651_s14, 40000  ;;  %p9831_p13 = scmp.lt.u32.totalorder %s10651_s14, %s12302_s15 }
  0x70   : > { %p9826_p3 = scmp.ne.s32.totalorder %s10651_s14, %s9825_s18  ;;  %p9832_p0 = scmp.lt.u32.totalorder %s9830_s19, %s9825_s18 }
  0x71   : > { %p9834_p5 = scmp.lt.u32.totalorder %s9825_s18, %s10651_s14 }
  0x72   : > { %p9828_p11 = pnand %p10661_p10, %p9826_p3  ;;  %p9833_p2 = por %p9832_p0, %p9831_p13 }
  0x74   : > { %p9829_p12 = pneg %p9828_p11  ;;  %p9835_p1 = por %p9834_p5, %p9833_p2 }
  0x76   : > { %p9836_p7 = pnand %p9835_p1, %p9829_p12 }
  0x78   : > { %9839 = shalt.err (!%p9836_p7)
}
  0x79   : > { %s9840_s24 = scalar_lea.vmem %s10653_s26, 40000  ;;  %s10385_s22 = smov [#allocation26]  }
  0x7a   : > { %p9841_p3 = scmp.ne.s32.totalorder %s10653_s26, %s9840_s24  ;;  %s9845_s0 = sshll.u32 %s10385_s22, 4  ;;  %s9846_s0 = int_to_ptr.vmem [resolvable:$false] %s9845_s0 }
  0x7b   : > { %s9847_s11 = scalar_lea.vmem %s9846_s0, 80000  ;;  %p9848_p6 = scmp.lt.s32.totalorder %s10653_s26, %s9846_s0 }
  0x7c   : > { %p9843_p11 = pnand %p9841_p3, %p10661_p10  ;;  %p9849_p8 = scmp.lt.s32.totalorder %s9847_s11, %s9840_s24 }
  0x7e   : > { %p9844_p4 = pneg %p9843_p11  ;;  %p9850_p13 = por %p9849_p8, %p9848_p6 }
  0x80   : > { %p9851_p0 = pnand %p9850_p13, %p9844_p4 }
  0x82   : > { %9854 = shalt.err (!%p9851_p0)
}
  0x83   : > { %s10386_s18 = smov 320   ;;  %s10387_s19 = smov 20  }
  0x84   : > { %8913 = dma.hbm_to_vmem [thread:$0]  (!%p10644_p9), %s10651_s14, 40000, %s10653_s26, %s10655_s17, %s10386_s18, %s10386_s18, %s10387_s19  }
  0x85   : > { %s10388_s27 = smov [#allocation8]   ;;  %s10389_s22 = smov [#allocation9]  }
  0x86   : > { %s520_s15 = sshll.u32 %s10388_s27, 4  ;;  %s531_s29 = sshll.u32 %s10389_s22, 4  ;;  %s521_s15 = int_to_ptr.vmem [resolvable:$true] %s520_s15  ;;  %s532_s29 = int_to_ptr.vmem [resolvable:$true] %s531_s29 }
  0x87   : > { %s12304_s24 = sld [smem:[#allocation52_spill]]  ;;  %p12305_p4 = scmp.ne.s32.totalorder %s12295_s23, 0 }
  0x8d   : > { %s9855_s11 = scalar_lea.hbm %s12304_s24, 16 }
  0x8e   : > { %p9856_p1 = scmp.ne.s32.totalorder %s12304_s24, %s9855_s11  ;;  %p9862_p7 = scmp.lt.u32.totalorder %s9855_s11, %s12304_s24 }
  0x90   : > { %p9858_p6 = pnand %p9856_p1, %p12305_p4 }
  0x92   : > { %p9859_p8 = pneg %p9858_p6 }
  0x94   : > { %p9864_p12 = pnand %p9862_p7, %p9859_p8 }
  0x96   : > { %9867 = shalt.err (!%p9864_p12)
}
  0x97   : > { %s9868_s26 = scalar_lea.vmem %s521_s15, 16  ;;  %s9875_s20 = scalar_lea.vmem %s521_s15, 32 }
  0x98   : > { %p9869_p2 = scmp.ne.s32.totalorder %s521_s15, %s9868_s26  ;;  %p9876_p11 = scmp.lt.s32.totalorder %s521_s15, %s521_s15 }
  0x99   : > { %p9877_p13 = scmp.lt.s32.totalorder %s9875_s20, %s9868_s26 }
  0x9a   : > { %p9871_p5 = pnand %p9869_p2, %p12305_p4 }
  0x9b   : > { %p9878_p0 = por %p9877_p13, %p9876_p11 }
  0x9c   : > { %p9872_p3 = pneg %p9871_p5 }
  0x9e   : > { %p9879_p9 = pnand %p9878_p0, %p9872_p3 }
  0xa0   : > { %9882 = shalt.err (!%p9879_p9)
}
  0xa1   : > { %p12306_p1 = scmp.ne.s32.totalorder %s12293_s3, 0  ;;  %s12307_s4 = sld [smem:[#allocation53_spill]] }
  0xa3   : > { %8873 = dma.hbm_to_vmem [thread:$0]  (!%p12306_p1), %s12304_s24, 16, %s521_s15, [#allocation7]  }
  0xa7   : > { %s9883_s14 = scalar_lea.hbm %s12307_s4, 128 }
  0xa8   : > { %p9884_p6 = scmp.ne.s32.totalorder %s12307_s4, %s9883_s14  ;;  %p9890_p9 = scmp.lt.u32.totalorder %s9883_s14, %s12307_s4 }
  0xaa   : > { %p9886_p8 = pnand %p9884_p6, %p12305_p4 }
  0xac   : > { %p9887_p7 = pneg %p9886_p8 }
  0xae   : > { %p9892_p12 = pnand %p9890_p9, %p9887_p7 }
  0xb0   : > { %9895 = shalt.err (!%p9892_p12)
}
  0xb1   : > { %s9896_s0 = scalar_lea.vmem %s532_s29, 128  ;;  %p9904_p11 = scmp.lt.s32.totalorder %s532_s29, %s532_s29 }
  0xb2   : > { %p9897_p2 = scmp.ne.s32.totalorder %s532_s29, %s9896_s0  ;;  %p9905_p13 = scmp.lt.s32.totalorder %s9896_s0, %s9896_s0 }
  0xb4   : > { %p9899_p5 = pnand %p9897_p2, %p12305_p4  ;;  %p9906_p0 = por %p9905_p13, %p9904_p11 }
  0xb6   : > { %p9900_p3 = pneg %p9899_p5 }
  0xb8   : > { %p9907_p10 = pnand %p9906_p0, %p9900_p3 }
  0xba   : > { %9910 = shalt.err (!%p9907_p10)
}
  0xbb   : > { %8876 = dma.hbm_to_vmem [thread:$0]  (!%p12306_p1), %s12307_s4, 128, %s532_s29, [#allocation10]  }
  0xbc   : > { %s10390_s26 = smov [#allocation12]   ;;  %s10391_s13 = smov [#allocation15]  }
  0xbd   : > { %s555_s20 = sshll.u32 %s10390_s26, 4  ;;  %s579_s1 = sshll.u32 %s10391_s13, 4  ;;  %s556_s20 = int_to_ptr.vmem [resolvable:$true] %s555_s20  ;;  %s580_s1 = int_to_ptr.vmem [resolvable:$true] %s579_s1 }
  0xbe   : > { %s12308_s6 = sld [smem:[#allocation55_spill]] }
  0xc4   : > { %s9911_s14 = scalar_lea.hbm %s12308_s6, 112 }
  0xc5   : > { %p9912_p10 = scmp.ne.s32.totalorder %s12308_s6, %s9911_s14  ;;  %p9918_p7 = scmp.lt.u32.totalorder %s9911_s14, %s12308_s6 }
  0xc7   : > { %p9914_p6 = pnand %p9912_p10, %p12305_p4 }
  0xc9   : > { %p9915_p8 = pneg %p9914_p6 }
  0xcb   : > { %p9920_p9 = pnand %p9918_p7, %p9915_p8 }
  0xcd   : > { %9923 = shalt.err (!%p9920_p9)
}
  0xce   : > { %s9924_s29 = scalar_lea.vmem %s556_s20, 112  ;;  %s9931_s0 = scalar_lea.vmem %s556_s20, 128 }
  0xcf   : > { %p9925_p12 = scmp.ne.s32.totalorder %s556_s20, %s9924_s29  ;;  %p9932_p3 = scmp.lt.s32.totalorder %s556_s20, %s556_s20 }
  0xd0   : > { %p9933_p11 = scmp.lt.s32.totalorder %s9931_s0, %s9924_s29 }
  0xd1   : > { %p9927_p2 = pnand %p9925_p12, %p12305_p4 }
  0xd2   : > { %p9934_p13 = por %p9933_p11, %p9932_p3 }
  0xd3   : > { %p9928_p5 = pneg %p9927_p2 }
  0xd5   : > { %p9935_p0 = pnand %p9934_p13, %p9928_p5 }
  0xd7   : > { %9938 = shalt.err (!%p9935_p0)
}
  0xd8   : > { %8882 = dma.hbm_to_vmem [thread:$0]  (!%p12306_p1), %s12308_s6, 112, %s556_s20, [#allocation13]  }
  0xd9   : > { %s12309_s8 = sld [smem:[#allocation57_spill]] }
  0xdf   : > { %s9939_s30 = scalar_lea.hbm %s12309_s8, 112 }
  0xe0   : > { %p9940_p10 = scmp.ne.s32.totalorder %s12309_s8, %s9939_s30  ;;  %p9946_p7 = scmp.lt.u32.totalorder %s9939_s30, %s12309_s8 }
  0xe2   : > { %p9942_p6 = pnand %p9940_p10, %p12305_p4 }
  0xe4   : > { %p9943_p8 = pneg %p9942_p6 }
  0xe6   : > { %p9948_p9 = pnand %p9946_p7, %p9943_p8 }
  0xe8   : > { %9951 = shalt.err (!%p9948_p9)
}
  0xe9   : > { %s9952_s27 = scalar_lea.vmem %s580_s1, 112  ;;  %s9959_s20 = scalar_lea.vmem %s580_s1, 128 }
  0xea   : > { %p9953_p12 = scmp.ne.s32.totalorder %s580_s1, %s9952_s27  ;;  %p9960_p3 = scmp.lt.s32.totalorder %s580_s1, %s580_s1 }
  0xeb   : > { %p9961_p11 = scmp.lt.s32.totalorder %s9959_s20, %s9952_s27 }
  0xec   : > { %p9955_p2 = pnand %p9953_p12, %p12305_p4 }
  0xed   : > { %p9962_p13 = por %p9961_p11, %p9960_p3 }
  0xee   : > { %p9956_p5 = pneg %p9955_p2 }
  0xf0   : > { %p9963_p0 = pnand %p9962_p13, %p9956_p5 }
  0xf2   : > { %9966 = shalt.err (!%p9963_p0)
}
  0xf3   : > { %8888 = dma.hbm_to_vmem [thread:$0]  (!%p12306_p1), %s12309_s8, 112, %s580_s1, [#allocation16]  }
  0xf4   : > { %s10392_s0 = smov [#allocation18]   ;;  %s10393_s11 = smov [#allocation21]  }
  0xf5   : > { %s603_s15 = sshll.u32 %s10392_s0, 4  ;;  %s627_s26 = sshll.u32 %s10393_s11, 4  ;;  %s604_s15 = int_to_ptr.vmem [resolvable:$true] %s603_s15  ;;  %s628_s26 = int_to_ptr.vmem [resolvable:$true] %s627_s26 }
  0xf6   : > { %s12310_s10 = sld [smem:[#allocation59_spill]] }
  0xfc   : > { %s9967_s2 = scalar_lea.hbm %s12310_s10, 16 }
  0xfd   : > { %p9968_p10 = scmp.ne.s32.totalorder %s12310_s10, %s9967_s2  ;;  %p9974_p7 = scmp.lt.u32.totalorder %s9967_s2, %s12310_s10 }
  0xff   : > { %p9970_p6 = pnand %p9968_p10, %p12305_p4 }
 0x101   : > { %p9971_p8 = pneg %p9970_p6 }
 0x103   : > { %p9976_p9 = pnand %p9974_p7, %p9971_p8 }
 0x105   : > { %9979 = shalt.err (!%p9976_p9)
}
 0x106   : > { %s9980_s1 = scalar_lea.vmem %s604_s15, 16  ;;  %s9987_s20 = scalar_lea.vmem %s604_s15, 32 }
 0x107   : > { %p9981_p12 = scmp.ne.s32.totalorder %s604_s15, %s9980_s1  ;;  %p9988_p3 = scmp.lt.s32.totalorder %s604_s15, %s604_s15 }
 0x108   : > { %p9989_p11 = scmp.lt.s32.totalorder %s9987_s20, %s9980_s1 }
 0x109   : > { %p9983_p2 = pnand %p9981_p12, %p12305_p4 }
 0x10a   : > { %p9990_p13 = por %p9989_p11, %p9988_p3 }
 0x10b   : > { %p9984_p5 = pneg %p9983_p2 }
 0x10d   : > { %p9991_p0 = pnand %p9990_p13, %p9984_p5 }
 0x10f   : > { %9994 = shalt.err (!%p9991_p0)
}
 0x110   : > { %8894 = dma.hbm_to_vmem [thread:$0]  (!%p12306_p1), %s12310_s10, 16, %s604_s15, [#allocation19]  }
 0x111   : > { %s8788_s0 = smul.u32 5, %s10640_s25  ;;  %s9995_s30 = scalar_lea.hbm %s12221_s12, 128 }
 0x112   : > { %p9996_p10 = scmp.ne.s32.totalorder %s12221_s12, %s9995_s30  ;;  %p10002_p7 = scmp.lt.u32.totalorder %s9995_s30, %s12221_s12 }
 0x114   : > { %p9998_p6 = pnand %p9996_p10, %p12305_p4 }
 0x116   : > { %p9999_p8 = pneg %p9998_p6 }
 0x118   : > { %p10004_p9 = pnand %p10002_p7, %p9999_p8 }
 0x11a   : > { %10007 = shalt.err (!%p10004_p9)
}
 0x11b   : > { %s10008_s15 = scalar_lea.vmem %s628_s26, 128  ;;  %p10016_p3 = scmp.lt.s32.totalorder %s628_s26, %s628_s26 }
 0x11c   : > { %p10009_p12 = scmp.ne.s32.totalorder %s628_s26, %s10008_s15  ;;  %p10017_p11 = scmp.lt.s32.totalorder %s10008_s15, %s10008_s15 }
 0x11e   : > { %p10011_p2 = pnand %p10009_p12, %p12305_p4  ;;  %p10018_p13 = por %p10017_p11, %p10016_p3 }
 0x120   : > { %p10012_p5 = pneg %p10011_p2 }
 0x122   : > { %p10019_p0 = pnand %p10018_p13, %p10012_p5 }
 0x124   : > { %10022 = shalt.err (!%p10019_p0)
}
 0x125   : > { %8900 = dma.hbm_to_vmem [thread:$0]  (!%p12306_p1), %s12221_s12, 128, %s628_s26, [#allocation22]  }
 0x126   : > { %s8403_s20 = smul.u32 80, %s10379_s21  ;;  %s698_s22 = scalar_lea.vmem [#allocation27], %s8788_s0 }
 0x127   : > { %s706_s29 = sshll.u32 %s698_s22, 4  ;;  %p12311_p6 = scmp.ne.s32.totalorder %s12303_s28, 0  ;;  %s707_s29 = int_to_ptr.vmem [resolvable:$true] %s706_s29 }
 0x128   : > { %s704_s30 = scalar_lea.hbm %s12225_s16, %s8403_s20  ;;  %s10028_s19 = scalar_lea.hbm %s12225_s16, 320 }
 0x129   : > { %s10023_s2 = scalar_lea.hbm %s704_s30, 80  ;;  %p10029_p9 = scmp.lt.u32.totalorder %s704_s30, %s12225_s16 }
 0x12a   : > { %p10024_p10 = scmp.ne.s32.totalorder %s704_s30, %s10023_s2  ;;  %p10030_p12 = scmp.lt.u32.totalorder %s10028_s19, %s10023_s2 }
 0x12b   : > { %p10032_p5 = scmp.lt.u32.totalorder %s10023_s2, %s704_s30 }
 0x12c   : > { %p10026_p8 = pnand %p10024_p10, %p12311_p6  ;;  %p10031_p2 = por %p10030_p12, %p10029_p9 }
 0x12e   : > { %p10027_p7 = pneg %p10026_p8  ;;  %p10033_p3 = por %p10032_p5, %p10031_p2 }
 0x130   : > { %p10034_p11 = pnand %p10033_p3, %p10027_p7 }
 0x132   : > { %10037 = shalt.err (!%p10034_p11)
}
 0x133   : > { %s10038_s26 = scalar_lea.vmem %s707_s29, 80  ;;  %s10394_s0 = smov [#allocation27]  }
 0x134   : > { %p10039_p13 = scmp.ne.s32.totalorder %s707_s29, %s10038_s26  ;;  %s10043_s1 = sshll.u32 %s10394_s0, 4  ;;  %s10044_s1 = int_to_ptr.vmem [resolvable:$false] %s10043_s1 }
 0x135   : > { %s10045_s20 = scalar_lea.vmem %s10044_s1, 160  ;;  %p10046_p8 = scmp.lt.s32.totalorder %s707_s29, %s10044_s1 }
 0x136   : > { %p10041_p0 = pnand %p10039_p13, %p12311_p6  ;;  %p10047_p1 = scmp.lt.s32.totalorder %s10045_s20, %s10038_s26 }
 0x138   : > { %p10042_p10 = pneg %p10041_p0  ;;  %p10048_p4 = por %p10047_p1, %p10046_p8 }
 0x13a   : > { %p10049_p9 = pnand %p10048_p4, %p10042_p10 }
 0x13c   : > { %10052 = shalt.err (!%p10049_p9)
}
 0x13d   : > { %p12312_p12 = scmp.ne.s32.totalorder %s12301_s9, 0  ;;  %s10395_s22 = smov [#allocation11]  }
 0x13e   : > { %s541_s11 = sshll.u32 %s10395_s22, 4  ;;  %s12313_s5 = sld [smem:[#allocation54_spill]]  ;;  %s542_s11 = int_to_ptr.vmem [resolvable:$true] %s541_s11 }
 0x13f   : > { %8916 = dma.hbm_to_vmem [thread:$0]  (!%p12312_p12), %s704_s30, 80, %s707_s29, %s10655_s17  }
 0x140   : > { %p12314_p2 = scmp.ne.s32.totalorder %s12295_s23, 0 }
 0x144   : > { %s10053_s14 = scalar_lea.hbm %s12313_s5, 1792 }
 0x145   : > { %p10054_p7 = scmp.ne.s32.totalorder %s12313_s5, %s10053_s14  ;;  %p10060_p5 = scmp.lt.u32.totalorder %s10053_s14, %s12313_s5 }
 0x147   : > { %p10056_p1 = pnand %p10054_p7, %p12314_p2 }
 0x149   : > { %p10057_p4 = pneg %p10056_p1 }
 0x14b   : > { %p10062_p3 = pnand %p10060_p5, %p10057_p4 }
 0x14d   : > { %10065 = shalt.err (!%p10062_p3)
}
 0x14e   : > { %s10066_s29 = scalar_lea.vmem %s542_s11, 1792  ;;  %p10074_p10 = scmp.lt.s32.totalorder %s542_s11, %s542_s11 }
 0x14f   : > { %p10067_p11 = scmp.ne.s32.totalorder %s542_s11, %s10066_s29  ;;  %p10075_p8 = scmp.lt.s32.totalorder %s10066_s29, %s10066_s29 }
 0x151   : > { %p10069_p13 = pnand %p10067_p11, %p12314_p2  ;;  %p10076_p9 = por %p10075_p8, %p10074_p10 }
 0x153   : > { %p10070_p0 = pneg %p10069_p13 }
 0x155   : > { %p10077_p12 = pnand %p10076_p9, %p10070_p0 }
 0x157   : > { %10080 = shalt.err (!%p10077_p12)
}
 0x158   : > { %s10396_s30 = smov 448   ;;  %s10397_s26 = smov 28  }
 0x159   : > { %p12315_p7 = scmp.ne.s32.totalorder %s12293_s3, 0  ;;  %s10398_s20 = smov [#allocation14]  }
 0x15a   : > { %s565_s22 = sshll.u32 %s10398_s20, 4  ;;  %s10399_s13 = smov [#allocation17]   ;;  %s566_s22 = int_to_ptr.vmem [resolvable:$true] %s565_s22 }
 0x15b   : > { %8879 = dma.hbm_to_vmem [thread:$0]  (!%p12315_p7), %s12313_s5, 1792, %s542_s11, [#allocation10], %s10396_s30, %s10396_s30, %s10397_s26  }
 0x15c   : > { %s589_s2 = sshll.u32 %s10399_s13, 4  ;;  %s12316_s7 = sld [smem:[#allocation56_spill]]  ;;  %s10829_s2 = int_to_ptr.vmem [resolvable:$true] %s589_s2 }
 0x162   : > { %s10081_s19 = scalar_lea.hbm %s12316_s7, 3584 }
 0x163   : > { %p10082_p12 = scmp.ne.s32.totalorder %s12316_s7, %s10081_s19  ;;  %p10088_p5 = scmp.lt.u32.totalorder %s10081_s19, %s12316_s7 }
 0x165   : > { %p10084_p1 = pnand %p10082_p12, %p12314_p2 }
 0x167   : > { %p10085_p4 = pneg %p10084_p1 }
 0x169   : > { %p10090_p3 = pnand %p10088_p5, %p10085_p4 }
 0x16b   : > { %10093 = shalt.err (!%p10090_p3)
}
 0x16c   : > { %s10094_s0 = scalar_lea.vmem %s566_s22, 3584  ;;  %p10102_p10 = scmp.lt.s32.totalorder %s566_s22, %s566_s22 }
 0x16d   : > { %p10095_p11 = scmp.ne.s32.totalorder %s566_s22, %s10094_s0  ;;  %p10103_p8 = scmp.lt.s32.totalorder %s10094_s0, %s10094_s0 }
 0x16f   : > { %p10097_p13 = pnand %p10095_p11, %p12314_p2  ;;  %p10104_p9 = por %p10103_p8, %p10102_p10 }
 0x171   : > { %p10098_p0 = pneg %p10097_p13 }
 0x173   : > { %p10105_p6 = pnand %p10104_p9, %p10098_p0 }
 0x175   : > { %10108 = shalt.err (!%p10105_p6)
}
 0x176   : > { %8885 = dma.hbm_to_vmem [thread:$0]  (!%p12315_p7), %s12316_s7, 3584, %s566_s22, [#allocation13], %s10396_s30, %s10396_s30, %s10397_s26  }
 0x177   : > { %s12317_s18 = sld [smem:[#allocation58_spill]] }
 0x17d   : > { %s10109_s19 = scalar_lea.hbm %s12317_s18, 6400 }
 0x17e   : > { %p10110_p12 = scmp.ne.s32.totalorder %s12317_s18, %s10109_s19  ;;  %p10116_p6 = scmp.lt.u32.totalorder %s10109_s19, %s12317_s18 }
 0x180   : > { %p10112_p1 = pnand %p10110_p12, %p12314_p2 }
 0x182   : > { %p10113_p4 = pneg %p10112_p1 }
 0x184   : > { %p10118_p5 = pnand %p10116_p6, %p10113_p4 }
 0x186   : > { %10121 = shalt.err (!%p10118_p5)
}
 0x187   : > { %s10122_s30 = scalar_lea.vmem %s10829_s2, 6400  ;;  %p10130_p0 = scmp.lt.s32.totalorder %s10829_s2, %s10829_s2 }
 0x188   : > { %p10123_p3 = scmp.ne.s32.totalorder %s10829_s2, %s10122_s30  ;;  %p10131_p10 = scmp.lt.s32.totalorder %s10122_s30, %s10122_s30 }
 0x18a   : > { %p10125_p11 = pnand %p10123_p3, %p12314_p2  ;;  %p10132_p8 = por %p10131_p10, %p10130_p0 }
 0x18c   : > { %p10126_p13 = pneg %p10125_p11 }
 0x18e   : > { %p10133_p9 = pnand %p10132_p8, %p10126_p13 }
 0x190   : > { %10136 = shalt.err (!%p10133_p9)
}
 0x191   : > { %s12318_s26 = smov 4   ;;  %s12319_s22 = smov 64  }
 0x192   : > { %8891 = dma.hbm_to_vmem [thread:$0]  (!%p12315_p7), %s12317_s18, 6400, %s10829_s2, [#allocation16], %s12319_s22, %s12319_s22, %s12318_s26  }
 0x193   : > { %s10400_s20 = smov [#allocation20]   ;;  %s12320_s15 = sld [smem:[#allocation60_spill]] }
 0x194   : > { %s613_s13 = sshll.u32 %s10400_s20, 4  ;;  %s614_s13 = int_to_ptr.vmem [resolvable:$true] %s613_s13 }
 0x199   : > { %s10137_s27 = scalar_lea.hbm %s12320_s15, 2048 }
 0x19a   : > { %p10138_p12 = scmp.ne.s32.totalorder %s12320_s15, %s10137_s27  ;;  %p10144_p6 = scmp.lt.u32.totalorder %s10137_s27, %s12320_s15 }
 0x19c   : > { %p10140_p1 = pnand %p10138_p12, %p12314_p2 }
 0x19e   : > { %p10141_p4 = pneg %p10140_p1 }
 0x1a0   : > { %p10146_p5 = pnand %p10144_p6, %p10141_p4 }
 0x1a2   : > { %10149 = shalt.err (!%p10146_p5)
}
 0x1a3   : > { %s10150_s2 = scalar_lea.vmem %s614_s13, 2048  ;;  %p10158_p0 = scmp.lt.s32.totalorder %s614_s13, %s614_s13 }
 0x1a4   : > { %p10151_p3 = scmp.ne.s32.totalorder %s614_s13, %s10150_s2  ;;  %p10159_p10 = scmp.lt.s32.totalorder %s10150_s2, %s10150_s2 }
 0x1a6   : > { %p10153_p11 = pnand %p10151_p3, %p12314_p2  ;;  %p10160_p8 = por %p10159_p10, %p10158_p0 }
 0x1a8   : > { %p10154_p13 = pneg %p10153_p11 }
 0x1aa   : > { %p10161_p9 = pnand %p10160_p8, %p10154_p13 }
 0x1ac   : > { %10164 = shalt.err (!%p10161_p9)
}
 0x1ad   : > { %s10401_s0 = smov 512   ;;  %s10402_s1 = smov 32  }
 0x1ae   : > { %8897 = dma.hbm_to_vmem [thread:$0]  (!%p12315_p7), %s12320_s15, 2048, %s614_s13, [#allocation19], %s10401_s0, %s10401_s0, %s10402_s1  }
 0x1af   : > { %s10403_s14 = smov [#allocation23]   ;;  %s10404_s27 = smov [#allocation24]  }
 0x1b0   : > { %s637_s19 = sshll.u32 %s10403_s14, 4  ;;  %s651_s29 = sshll.u32 %s10404_s27, 4  ;;  %s638_s19 = int_to_ptr.vmem [resolvable:$true] %s637_s19  ;;  %s652_s29 = int_to_ptr.vmem [resolvable:$true] %s651_s29 }
 0x1b1   : > { %s12321_s2 = sld [smem:[#allocation61_spill]] }
 0x1b7   : > { %s10165_s5 = scalar_lea.hbm %s12321_s2, 4096 }
 0x1b8   : > { %p10166_p12 = scmp.ne.s32.totalorder %s12321_s2, %s10165_s5  ;;  %p10172_p6 = scmp.lt.u32.totalorder %s10165_s5, %s12321_s2 }
 0x1ba   : > { %p10168_p1 = pnand %p10166_p12, %p12314_p2 }
 0x1bc   : > { %p10169_p4 = pneg %p10168_p1 }
 0x1be   : > { %p10174_p5 = pnand %p10172_p6, %p10169_p4 }
 0x1c0   : > { %10177 = shalt.err (!%p10174_p5)
}
 0x1c1   : > { %s10178_s13 = scalar_lea.vmem %s638_s19, 4096  ;;  %p10186_p0 = scmp.lt.s32.totalorder %s638_s19, %s638_s19 }
 0x1c2   : > { %p10179_p3 = scmp.ne.s32.totalorder %s638_s19, %s10178_s13  ;;  %p10187_p10 = scmp.lt.s32.totalorder %s10178_s13, %s10178_s13 }
 0x1c4   : > { %p10181_p11 = pnand %p10179_p3, %p12314_p2  ;;  %p10188_p8 = por %p10187_p10, %p10186_p0 }
 0x1c6   : > { %p10182_p13 = pneg %p10181_p11 }
 0x1c8   : > { %p10189_p9 = pnand %p10188_p8, %p10182_p13 }
 0x1ca   : > { %10192 = shalt.err (!%p10189_p9)
}
 0x1cb   : > { %8903 = dma.hbm_to_vmem [thread:$0]  (!%p12315_p7), %s12321_s2, 4096, %s638_s19, [#allocation22], %s10401_s0, %s10401_s0, %s10402_s1  }
 0x1cc   : > { %s12322_s10 = sld [smem:[#allocation62_spill]] }
 0x1d2   : > { %s10193_s4 = scalar_lea.hbm %s12322_s10, 128 }
 0x1d3   : > { %p10194_p12 = scmp.ne.s32.totalorder %s12322_s10, %s10193_s4  ;;  %p10200_p6 = scmp.lt.u32.totalorder %s10193_s4, %s12322_s10 }
 0x1d5   : > { %p10196_p1 = pnand %p10194_p12, %p12314_p2 }
 0x1d7   : > { %p10197_p4 = pneg %p10196_p1 }
 0x1d9   : > { %p10202_p5 = pnand %p10200_p6, %p10197_p4 }
 0x1db   : > { %10205 = shalt.err (!%p10202_p5)
}
 0x1dc   : > { %s10206_s30 = scalar_lea.vmem %s652_s29, 128  ;;  %p10214_p0 = scmp.lt.s32.totalorder %s652_s29, %s652_s29 }
 0x1dd   : > { %p10207_p3 = scmp.ne.s32.totalorder %s652_s29, %s10206_s30  ;;  %p10215_p10 = scmp.lt.s32.totalorder %s10206_s30, %s10206_s30 }
 0x1df   : > { %p10209_p11 = pnand %p10207_p3, %p12314_p2  ;;  %p10216_p8 = por %p10215_p10, %p10214_p0 }
 0x1e1   : > { %p10210_p13 = pneg %p10209_p11 }
 0x1e3   : > { %p10217_p9 = pnand %p10216_p8, %p10210_p13 }
 0x1e5   : > { %10220 = shalt.err (!%p10217_p9)
}
 0x1e6   : > { %8906 = dma.hbm_to_vmem [thread:$0]  (!%p12315_p7), %s12322_s10, 128, %s652_s29, [#allocation25]  }
 0x1e7   : > { %s10405_s19 = smov [#allocation29]   ;;  %s8789_s6 = smul.u32 320, %s10640_s25 }
 0x1e8   : > { %s662_s13 = sshll.u32 %s10405_s19, 4  ;;  %s8790_s7 = smul.u32 5120, %s10379_s21  ;;  %s663_s13 = int_to_ptr.vmem [resolvable:$true] %s662_s13 }
 0x1e9   : > { %s12323_s4 = sld [smem:[#allocation65_spill]] }
 0x1ef   : > { %s10221_s20 = scalar_lea.hbm %s12323_s4, 16 }
 0x1f0   : > { %p10222_p12 = scmp.ne.s32.totalorder %s12323_s4, %s10221_s20  ;;  %p10228_p6 = scmp.lt.u32.totalorder %s10221_s20, %s12323_s4 }
 0x1f2   : > { %p10224_p1 = pnand %p10222_p12, %p12314_p2 }
 0x1f4   : > { %p10225_p4 = pneg %p10224_p1 }
 0x1f6   : > { %p10230_p5 = pnand %p10228_p6, %p10225_p4 }
 0x1f8   : > { %10233 = shalt.err (!%p10230_p5)
}
 0x1f9   : > { %s10234_s25 = scalar_lea.vmem %s663_s13, 16  ;;  %s10241_s21 = scalar_lea.vmem %s663_s13, 32 }
 0x1fa   : > { %p10235_p3 = scmp.ne.s32.totalorder %s663_s13, %s10234_s25  ;;  %p10242_p0 = scmp.lt.s32.totalorder %s663_s13, %s663_s13 }
 0x1fb   : > { %p10243_p10 = scmp.lt.s32.totalorder %s10241_s21, %s10234_s25 }
 0x1fc   : > { %p10237_p11 = pnand %p10235_p3, %p12314_p2 }
 0x1fd   : > { %p10244_p8 = por %p10243_p10, %p10242_p0 }
 0x1fe   : > { %p10238_p13 = pneg %p10237_p11 }
 0x200   : > { %p10245_p9 = pnand %p10244_p8, %p10238_p13 }
 0x202   : > { %10248 = shalt.err (!%p10245_p9)
}
 0x203   : > { %8909 = dma.hbm_to_vmem [thread:$0]  (!%p12315_p7), %s12323_s4, 16, %s663_s13, [#allocation7]  }
 0x204   : > { %s12324_s5 = sld [smem:[#allocation64_spill]]  ;;  %s717_s23 = scalar_lea.vmem [#allocation28], %s8789_s6 }
 0x205   : > { %s724_s20 = sshll.u32 %s717_s23, 4  ;;  %p12325_p12 = scmp.ne.s32.totalorder %s12303_s28, 0  ;;  %s10954_s20 = int_to_ptr.vmem [resolvable:$true] %s724_s20 }
 0x20a   : > { %s10952_s8 = scalar_lea.hbm %s12324_s5, %s8790_s7  ;;  %s10254_s27 = scalar_lea.hbm %s12324_s5, 20480 }
 0x20b   : > { %s10249_s14 = scalar_lea.hbm %s10952_s8, 5120  ;;  %p10255_p7 = scmp.lt.u32.totalorder %s10952_s8, %s12324_s5 }
 0x20c   : > { %p10250_p2 = scmp.ne.s32.totalorder %s10952_s8, %s10249_s14  ;;  %p10256_p6 = scmp.lt.u32.totalorder %s10254_s27, %s10249_s14 }
 0x20d   : > { %p10258_p3 = scmp.lt.u32.totalorder %s10249_s14, %s10952_s8 }
 0x20e   : > { %p10252_p1 = pnand %p10250_p2, %p12325_p12  ;;  %p10257_p5 = por %p10256_p6, %p10255_p7 }
 0x210   : > { %p10253_p4 = pneg %p10252_p1  ;;  %p10259_p11 = por %p10258_p3, %p10257_p5 }
 0x212   : > { %p10260_p13 = pnand %p10259_p11, %p10253_p4 }
 0x214   : > { %10263 = shalt.err (!%p10260_p13)
}
 0x215   : > { %s10264_s6 = scalar_lea.vmem %s10954_s20, 5120  ;;  %s10406_s30 = smov [#allocation28]  }
 0x216   : > { %p10265_p0 = scmp.ne.s32.totalorder %s10954_s20, %s10264_s6  ;;  %s10269_s25 = sshll.u32 %s10406_s30, 4  ;;  %s10270_s25 = int_to_ptr.vmem [resolvable:$false] %s10269_s25 }
 0x217   : > { %s10271_s21 = scalar_lea.vmem %s10270_s25, 10240  ;;  %p10272_p9 = scmp.lt.s32.totalorder %s10954_s20, %s10270_s25 }
 0x218   : > { %p10267_p10 = pnand %p10265_p0, %p12325_p12  ;;  %p10273_p2 = scmp.lt.s32.totalorder %s10271_s21, %s10264_s6 }
 0x21a   : > { %p10268_p8 = pneg %p10267_p10  ;;  %p10274_p1 = por %p10273_p2, %p10272_p9 }
 0x21c   : > { %p10275_p7 = pnand %p10274_p1, %p10268_p8 }
 0x21e   : > { %10278 = shalt.err (!%p10275_p7)
}
 0x21f   : > { %p12326_p4 = scmp.ne.s32.totalorder %s12301_s9, 0  ;;  %s12327_s28 = sld [smem:[#allocation45_spill]] }
 0x221   : > { %8919 = dma.hbm_to_vmem [thread:$0]  (!%p12326_p4), %s10952_s8, 5120, %s10954_s20, %s10655_s17, %s12319_s22, %s12319_s22, %s12318_s26  }
 0x225   : > { %p12328_p12 = scmp.ne.s32.totalorder %s12327_s28, 0 }
 0x226   : > { %s12329_s29 = sld [smem:[#allocation44_spill]] (!%p12328_p12) }
 0x227   : > { %736 = sbr.rel (%p12328_p12) target bundleno = 8651 (0x21cb), region = 96 }
 0x22c   : > { %p12330_p6 = scmp.eq.s32.totalorder (!%p12328_p12), %s12329_s29, 0 }
 0x22e   : > { %10322 = dma.done.wait (%p12330_p6), [#allocation4], 256   ;;  %p12331_p5 = pmov %p12330_p6 }
 0x230   : > { %10324 = vsyncadd (%p12331_p5), [#allocation4], 4294967040  ;;  %p12332_p3 = pmov %p12331_p5 }
 0x232   : > { %10326 = dma.done.wait (%p12332_p3), [#allocation7], 272   ;;  %p12333_p11 = pmov %p12332_p3 }
 0x233   : > { %p12334_p13 = pmov %p12332_p3 }
 0x234   : > { %10328 = vsyncadd (%p12333_p11), [#allocation7], 4294967024 }
 0x235   : > { %10330 = dma.done.wait (%p12334_p13), [#allocation10], 1920   ;;  %p12335_p0 = pmov %p12332_p3 }
 0x237   : > { %10332 = vsyncadd (%p12335_p0), [#allocation10], 4294965376  ;;  %p12336_p10 = pmov %p12335_p0 }
 0x238   : > { %p12337_p8 = pmov %p12335_p0 }
 0x239   : > { %10334 = dma.done.wait (%p12336_p10), [#allocation13], 3696  }
 0x23a   : > { %10336 = vsyncadd (%p12337_p8), [#allocation13], 4294963600  ;;  %p12338_p9 = pmov %p12335_p0 }
 0x23b   : > { %p12339_p2 = pmov %p12335_p0 }
 0x23c   : > { %10338 = dma.done.wait (%p12338_p9), [#allocation16], 6512  }
 0x23d   : > { %10340 = vsyncadd (%p12339_p2), [#allocation16], 4294960784  ;;  %p12340_p1 = pmov %p12335_p0 }
 0x23e   : > { %p12341_p7 = pmov %p12335_p0 }
 0x23f   : > { %10342 = dma.done.wait (%p12340_p1), [#allocation19], 2064  }
 0x240   : > { %10344 = vsyncadd (%p12341_p7), [#allocation19], 4294965232  ;;  %p12342_p4 = pmov %p12335_p0 }
 0x241   : > { %p12343_p12 = pmov %p12335_p0 }
 0x242   : > { %10346 = dma.done.wait (%p12342_p4), [#allocation22], 4224  }
 0x243   : > { %10348 = vsyncadd (%p12343_p12), [#allocation22], 4294963072  ;;  %p12344_p6 = pmov %p12335_p0 }
 0x244   : > { %p12345_p5 = pmov %p12335_p0 }
 0x245   : > { %10350 = dma.done.wait (%p12344_p6), [#allocation25], 128  }
 0x246   : > { %10352 = vsyncadd (%p12345_p5), [#allocation25], 4294967168  ;;  %s12346_s17 = sld [smem:[#allocation42_spill]]  ;;  %s12347_s9 = sld [smem:[#allocation48_spill]] }
 0x247   : > { %s794_s26 = sand.u32 1, %s12329_s29  }
 0x248   : > { %s795_s1 = scalar_lea.sflag [#allocation4], %s794_s26 }
 0x24c   : > { %s796_s22 = sand.u32 1, %s12346_s17   ;;  %p12348_p3 = scmp.ne.s32.totalorder %s12347_s9, 0 }
 0x24d   : > { %s8791_s0 = smul.u32 2500, %s796_s22 }
 0x24f   : > { %s11017_s19 = scalar_lea.vmem [#allocation26], %s8791_s0 }
 0x250   : > { %10354 = dma.done.wait (%p12348_p3), %s795_s1, 45200  }
 0x251   : > { %10356 = vsyncadd (%p12348_p3), %s795_s1, 4294922096  ;;  %s8792_s8 = smul.u32 5, %s796_s22  ;;  %p12349_p11 = pmov %p12335_p0 }
 0x252   : > { %s8793_s23 = smul.u32 320, %s796_s22 }
 0x253   : > { %s11023_s20 = scalar_lea.vmem [#allocation27], %s8792_s8 }
 0x254   : > { %s11025_s14 = scalar_lea.vmem [#allocation28], %s8793_s23 }
 0x255   : > { %10358 = dma.done.wait (%p12349_p11), [#allocation7], 16   ;;  %p12350_p13 = pmov %p12335_p0 }
 0x256   : > { %p12351_p0 = scmp.ne.s32.totalorder %s12329_s29, 0 }
 0x257   : > { %10360 = vsyncadd (%p12350_p13), [#allocation7], 4294967280  ;;  %v9017_v0 = vld [vmem:[#allocation3] sm:$0xff] (!%p12351_p0)   ;;  %v10407_v1 = vmov (!%p12351_p0), 0.0   ;;  %v11035_v2 = vld [vmem:[#allocation6] sm:$0xff] (!%p12351_p0)   ;;  %vm937_vm0 = vcmask (!%p12351_p0), 261120  }
 0x258   : > { %885 = sbr.rel (%p12351_p0) target bundleno = 7729 (0x1e31), region = 172  ;;  %8646 = vmatprep.subr.bf16.mxu1 (!%p12351_p0), %v10407_v1  ;;  %4408 = vst [vmem:[#allocation30] sm:$0xff] (!%p12351_p0), %v10407_v1  ;;  %8634 = vmatprep.subr.bf16.mxu0 (!%p12351_p0), %v9017_v0  ;;  %v9019_v3 = vld [vmem:[#allocation3 + $0x8] sm:$0xff] (!%p12351_p0)   ;;  %v11038_v4 = vld [vmem:[#allocation6 + $0x8] sm:$0xff] (!%p12351_p0)   ;;  %s12352_s27 = sld [smem:[#allocation49_spill]] (!%p12351_p0)  ;;  %vm10408_vm1 = vmmov (!%p12351_p0), 0  }
 0x259   : > { %8635 = vmatpush3.bf16.msra.mxu0 (!%p12351_p0), %v9017_v0  ;;  %8647 = vmatpush3.bf16.msra.mxu1 (!%p12351_p0), %v11035_v2  ;;  %v10409_v7 = vmov (!%p12351_p0), 0   ;;  %v11065_v8 = vld [vmem:[#allocation8] ss:$0 sm:$0xff] (!%p12351_p0)  ;;  %s10410_s6 = smov (!%p12351_p0), 64   ;;  %s10411_s30 = smov (!%p12351_p0), 32   ;;  %vm2254_vm2 = vcmask (!%p12351_p0), 523264  }
 0x25a   : > { %8636 = vmatprep.subr.bf16.mxu0 (!%p12351_p0), %v9019_v3  ;;  %8648 = vmatprep.subr.bf16.mxu1 (!%p12351_p0), %v10407_v1 }
 0x25b   : > { %8650 = vmatprep.mubr.msk.bf16.mxu1 (!%p12351_p0), %vm10408_vm1, %v10407_v1 }
 0x25d   : > { %8637 = vmatpush3.bf16.msra.mxu0 (!%p12351_p0), %v9019_v3  ;;  %8649 = vmatpush3.bf16.msra.mxu1 (!%p12351_p0), %v11038_v4 }
 0x25e   : > { %v9021_v5 = vld [vmem:[%s12352_s27] sm:$0xff] (!%p12351_p0)   ;;  %v9022_v6 = vld [vmem:[%s12352_s27 + $0x8] sm:$0xff] (!%p12351_p0)   ;;  %8654 = vmatprep.subr.bf16.mxu1 (!%p12351_p0), %v10407_v1  ;;  %8662 = vmatprep.subr.bf16.mxu0 (!%p12351_p0), %v10407_v1  ;;  %v9023_v50 = vld [vmem:[%s12352_s27 + $0x10] sm:$0xff] (!%p12351_p0)  }
 0x25f   : > { %8638 = vmatprep.mubr.msk.bf16.mxu0 %vm937_vm0, %v9021_v5  ;;  %v9024_v51 = vld [vmem:[%s12352_s27 + $0x18] sm:$0xff]  }
 0x260   : > { %8639 = vmatmul.mubr.msk.bf16.vlgmr.msra.gmra.mrb[0].mxu0 %vm937_vm0, %v9022_v6  ;;  %8651 = vmatmul.mubr.bf16.vlgmr.msra.gmra.mrb[0].mxu1 %v10409_v7 }
 0x261   : > { %8655 = vmatpush3.bf16.msra.mxu1 %v11035_v2  ;;  %8658 = vmatprep.mubr.msk.bf16.mxu1 %vm10408_vm1, %v10407_v1 }
 0x262   : > { %8656 = vmatprep.subr.bf16.mxu1 %v10407_v1  ;;  %8663 = vmatpush3.bf16.msra.mxu0 %v11035_v2 }
 0x263   : > { %8664 = vmatprep.subr.bf16.mxu0 %v10407_v1  ;;  %8642 = vmatprep.mubr.msk.bf16.mxu0 %vm937_vm0, %v9023_v50 }
 0x265   : > { %8657 = vmatpush3.bf16.msra.mxu1 %v11038_v4 }
 0x266   : > { %8665 = vmatpush3.bf16.msra.mxu0 %v11038_v4  ;;  %8670 = vmatprep.subr.bf16.mxu1 %v10407_v1 }
 0x267   : > { %8678 = vmatprep.subr.bf16.mxu0 %v10407_v1 }
 0x268   : > { %8643 = vmatmul.mubr.msk.bf16.gmra.mrb[4].mxu0 %vm937_vm0, %v9024_v51 }
 0x269   : > { %8666 = vmatprep.mubr.msk.bf16.mxu0 %vm10408_vm1, %v10407_v1 }
 0x333   : > { %v11067_v9 = vpop.f32.mrb[0].mxu0  ;;  %v1068_v10 = vpop.f32.mrb[0].mxu1 }
 0x334   : > { %v984_v11 = vpop.f32.mrb[1].mxu0  ;;  %v8652_v12 = vpop.f32.mrb[1].mxu1  ;;  %v993_v61 = vadd.f32 %v11067_v9, %v11065_v8 }
 0x335   : > { %v985_v13 = vadd.f32 %v11065_v8, %v984_v11  ;;  %v11070_v14 = vpop.f32.mrb[2].mxu0  ;;  %v1071_v15 = vpop.f32.mrb[2].mxu1 }
 0x336   : > { %v987_v16 = vpop.f32.mrb[3].mxu0  ;;  %v8653_v17 = vpop.f32.mrb[3].mxu1 }
 0x337   : > { %v1074_v18 = vadd.f32 %v1068_v10, %v985_v13  ;;  %v988_v34 = vadd.f32 %v11065_v8, %v987_v16 }
 0x339   : > { %9135 = vtanh.f32 %v1074_v18  ;;  %v1075_v20 = vmul.f32 0.5, %v1074_v18 }
 0x33b   : > { %9137 = vtanh.f32 %v1075_v20  ;;  %v11098_v56 = vpop.f32.mrb[4].mxu0 }
 0x33c   : > { %v11100_v57 = vpop.f32.mrb[5].mxu0 }
 0x33d   : > { %v11102_v58 = vpop.f32.mrb[6].mxu0 }
 0x33e   : > { %v11104_v59 = vpop.f32.mrb[7].mxu0 }
 0x343   : > { %v9136_v19 = vpop.eup %9135 }
 0x344   : > { %1082 = vrot.lane.b32.xlu0 %v9136_v19, %s10410_s6 }
 0x345   : > { %v9138_v21 = vpop.eup %9137 }
 0x346   : > { %v1077_v22 = vadd.f32 1.0, %v9138_v21 }
 0x348   : > { %v1078_v23 = vmul.f32 0.5, %v1077_v22 }
 0x34a   : > { %v1080_v26 = vmul.f32 0.0, %v1078_v23 }
 0x3b6   : > { %v1083_v24 = vpop.permute.xlu0 %1082 }
 0x3b7   : > { %v1085_v25 = vmul.f32 %v1083_v24, %v1078_v23  ;;  %v996_v24 = vadd.f32 %v11070_v14, %v11065_v8 }
 0x3b9   : > { %1087 = vrot.lane.b32.xlu0 %v1085_v25, %s10411_s30 }
 0x42b   : > { %v1088_v27 = vpop.permute.xlu0 %1087 }
 0x42c   : > { %v1090_v28 = vadd.f32 %v1088_v27, %v1080_v26 }
 0x42e   : > { %9139 = vtanh.f32 %v1090_v28 }
 0x438   : > { %v9140_v29 = vpop.eup %9139 }
 0x439   : > { %1093 = vrot.lane.b32.xlu1 %v9140_v29, %s10410_s6 }
 0x4ab   : > { %v1094_v30 = vpop.permute.xlu1 %1093 }
 0x4ac   : > { %v1096_v31 = vmul.f32 %v1094_v30, %v1078_v23 }
 0x4ae   : > { %v1097_v32 = vpack.c.bf16 %v1096_v31, %v1096_v31 }
 0x4b0   : > { %1099 = vrot.lane.b32.xlu1 %v1097_v32, %s10411_s30 }
 0x522   : > { %v1100_v33 = vpop.permute.xlu1 %1099 }
 0x523   : > { %8659 = vmatmul.mubr.msk.bf16.vlgmr.msra.gmra.mrb[4].mxu1 %vm937_vm0, %v1100_v33 }
 0x524   : > { %8671 = vmatpush3.bf16.msra.mxu1 %v11035_v2  ;;  %8674 = vmatprep.mubr.msk.bf16.mxu1 %vm10408_vm1, %v10407_v1 }
 0x525   : > { %8672 = vmatprep.subr.bf16.mxu1 %v10407_v1 }
 0x528   : > { %8673 = vmatpush3.bf16.msra.mxu1 %v11038_v4 }
 0x529   : > { %8686 = vmatprep.subr.bf16.mxu1 %v10407_v1 }
 0x5f6   : > { %v1138_v35 = vpop.f32.mrb[4].mxu1 }
 0x5f7   : > { %v1144_v36 = vadd.f32 %v1138_v35, %v988_v34  ;;  %v8660_v37 = vpop.f32.mrb[5].mxu1 }
 0x5f8   : > { %v1141_v38 = vpop.f32.mrb[6].mxu1 }
 0x5f9   : > { %9141 = vtanh.f32 %v1144_v36  ;;  %v8661_v39 = vpop.f32.mrb[7].mxu1  ;;  %v1145_v41 = vmul.f32 0.5, %v1144_v36 }
 0x5fb   : > { %9143 = vtanh.f32 %v1145_v41 }
 0x603   : > { %v9142_v40 = vpop.eup %9141 }
 0x604   : > { %1152 = vrot.lane.b32.xlu0 %v9142_v40, %s10410_s6 }
 0x605   : > { %v9144_v42 = vpop.eup %9143 }
 0x606   : > { %v1147_v43 = vadd.f32 1.0, %v9144_v42 }
 0x608   : > { %v1148_v44 = vmul.f32 0.5, %v1147_v43 }
 0x60a   : > { %v1150_v47 = vmul.f32 %v1148_v44, %v1090_v28 }
 0x676   : > { %v1153_v45 = vpop.permute.xlu0 %1152 }
 0x677   : > { %v1155_v46 = vmul.f32 %v1153_v45, %v1148_v44 }
 0x679   : > { %1157 = vrot.lane.b32.xlu1 %v1155_v46, %s10411_s30 }
 0x6eb   : > { %v1158_v48 = vpop.permute.xlu1 %1157 }
 0x6ec   : > { %v1160_v49 = vadd.f32 %v1158_v48, %v1150_v47 }
 0x6ee   : > { %9145 = vtanh.f32 %v1160_v49 }
 0x6f8   : > { %v9146_v52 = vpop.eup %9145 }
 0x6f9   : > { %1163 = vrot.lane.b32.xlu0 %v9146_v52, %s10410_s6 }
 0x76b   : > { %v1164_v53 = vpop.permute.xlu0 %1163 }
 0x76c   : > { %v1166_v54 = vmul.f32 %v1164_v53, %v1148_v44  ;;  %v1001_v44 = vadd.f32 %v11065_v8, %v11100_v57 }
 0x76e   : > { %v1167_v55 = vpack.c.bf16 %v1166_v54, %v1166_v54 }
 0x770   : > { %1169 = vrot.lane.b32.xlu1 %v1167_v55, %s10411_s30 }
 0x7e2   : > { %v1170_v60 = vpop.permute.xlu1 %1169 }
 0x7e3   : > { %8667 = vmatmul.mubr.msk.bf16.vlgmr.msra.gmra.mrb[8].mxu0 %vm937_vm0, %v1170_v60 }
 0x7e4   : > { %8679 = vmatpush3.bf16.msra.mxu0 %v11035_v2  ;;  %8682 = vmatprep.mubr.msk.bf16.mxu0 %vm10408_vm1, %v10407_v1 }
 0x7e5   : > { %8680 = vmatprep.subr.bf16.mxu0 %v10407_v1 }
 0x7e8   : > { %8681 = vmatpush3.bf16.msra.mxu0 %v11038_v4 }
 0x7e9   : > { %8694 = vmatprep.subr.bf16.mxu0 %v10407_v1 }
 0x8b6   : > { %v1208_v62 = vpop.f32.mrb[8].mxu0 }
 0x8b7   : > { %v1214_v63 = vadd.f32 %v1208_v62, %v993_v61  ;;  %v8668_v0 = vpop.f32.mrb[9].mxu0 }
 0x8b8   : > { %v1211_v3 = vpop.f32.mrb[10].mxu0 }
 0x8b9   : > { %9147 = vtanh.f32 %v1214_v63  ;;  %v8669_v5 = vpop.f32.mrb[11].mxu0  ;;  %v1215_v10 = vmul.f32 0.5, %v1214_v63 }
 0x8bb   : > { %9149 = vtanh.f32 %v1215_v10  ;;  %v1004_v10 = vadd.f32 %v11065_v8, %v11104_v59 }
 0x8c3   : > { %v9148_v6 = vpop.eup %9147 }
 0x8c4   : > { %1222 = vrot.lane.b32.xlu0 %v9148_v6, %s10410_s6 }
 0x8c5   : > { %v9150_v11 = vpop.eup %9149 }
 0x8c6   : > { %v1217_v12 = vadd.f32 1.0, %v9150_v11 }
 0x8c8   : > { %v1218_v13 = vmul.f32 0.5, %v1217_v12 }
 0x8ca   : > { %v1220_v17 = vmul.f32 %v1218_v13, %v1160_v49 }
 0x936   : > { %v1223_v15 = vpop.permute.xlu0 %1222 }
 0x937   : > { %v1225_v16 = vmul.f32 %v1223_v15, %v1218_v13 }
 0x939   : > { %1227 = vrot.lane.b32.xlu1 %v1225_v16, %s10411_s30 }
 0x9ab   : > { %v1228_v9 = vpop.permute.xlu1 %1227 }
 0x9ac   : > { %v1230_v18 = vadd.f32 %v1228_v9, %v1220_v17 }
 0x9ae   : > { %9151 = vtanh.f32 %v1230_v18 }
 0x9b8   : > { %v9152_v19 = vpop.eup %9151 }
 0x9b9   : > { %1233 = vrot.lane.b32.xlu0 %v9152_v19, %s10410_s6 }
 0xa2b   : > { %v1234_v20 = vpop.permute.xlu0 %1233 }
 0xa2c   : > { %v1236_v21 = vmul.f32 %v1234_v20, %v1218_v13 }
 0xa2e   : > { %v1237_v22 = vpack.c.bf16 %v1236_v21, %v1236_v21 }
 0xa30   : > { %1239 = vrot.lane.b32.xlu1 %v1237_v22, %s10411_s30 }
 0xaa2   : > { %v1240_v23 = vpop.permute.xlu1 %1239 }
 0xaa3   : > { %8675 = vmatmul.mubr.msk.bf16.vlgmr.msra.gmra.mrb[8].mxu1 %vm937_vm0, %v1240_v23 }
 0xaa4   : > { %8687 = vmatpush3.bf16.msra.mxu1 %v11035_v2  ;;  %8690 = vmatprep.mubr.msk.bf16.mxu1 %vm10408_vm1, %v10407_v1 }
 0xaa5   : > { %8688 = vmatprep.subr.bf16.mxu1 %v10407_v1 }
 0xaa8   : > { %8689 = vmatpush3.bf16.msra.mxu1 %v11038_v4 }
 0xaa9   : > { %8702 = vmatprep.subr.bf16.mxu1 %v10407_v1 }
 0xb76   : > { %v1278_v25 = vpop.f32.mrb[8].mxu1 }
 0xb77   : > { %v1284_v26 = vadd.f32 %v1278_v25, %v996_v24  ;;  %v8676_v27 = vpop.f32.mrb[9].mxu1 }
 0xb78   : > { %v1281_v28 = vpop.f32.mrb[10].mxu1 }
 0xb79   : > { %9153 = vtanh.f32 %v1284_v26  ;;  %v8677_v29 = vpop.f32.mrb[11].mxu1  ;;  %v1285_v31 = vmul.f32 0.5, %v1284_v26  ;;  %v1009_v28 = vadd.f32 %v11098_v56, %v11065_v8 }
 0xb7b   : > { %9155 = vtanh.f32 %v1285_v31 }
 0xb83   : > { %v9154_v30 = vpop.eup %9153 }
 0xb84   : > { %1292 = vrot.lane.b32.xlu0 %v9154_v30, %s10410_s6 }
 0xb85   : > { %v9156_v32 = vpop.eup %9155 }
 0xb86   : > { %v1287_v33 = vadd.f32 1.0, %v9156_v32 }
 0xb88   : > { %v1288_v34 = vmul.f32 0.5, %v1287_v33 }
 0xb8a   : > { %v1290_v37 = vmul.f32 %v1288_v34, %v1230_v18 }
 0xbf6   : > { %v1293_v35 = vpop.permute.xlu0 %1292 }
 0xbf7   : > { %v1295_v36 = vmul.f32 %v1293_v35, %v1288_v34 }
 0xbf9   : > { %1297 = vrot.lane.b32.xlu1 %v1295_v36, %s10411_s30 }
 0xc6b   : > { %v1298_v14 = vpop.permute.xlu1 %1297 }
 0xc6c   : > { %v1300_v38 = vadd.f32 %v1298_v14, %v1290_v37 }
 0xc6e   : > { %9157 = vtanh.f32 %v1300_v38 }
 0xc78   : > { %v9158_v39 = vpop.eup %9157 }
 0xc79   : > { %1303 = vrot.lane.b32.xlu0 %v9158_v39, %s10410_s6 }
 0xceb   : > { %v1304_v40 = vpop.permute.xlu0 %1303 }
 0xcec   : > { %v1306_v41 = vmul.f32 %v1304_v40, %v1288_v34 }
 0xcee   : > { %v1307_v42 = vpack.c.bf16 %v1306_v41, %v1306_v41 }
 0xcf0   : > { %1309 = vrot.lane.b32.xlu1 %v1307_v42, %s10411_s30 }
 0xd62   : > { %v1310_v43 = vpop.permute.xlu1 %1309 }
 0xd63   : > { %8683 = vmatmul.mubr.msk.bf16.vlgmr.msra.gmra.mrb[12].mxu0 %vm937_vm0, %v1310_v43 }
 0xd64   : > { %8695 = vmatpush3.bf16.msra.mxu0 %v11035_v2  ;;  %8698 = vmatprep.mubr.msk.bf16.mxu0 %vm10408_vm1, %v10407_v1 }
 0xd65   : > { %8696 = vmatprep.subr.bf16.mxu0 %v10407_v1 }
 0xd68   : > { %8697 = vmatpush3.bf16.msra.mxu0 %v11038_v4 }
 0xe36   : > { %v1348_v45 = vpop.f32.mrb[12].mxu0 }
 0xe37   : > { %v1354_v46 = vadd.f32 %v1348_v45, %v1001_v44  ;;  %v8684_v47 = vpop.f32.mrb[13].mxu0 }
 0xe38   : > { %v1351_v48 = vpop.f32.mrb[14].mxu0  ;;  %v1012_v47 = vadd.f32 %v11102_v58, %v11065_v8 }
 0xe39   : > { %9159 = vtanh.f32 %v1354_v46  ;;  %v8685_v49 = vpop.f32.mrb[15].mxu0  ;;  %v1355_v51 = vmul.f32 0.5, %v1354_v46 }
 0xe3b   : > { %9161 = vtanh.f32 %v1355_v51 }
 0xe43   : > { %v9160_v50 = vpop.eup %9159 }
 0xe44   : > { %1362 = vrot.lane.b32.xlu0 %v9160_v50, %s10410_s6 }
 0xe45   : > { %v9162_v52 = vpop.eup %9161 }
 0xe46   : > { %v1357_v53 = vadd.f32 1.0, %v9162_v52 }
 0xe48   : > { %v1358_v54 = vmul.f32 0.5, %v1357_v53 }
 0xe4a   : > { %v1360_v61 = vmul.f32 %v1358_v54, %v1300_v38 }
 0xeb6   : > { %v1363_v55 = vpop.permute.xlu0 %1362 }
 0xeb7   : > { %v1365_v60 = vmul.f32 %v1363_v55, %v1358_v54 }
 0xeb9   : > { %1367 = vrot.lane.b32.xlu1 %v1365_v60, %s10411_s30 }
 0xf2b   : > { %v1368_v57 = vpop.permute.xlu1 %1367 }
 0xf2c   : > { %v1370_v62 = vadd.f32 %v1368_v57, %v1360_v61 }
 0xf2e   : > { %9163 = vtanh.f32 %v1370_v62 }
 0xf38   : > { %v9164_v63 = vpop.eup %9163 }
 0xf39   : > { %1373 = vrot.lane.b32.xlu0 %v9164_v63, %s10410_s6 }
 0xfab   : > { %v1374_v0 = vpop.permute.xlu0 %1373 }
 0xfac   : > { %v1376_v3 = vmul.f32 %v1374_v0, %v1358_v54  ;;  %v9025_v0 = vld [vmem:[#allocation11] ss:$28 sps:$4 sm:$0xff]  }
 0xfae   : > { %v1377_v5 = vpack.c.bf16 %v1376_v3, %v1376_v3  ;;  %v9027_v3 = vld [vmem:[#allocation11 + $0x4] ss:$28 sps:$4 sm:$0xff]  }
 0xfaf   : > { %1721 = vmatprep.subr.bf16.mxu0 %v9027_v3  ;;  %v9092_v3 = vld [vmem:[#allocation17 + $0x88] sm:$0xff]  }
 0xfb0   : > { %1379 = vrot.lane.b32.xlu1 %v1377_v5, %s10411_s30  ;;  %v9028_v5 = vld [vmem:[#allocation11 + $0x8] ss:$28 sps:$4 sm:$0xff]  }
0x1022   : > { %v1380_v6 = vpop.permute.xlu1 %1379 }
0x1023   : > { %8691 = vmatmul.mubr.msk.bf16.vlgmr.msra.gmra.mrb[12].mxu1 %vm937_vm0, %v1380_v6  ;;  %v9030_v6 = vld [vmem:[#allocation11 + $0xc] ss:$28 sps:$4 sm:$0xff]  }
0x1024   : > { %8703 = vmatpush3.bf16.msra.mxu1 %v11035_v2  ;;  %8706 = vmatprep.mubr.msk.bf16.mxu1 %vm10408_vm1, %v10407_v1 }
0x1025   : > { %8704 = vmatprep.subr.bf16.mxu1 %v10407_v1 }
0x1028   : > { %8705 = vmatpush3.bf16.msra.mxu1 %v11038_v4 }
0x1029   : > { %1762 = vmatprep.subr.bf16.mxu1 %v9030_v6 }
0x10f6   : > { %v1418_v11 = vpop.f32.mrb[12].mxu1 }
0x10f7   : > { %v1424_v12 = vadd.f32 %v1418_v11, %v1004_v10  ;;  %v8692_v13 = vpop.f32.mrb[13].mxu1  ;;  %v9033_v10 = vld [vmem:[#allocation11 + $0x3c] ss:$28 sps:$4 sm:$0xff]   ;;  %v9036_v11 = vld [vmem:[#allocation11 + $0x44] ss:$28 sps:$4 sm:$0xff]  }
0x10f8   : > { %v1421_v15 = vpop.f32.mrb[14].mxu1  ;;  %v9034_v13 = vld [vmem:[#allocation11 + $0x40] ss:$28 sps:$4 sm:$0xff]  }
0x10f9   : > { %9165 = vtanh.f32 %v1424_v12  ;;  %v8693_v16 = vpop.f32.mrb[15].mxu1  ;;  %v1425_v2 = vmul.f32 0.5, %v1424_v12  ;;  %v9031_v12 = vld [vmem:[#allocation11 + $0x38] ss:$28 sps:$4 sm:$0xff]  }
0x10fa   : > { %v9039_v15 = vld [vmem:[#allocation11 + $0x14] ss:$28 sps:$4 sm:$0xff]  }
0x10fb   : > { %9167 = vtanh.f32 %v1425_v2 }
0x1103   : > { %v9166_v17 = vpop.eup %9165 }
0x1104   : > { %1432 = vrot.lane.b32.xlu0 %v9166_v17, %s10410_s6 }
0x1105   : > { %v9168_v9 = vpop.eup %9167 }
0x1106   : > { %v1427_v18 = vadd.f32 1.0, %v9168_v9 }
0x1108   : > { %v1428_v19 = vmul.f32 0.5, %v1427_v18  ;;  %v9037_v18 = vld [vmem:[#allocation11 + $0x10] ss:$28 sps:$4 sm:$0xff]  }
0x110a   : > { %v1430_v4 = vmul.f32 %v1428_v19, %v1370_v62 }
0x1176   : > { %v1433_v20 = vpop.permute.xlu0 %1432 }
0x1177   : > { %v1435_v21 = vmul.f32 %v1433_v20, %v1428_v19  ;;  %v9043_v20 = vld [vmem:[#allocation11 + $0x4c] ss:$28 sps:$4 sm:$0xff]  }
0x1179   : > { %1437 = vrot.lane.b32.xlu1 %v1435_v21, %s10411_s30 }
0x11eb   : > { %v1438_v59 = vpop.permute.xlu1 %1437 }
0x11ec   : > { %v1440_v22 = vadd.f32 %v1438_v59, %v1430_v4  ;;  %v9041_v4 = vld [vmem:[#allocation11 + $0x48] ss:$28 sps:$4 sm:$0xff]   ;;  %v9044_v59 = vld [vmem:[#allocation11 + $0x50] ss:$28 sps:$4 sm:$0xff]  }
0x11ee   : > { %9169 = vtanh.f32 %v1440_v22 }
0x11f8   : > { %v9170_v23 = vpop.eup %9169 }
0x11f9   : > { %1443 = vrot.lane.b32.xlu0 %v9170_v23, %s10410_s6  ;;  %v9050_v23 = vld [vmem:[#allocation14 + $0xc] ss:$28 sps:$4 sm:$0xff]  }
0x126b   : > { %v1444_v24 = vpop.permute.xlu0 %1443 }
0x126c   : > { %v1446_v25 = vmul.f32 %v1444_v24, %v1428_v19  ;;  %v9040_v19 = vld [vmem:[#allocation11 + $0x18] ss:$28 sps:$4 sm:$0xff]  }
0x126d   : > { %v9045_v24 = vld [vmem:[#allocation14] ss:$28 sps:$4 sm:$0xff]  }
0x126e   : > { %v1447_v26 = vpack.c.bf16 %v1446_v25, %v1446_v25  ;;  %v9048_v25 = vld [vmem:[#allocation14 + $0x8] ss:$28 sps:$4 sm:$0xff]  }
0x1270   : > { %1449 = vrot.lane.b32.xlu1 %v1447_v26, %s10411_s30  ;;  %v9053_v26 = vld [vmem:[#allocation14 + $0x3c] ss:$28 sps:$4 sm:$0xff]  }
0x12e2   : > { %v1450_v27 = vpop.permute.xlu1 %1449 }
0x12e3   : > { %8699 = vmatmul.mubr.msk.bf16.vlgmr.msra.gmra.mrb[16].mxu0 %vm937_vm0, %v1450_v27  ;;  %v9056_v27 = vld [vmem:[#allocation14 + $0x44] ss:$28 sps:$4 sm:$0xff]  }
0x12e4   : > { %1753 = vmatprep.mubr.bf16.mxu0 %v10409_v7  ;;  %1722 = vmatpush1.bf16.msra.mxu0 %v9025_v0 }
0x12e5   : > { %1723 = vmatprep.subr.bf16.mxu0 %v9033_v10 }
0x12e8   : > { %1724 = vmatpush1.bf16.msra.mxu0 %v9031_v12  ;;  %v9095_v12 = vld [vmem:[#allocation17 + $0xd0] sm:$0xff]  }
0x12e9   : > { %1803 = vmatprep.subr.bf16.mxu0 %v9039_v15 }
0x13b6   : > { %v1488_v29 = vpop.f32.mrb[16].mxu0 }
0x13b7   : > { %v1494_v30 = vadd.f32 %v1488_v29, %v1009_v28  ;;  %v8700_v31 = vpop.f32.mrb[17].mxu0  ;;  %v9051_v28 = vld [vmem:[#allocation14 + $0x38] ss:$28 sps:$4 sm:$0xff]   ;;  %v9054_v29 = vld [vmem:[#allocation14 + $0x40] ss:$28 sps:$4 sm:$0xff]  }
0x13b8   : > { %v1491_v32 = vpop.f32.mrb[18].mxu0  ;;  %v9057_v31 = vld [vmem:[#allocation14 + $0x70] ss:$28 sps:$4 sm:$0xff]  }
0x13b9   : > { %9171 = vtanh.f32 %v1494_v30  ;;  %v8701_v33 = vpop.f32.mrb[19].mxu0  ;;  %v1495_v35 = vmul.f32 0.5, %v1494_v30  ;;  %v9062_v30 = vld [vmem:[#allocation14 + $0x7c] ss:$28 sps:$4 sm:$0xff]  }
0x13ba   : > { %v9060_v32 = vld [vmem:[#allocation14 + $0x78] ss:$28 sps:$4 sm:$0xff]   ;;  %v9065_v33 = vld [vmem:[#allocation14 + $0xac] ss:$28 sps:$4 sm:$0xff]  }
0x13bb   : > { %9173 = vtanh.f32 %v1495_v35  ;;  %v9063_v35 = vld [vmem:[#allocation14 + $0xa8] ss:$28 sps:$4 sm:$0xff]  }
0x13c3   : > { %v9172_v34 = vpop.eup %9171 }
0x13c4   : > { %1502 = vrot.lane.b32.xlu0 %v9172_v34, %s10410_s6  ;;  %v9068_v34 = vld [vmem:[#allocation14 + $0xb4] ss:$28 sps:$4 sm:$0xff]  }
0x13c5   : > { %v9174_v36 = vpop.eup %9173 }
0x13c6   : > { %v1497_v37 = vadd.f32 1.0, %v9174_v36  ;;  %v9066_v36 = vld [vmem:[#allocation14 + $0xb0] ss:$28 sps:$4 sm:$0xff]  }
0x13c8   : > { %v1498_v14 = vmul.f32 0.5, %v1497_v37  ;;  %v1587_v37 = vld [vmem:[#allocation9] sm:$0xff] }
0x13ca   : > { %v1500_v40 = vmul.f32 %v1498_v14, %v1440_v22  ;;  %v9047_v22 = vld [vmem:[#allocation14 + $0x4] ss:$28 sps:$4 sm:$0xff]  }
0x1436   : > { %v1503_v38 = vpop.permute.xlu0 %1502 }
0x1437   : > { %v1505_v39 = vmul.f32 %v1503_v38, %v1498_v14  ;;  %v1589_v38 = vpack.c.bf16 %v1587_v37, %v1587_v37 }
0x1439   : > { %1507 = vrot.lane.b32.xlu1 %v1505_v39, %s10411_s30  ;;  %v9069_v39 = vld [vmem:[#allocation14 + $0x10] ss:$28 sps:$4 sm:$0xff]  }
0x14ab   : > { %v1508_v56 = vpop.permute.xlu1 %1507 }
0x14ac   : > { %v1510_v41 = vadd.f32 %v1508_v56, %v1500_v40  ;;  %v9072_v40 = vld [vmem:[#allocation14 + $0x18] ss:$28 sps:$4 sm:$0xff]   ;;  %v11189_v56 = vld [vmem:[#allocation30] sm:$0xff] }
0x14ae   : > { %9175 = vtanh.f32 %v1510_v41 }
0x14b8   : > { %v9176_v42 = vpop.eup %9175 }
0x14b9   : > { %1513 = vrot.lane.b32.xlu0 %v9176_v42, %s10410_s6  ;;  %v9073_v42 = vld [vmem:[#allocation14 + $0x48] ss:$28 sps:$4 sm:$0xff]  }
0x152b   : > { %v1514_v43 = vpop.permute.xlu0 %1513 }
0x152c   : > { %v1516_v44 = vmul.f32 %v1514_v43, %v1498_v14  ;;  %v9071_v14 = vld [vmem:[#allocation14 + $0x14] ss:$28 sps:$4 sm:$0xff]  }
0x152d   : > { %v9076_v43 = vld [vmem:[#allocation14 + $0x50] ss:$28 sps:$4 sm:$0xff]  }
0x152e   : > { %v1517_v45 = vpack.c.bf16 %v1516_v44, %v1516_v44  ;;  %v9079_v44 = vld [vmem:[#allocation14 + $0x84] ss:$28 sps:$4 sm:$0xff]  }
0x1530   : > { %1519 = vrot.lane.b32.xlu1 %v1517_v45, %s10411_s30  ;;  %v9077_v45 = vld [vmem:[#allocation14 + $0x80] ss:$28 sps:$4 sm:$0xff]  }
0x15a2   : > { %v1520_v46 = vpop.permute.xlu1 %1519 }
0x15a3   : > { %8707 = vmatmul.mubr.msk.bf16.vlgmr.msra.gmra.mrb[16].mxu1 %vm937_vm0, %v1520_v46  ;;  %v9080_v46 = vld [vmem:[#allocation14 + $0x88] ss:$28 sps:$4 sm:$0xff]  }
0x15a4   : > { %1794 = vmatprep.mubr.bf16.mxu1 %v10409_v7  ;;  %1763 = vmatpush1.bf16.msra.mxu1 %v9028_v5  ;;  %v9093_v5 = vld [vmem:[#allocation17 + $0x50] sm:$0xff]  }
0x15a5   : > { %1764 = vmatprep.subr.bf16.mxu1 %v9036_v11  ;;  %v9094_v11 = vld [vmem:[#allocation17 + $0x10] sm:$0xff]  }
0x15a8   : > { %1765 = vmatpush1.bf16.msra.mxu1 %v9034_v13 }
0x15a9   : > { %8710 = vmatprep.subr.bf16.mxu1 %v10407_v1 }
0x1676   : > { %v1558_v48 = vpop.f32.mrb[16].mxu1 }
0x1677   : > { %v1564_v49 = vadd.f32 %v1558_v48, %v1012_v47  ;;  %v8708_v50 = vpop.f32.mrb[17].mxu1  ;;  %v9083_v47 = vld [vmem:[#allocation14 + $0xbc] ss:$28 sps:$4 sm:$0xff]  }
0x1678   : > { %v1561_v51 = vpop.f32.mrb[18].mxu1  ;;  %v9081_v48 = vld [vmem:[#allocation14 + $0xb8] ss:$28 sps:$4 sm:$0xff]   ;;  %v1608_v50 = vlaneseq }
0x1679   : > { %9177 = vtanh.f32 %v1564_v49  ;;  %v8709_v52 = vpop.f32.mrb[19].mxu1  ;;  %v1565_v54 = vmul.f32 0.5, %v1564_v49  ;;  %v9084_v49 = vld [vmem:[#allocation14 + $0xc0] ss:$28 sps:$4 sm:$0xff]   ;;  %v9085_v51 = vld [vmem:[#allocation17 + $0x40] sm:$0xff]  }
0x167a   : > { %v11202_v52 = vshrl.u32 %v1608_v50, 7 }
0x167b   : > { %9179 = vtanh.f32 %v1565_v54  ;;  %v9087_v54 = vld [vmem:[#allocation17 + $0xc0] sm:$0xff]  }
0x167c   : > { %v11216_v0 = vsub.s32 3, %v11202_v52 }
0x1683   : > { %v9178_v53 = vpop.eup %9177 }
0x1684   : > { %1572 = vrot.lane.b32.xlu0 %v9178_v53, %s10410_s6  ;;  %v9086_v53 = vld [vmem:[#allocation17] sm:$0xff]  }
0x1685   : > { %v9180_v55 = vpop.eup %9179 }
0x1686   : > { %v1567_v60 = vadd.f32 1.0, %v9180_v55  ;;  %v9088_v55 = vld [vmem:[#allocation17 + $0x80] sm:$0xff]  }
0x1688   : > { %v1568_v61 = vmul.f32 0.5, %v1567_v60  ;;  %v9089_v60 = vld [vmem:[#allocation17 + $0x48] sm:$0xff]  }
0x168a   : > { %v1570_v63 = vmul.f32 %v1568_v61, %v1510_v41  ;;  %v9075_v41 = vld [vmem:[#allocation14 + $0x4c] ss:$28 sps:$4 sm:$0xff]  }
0x16f6   : > { %v1573_v57 = vpop.permute.xlu0 %1572 }
0x16f7   : > { %v1575_v62 = vmul.f32 %v1573_v57, %v1568_v61  ;;  %v11208_v57 = vsub.s32 2, %v11202_v52 }
0x16f9   : > { %1577 = vrot.lane.b32.xlu1 %v1575_v62, %s10411_s30  ;;  %v9090_v62 = vld [vmem:[#allocation17 + $0x8] sm:$0xff]  }
0x176b   : > { %v1578_v8 = vpop.permute.xlu1 %1577 }
0x176c   : > { %v1580_v58 = vadd.f32 %v1578_v8, %v1570_v63  ;;  %v9091_v63 = vld [vmem:[#allocation17 + $0xc8] sm:$0xff]   ;;  %v11210_v8 = vld [vmem:[#allocation12] sm:$0x7f] }
0x176d   : > { %v1619_v10 = vrot.slane %v11210_v8, %v11208_v57  ;;  %v1623_v15 = vrot.slane %v11210_v8, %v11216_v0 }
0x176e   : > { %9181 = vtanh.f32 %v1580_v58  ;;  %v11213_v58 = vsub.s32 1, %v11202_v52 }
0x1770   : > { %v1615_v13 = vrot.slane %v11210_v8, %v11213_v58 }
0x1778   : > { %v9182_v16 = vpop.eup %9181 }
0x1779   : > { %1583 = vrot.lane.b32.xlu0 %v9182_v16, %s10410_s6  ;;  %v11227_v16 = vsub.s32 4, %v11202_v52 }
0x17eb   : > { %v1584_v17 = vpop.permute.xlu0 %1583 }
0x17ec   : > { %v1586_v2 = vmul.f32 %v1584_v17, %v1568_v61  ;;  %v11205_v61 = vsub.s32 0, %v11202_v52  ;;  %v9096_v17 = vld [vmem:[#allocation17 + $0x90] sm:$0xff]  }
0x17ee   : > { %v1588_v9 = vpack.c.bf16 %v1586_v2, %v1586_v2  ;;  %v1611_v6 = vrot.slane %v11210_v8, %v11205_v61 }
0x17f0   : > { %1644 = vrot.lane.b32.xlu1 %v1588_v9, %s10411_s30 }
0x1862   : > { %v11173_v21 = vpop.permute.xlu1 %1644 }
0x1863   : > { %7881 = vmatmul.mubr.msk.bf16.vlgmr.msra.gmra.mrb[20].mxu0 %vm937_vm0, %v11173_v21  ;;  %7882 = vmatmul.mubr.msk.bf16.vlgmr.msra.gmra.mrb[20].mxu1 %vm937_vm0, %v11173_v21 }
0x1864   : > { %1804 = vmatpush1.bf16.msra.mxu0 %v9037_v18  ;;  %8711 = vmatpush3.bf16.msra.mxu1 %v9040_v19  ;;  %v9097_v18 = vld [vmem:[#allocation17 + $0x58] sm:$0xff]  }
0x1865   : > { %1805 = vmatprep.subr.bf16.mxu0 %v9043_v20  ;;  %8712 = vmatprep.subr.bf16.mxu1 %v10407_v1 }
0x1866   : > { %1835 = vmatprep.mubr.bf16.mxu0 %v10409_v7  ;;  %8714 = vmatprep.mubr.msk.bf16.mxu1 %vm10408_vm1, %v10407_v1  ;;  %v9059_v1 = vld [vmem:[#allocation14 + $0x74] ss:$28 sps:$4 sm:$0xff]  }
0x1868   : > { %1806 = vmatpush1.bf16.msra.mxu0 %v9041_v4  ;;  %8713 = vmatpush3.bf16.msra.mxu1 %v9044_v59 }
0x1869   : > { %2258 = vmatprep.subr.bf16.mxu0 %v9047_v22  ;;  %2299 = vmatprep.subr.bf16.mxu1 %v9050_v23  ;;  %v11230_v22 = vsub.s32 6, %v11202_v52  ;;  %v11233_v23 = vsub.s32 5, %v11202_v52 }
0x186b   : > { %7883 = vmatmul.mubr.msk.bf16.vlgmr.msra.gmra.mrb[24].mxu0 %vm937_vm0, %v11173_v21  ;;  %8715 = vmatmul.mubr.msk.bf16.vlgmr.msra.gmra.mrb[24].mxu1 %vm937_vm0, %v11173_v21 }
0x186c   : > { %2259 = vmatpush1.bf16.msra.mxu0 %v9045_v24  ;;  %2300 = vmatpush1.bf16.msra.mxu1 %v9048_v25  ;;  %v9098_v24 = vld [vmem:[#allocation17 + $0x18] sm:$0xff]  }
0x186d   : > { %2260 = vmatprep.subr.bf16.mxu0 %v9053_v26  ;;  %2301 = vmatprep.subr.bf16.mxu1 %v9056_v27  ;;  %v9099_v25 = vld [vmem:[#allocation17 + $0xd8] sm:$0xff]  }
0x186e   : > { %2290 = vmatprep.mubr.bf16.mxu0 %v10409_v7  ;;  %2331 = vmatprep.mubr.bf16.mxu1 %v10409_v7 }
0x1870   : > { %2261 = vmatpush1.bf16.msra.mxu0 %v9051_v28  ;;  %2302 = vmatpush1.bf16.msra.mxu1 %v9054_v29 }
0x1871   : > { %2262 = vmatprep.subr.bf16.mxu0 %v9059_v1  ;;  %2303 = vmatprep.subr.bf16.mxu1 %v9062_v30  ;;  %v1627_v1 = vrot.slane %v11210_v8, %v11227_v16  ;;  %v9100_v30 = vld [vmem:[#allocation17 + $0x98] sm:$0xff]  }
0x1874   : > { %2263 = vmatpush1.bf16.msra.mxu0 %v9057_v31  ;;  %2304 = vmatpush1.bf16.msra.mxu1 %v9060_v32 }
0x1875   : > { %2264 = vmatprep.subr.bf16.mxu0 %v9065_v33  ;;  %2305 = vmatprep.subr.bf16.mxu1 %v9068_v34 }
0x1878   : > { %2265 = vmatpush1.bf16.msra.mxu0 %v9063_v35  ;;  %2306 = vmatpush1.bf16.msra.mxu1 %v9066_v36 }
0x1879   : > { %2340 = vmatprep.subr.bf16.mxu0 %v9071_v14  ;;  %8718 = vmatprep.subr.bf16.mxu1 %v11189_v56 }
0x187b   : > { %7913 = vmatmul.mubr.msk.bf16.vlgmr.msra.gmra.mrb[28].mxu0 %vm2254_vm2, %v1589_v38  ;;  %7914 = vmatmul.mubr.msk.bf16.vlgmr.msra.gmra.mrb[28].mxu1 %vm2254_vm2, %v1589_v38 }
0x187c   : > { %2341 = vmatpush1.bf16.msra.mxu0 %v9069_v39  ;;  %8719 = vmatpush3.bf16.msra.mxu1 %v9072_v40  ;;  %v1631_v39 = vrot.slane %v11210_v8, %v11233_v23  ;;  %v9101_v40 = vld [vmem:[#allocation17 + $0x60] sm:$0xff]  }
0x187d   : > { %2342 = vmatprep.subr.bf16.mxu0 %v9075_v41  ;;  %8720 = vmatprep.subr.bf16.mxu1 %v11189_v56  ;;  %v9102_v41 = vld [vmem:[#allocation17 + $0x20] sm:$0xff]  }
0x187e   : > { %2372 = vmatprep.mubr.bf16.mxu0 %v10409_v7  ;;  %8726 = vmatprep.mubr.msk.bf16.mxu1 %vm10408_vm1, %v11189_v56 }
0x1880   : > { %2343 = vmatpush1.bf16.msra.mxu0 %v9073_v42  ;;  %8721 = vmatpush3.bf16.msra.mxu1 %v9076_v43  ;;  %v9103_v42 = vld [vmem:[#allocation17 + $0xe0] sm:$0xff]  }
0x1881   : > { %2344 = vmatprep.subr.bf16.mxu0 %v9079_v44  ;;  %8722 = vmatprep.subr.bf16.mxu1 %v11189_v56 }
0x1884   : > { %2345 = vmatpush1.bf16.msra.mxu0 %v9077_v45  ;;  %8723 = vmatpush3.bf16.msra.mxu1 %v9080_v46 }
0x1885   : > { %2346 = vmatprep.subr.bf16.mxu0 %v9083_v47  ;;  %8724 = vmatprep.subr.bf16.mxu1 %v11189_v56  ;;  %v9104_v47 = vld [vmem:[#allocation17 + $0xa0] sm:$0xff]  }
0x1888   : > { %2347 = vmatpush1.bf16.msra.mxu0 %v9081_v48  ;;  %8725 = vmatpush3.bf16.msra.mxu1 %v9084_v49 }
0x1889   : > { %8446 = vmatprep.subr.bf16.mxu0 %v9085_v51  ;;  %8468 = vmatprep.subr.bf16.mxu1 %v9087_v54 }
0x188b   : > { %7915 = vmatmul.mubr.msk.bf16.vlgmr.msra.gmra.mrb[32].mxu0 %vm2254_vm2, %v1589_v38  ;;  %8727 = vmatmul.mubr.msk.bf16.vlgmr.msra.gmra.mrb[32].mxu1 %vm2254_vm2, %v1589_v38  ;;  %v1635_v38 = vrot.slane %v11210_v8, %v11230_v22 }
0x188c   : > { %8447 = vmatpush3.bf16.msra.mxu0 %v9086_v53  ;;  %8469 = vmatpush3.bf16.msra.mxu1 %v9088_v55  ;;  %v9105_v55 = vld [vmem:[#allocation17 + $0x68] sm:$0xff]  }
0x188d   : > { %8448 = vmatprep.subr.bf16.mxu0 %v9089_v60  ;;  %8470 = vmatprep.subr.bf16.mxu1 %v9091_v63 }
0x1890   : > { %8449 = vmatpush3.bf16.msra.mxu0 %v9090_v62  ;;  %8471 = vmatpush3.bf16.msra.mxu1 %v9092_v3 }
0x1891   : > { %8450 = vmatprep.subr.bf16.mxu0 %v9093_v5  ;;  %8472 = vmatprep.subr.bf16.mxu1 %v9095_v12 }
0x1894   : > { %8451 = vmatpush3.bf16.msra.mxu0 %v9094_v11  ;;  %8473 = vmatpush3.bf16.msra.mxu1 %v9096_v17 }
0x1895   : > { %8452 = vmatprep.subr.bf16.mxu0 %v9097_v18  ;;  %8474 = vmatprep.subr.bf16.mxu1 %v9099_v25 }
0x1898   : > { %8453 = vmatpush3.bf16.msra.mxu0 %v9098_v24  ;;  %8475 = vmatpush3.bf16.msra.mxu1 %v9100_v30  ;;  %v9111_v30 = vld [vmem:[#allocation17 + $0xf0] sm:$0xff]  }
0x1899   : > { %8454 = vmatprep.subr.bf16.mxu0 %v9101_v40  ;;  %8476 = vmatprep.subr.bf16.mxu1 %v9103_v42 }
0x189c   : > { %8455 = vmatpush3.bf16.msra.mxu0 %v9102_v41  ;;  %8477 = vmatpush3.bf16.msra.mxu1 %v9104_v47  ;;  %v9113_v47 = vld [vmem:[#allocation17 + $0x78] sm:$0xff]  }
0x189d   : > { %8456 = vmatprep.subr.bf16.mxu0 %v9105_v55 }
0x1936   : > { %v1755_v2 = vpop.f32.mrb[20].mxu0  ;;  %v1796_v9 = vpop.f32.mrb[20].mxu1 }
0x1937   : > { %v1756_v19 = vadd.f32 %v1755_v2, %v1611_v6  ;;  %v1797_v20 = vadd.f32 %v1796_v9, %v1619_v10  ;;  %v1757_v4 = vpop.f32.mrb[21].mxu0  ;;  %v1798_v59 = vpop.f32.mrb[21].mxu1  ;;  %v9106_v6 = vld [vmem:[#allocation17 + $0x28] sm:$0xff]  }
0x1938   : > { %v1758_v26 = vadd.f32 %v1757_v4, %v1615_v13  ;;  %v1799_v27 = vadd.f32 %v1798_v59, %v1623_v15  ;;  %v1759_v28 = vpop.f32.mrb[22].mxu0  ;;  %v1800_v29 = vpop.f32.mrb[22].mxu1  ;;  %v9107_v10 = vld [vmem:[#allocation17 + $0xe8] sm:$0xff]   ;;  %8457 = vmatpush3.bf16.msra.mxu0 %v9106_v6 }
0x1939   : > { %vm1884_vm3 = vcmp.ge.f32.partialorder %v1756_v19, 0.0  ;;  %v1891_v31 = vmul.f32 0.01, %v1756_v19  ;;  %vm1886_vm4 = vcmp.ge.f32.partialorder %v1797_v20, 0.0  ;;  %v1893_v32 = vmul.f32 0.01, %v1797_v20  ;;  %8478 = vmatprep.subr.bf16.mxu1 %v9107_v10 }
0x193a   : > { %vm1885_vm5 = vcmp.ge.f32.partialorder %v1758_v26, 0.0  ;;  %v1892_v33 = vmul.f32 0.01, %v1758_v26  ;;  %vm1887_vm6 = vcmp.ge.f32.partialorder %v1799_v27, 0.0  ;;  %v1894_v34 = vmul.f32 0.01, %v1799_v27 }
0x193b   : > { %v11237_v35 = vsel %vm1884_vm3, %v1756_v19, %v1891_v31  ;;  %v11239_v36 = vsel %vm1886_vm4, %v1797_v20, %v1893_v32  ;;  %v1760_v37 = vpop.f32.mrb[23].mxu0  ;;  %v1801_v14 = vpop.f32.mrb[23].mxu1  ;;  %v9108_v2 = vld [vmem:[#allocation17 + $0xa8] sm:$0xff]   ;;  %vm4405_vm4 = vcmask 850948  }
0x193c   : > { %v1905_v43 = vrot.slane %v11237_v35, 4  ;;  %v1917_v44 = vrot.slane %v11239_v36, 4  ;;  %v11248_v45 = vsel %vm1885_vm5, %v1758_v26, %v1892_v33  ;;  %v11250_v46 = vsel %vm1887_vm6, %v1799_v27, %v1894_v34  ;;  %8479 = vmatpush3.bf16.msra.mxu1 %v9108_v2  ;;  %v9109_v26 = vld [vmem:[#allocation17 + $0x70] sm:$0xff]  }
0x193d   : > { %v1911_v48 = vrot.slane %v11248_v45, 4  ;;  %v1923_v49 = vrot.slane %v11250_v46, 4  ;;  %8458 = vmatprep.subr.bf16.mxu0 %v9109_v26  ;;  %v9112_v37 = vld [vmem:[#allocation17 + $0xb0] sm:$0xff]   ;;  %8480 = vmatprep.subr.bf16.mxu1 %v9111_v30 }
0x193e   : > { %v1906_v50 = vadd.f32 %v1905_v43, %v11237_v35  ;;  %v1918_v51 = vadd.f32 %v1917_v44, %v11239_v36  ;;  %v1837_v53 = vpop.f32.mrb[24].mxu0  ;;  %v1878_v54 = vpop.f32.mrb[24].mxu1 }
0x193f   : > { %v1912_v60 = vadd.f32 %v1911_v48, %v11248_v45  ;;  %v1924_v62 = vadd.f32 %v1923_v49, %v11250_v46  ;;  %v1838_v63 = vadd.f32 %v1837_v53, %v1627_v1  ;;  %v1879_v8 = vadd.f32 %v1878_v54, %v1635_v38  ;;  %v1839_v3 = vpop.f32.mrb[25].mxu0  ;;  %v8716_v5 = vpop.f32.mrb[25].mxu1  ;;  %v9110_v1 = vld [vmem:[#allocation17 + $0x30] sm:$0xff]   ;;  %v9115_v53 = vld [vmem:[#allocation17 + $0xf8] sm:$0xff]  }
0x1940   : > { %v1907_v11 = vrot.slane %v1906_v50, 2  ;;  %v1919_v12 = vrot.slane %v1918_v51, 2  ;;  %v1840_v13 = vadd.f32 %v1839_v3, %v1631_v39  ;;  %v1841_v15 = vpop.f32.mrb[26].mxu0  ;;  %v1881_v17 = vpop.f32.mrb[26].mxu1  ;;  %8459 = vmatpush3.bf16.msra.mxu0 %v9110_v1  ;;  %8481 = vmatpush3.bf16.msra.mxu1 %v9112_v37 }
0x1941   : > { %v1913_v9 = vrot.slane %v1912_v60, 2  ;;  %v1925_v18 = vrot.slane %v1924_v62, 2  ;;  %vm1888_vm7 = vcmp.ge.f32.partialorder %v1838_v63, 0.0  ;;  %v1895_v19 = vmul.f32 0.01, %v1838_v63  ;;  %v1842_v20 = vpop.f32.mrb[27].mxu0  ;;  %8460 = vmatprep.subr.bf16.mxu0 %v9113_v47  ;;  %8482 = vmatprep.subr.bf16.mxu1 %v9115_v53 }
0x1942   : > { %v1908_v4 = vadd.f32 %v1907_v11, %v1906_v50  ;;  %v1920_v59 = vadd.f32 %v1919_v12, %v1918_v51  ;;  %vm1890_vm8 = vcmp.ge.f32.partialorder %v1879_v8, 0.0  ;;  %v1897_v24 = vmul.f32 0.01, %v1879_v8  ;;  %v8717_v25 = vpop.f32.mrb[27].mxu1  ;;  %v9114_v51 = vld [vmem:[#allocation17 + $0x38] sm:$0xff]   ;;  %v9117_v15 = vld [vmem:[#allocation17 + $0x140] sm:$0xff]  }
0x1943   : > { %v1914_v27 = vadd.f32 %v1913_v9, %v1912_v60  ;;  %v1926_v28 = vadd.f32 %v1925_v18, %v1924_v62  ;;  %v11258_v29 = vsel %vm1888_vm7, %v1838_v63, %v1895_v19  ;;  %vm1889_vm9 = vcmp.ge.f32.partialorder %v1840_v13, 0.0  ;;  %v11269_v63 = vld [vmem:[#allocation15] sm:$0x7f] }
0x1944   : > { %v1909_v31 = vrot.slane %v1908_v4, 1  ;;  %v1921_v32 = vrot.slane %v1920_v59, 1  ;;  %v1929_v33 = vrot.slane %v11258_v29, 4  ;;  %v11261_v34 = vsel %vm1890_vm8, %v1879_v8, %v1897_v24  ;;  %v9116_v8 = vld [vmem:[#allocation17 + $0xb8] sm:$0xff]   ;;  %8461 = vmatpush3.bf16.msra.mxu0 %v9114_v51 }
0x1945   : > { %v1915_v14 = vrot.slane %v1914_v27, 1  ;;  %v1927_v38 = vrot.slane %v1926_v28, 1  ;;  %v1941_v39 = vsel %vm937_vm0, %v11261_v34, 0.0  ;;  %v1896_v40 = vmul.f32 0.01, %v1840_v13  ;;  %8483 = vmatpush3.bf16.msra.mxu1 %v9116_v8  ;;  %8490 = vmatprep.subr.bf16.mxu0 %v9117_v15 }
0x1946   : > { %v1910_v41 = vadd.f32 %v1909_v31, %v1908_v4  ;;  %v1922_v42 = vadd.f32 %v1921_v32, %v1920_v59  ;;  %v1930_v43 = vadd.f32 %v1929_v33, %v11258_v29  ;;  %v1942_v44 = vrot.slane %v1941_v39, 4  ;;  %8730 = vmatprep.subr.bf16.mxu1 %v11189_v56 }
0x1947   : > { %v1916_v48 = vadd.f32 %v1915_v14, %v1914_v27  ;;  %v1928_v49 = vadd.f32 %v1927_v38, %v1926_v28  ;;  %v11267_v50 = vsel %vm1889_vm9, %v1840_v13, %v1896_v40 }
0x1948   : > { %v1949_v54 = vmul.f32 0.125, %v1910_v41  ;;  %v1951_v55 = vmul.f32 0.125, %v1922_v42  ;;  %v1931_v60 = vrot.slane %v1930_v43, 2  ;;  %v1943_v62 = vadd.f32 %v1942_v44, %v1941_v39 }
0x1949   : > { %v1950_v3 = vmul.f32 0.125, %v1916_v48  ;;  %v1952_v5 = vmul.f32 0.125, %v1928_v49  ;;  %v1935_v6 = vrot.slane %v11267_v50, 4 }
0x194a   : > { %v11273_v10 = vsub.f32 %v11237_v35, %v1949_v54  ;;  %v11276_v11 = vsub.f32 %v11239_v36, %v1951_v55  ;;  %v1932_v12 = vadd.f32 %v1931_v60, %v1930_v43  ;;  %v1944_v13 = vrot.slane %v1943_v62, 2 }
0x194b   : > { %v11279_v17 = vsub.f32 %v11248_v45, %v1950_v3  ;;  %v11282_v2 = vsub.f32 %v11250_v46, %v1952_v5  ;;  %v1936_v9 = vadd.f32 %v1935_v6, %v11267_v50  ;;  %v2078_v35 = vrot.slane %v11269_v63, %v11205_v61 }
0x194c   : > { %v1963_v36 = vmul.f32 %v11273_v10, %v11273_v10  ;;  %v1965_v18 = vmul.f32 %v11276_v11, %v11276_v11  ;;  %v1933_v19 = vrot.slane %v1932_v12, 1  ;;  %v1945_v20 = vadd.f32 %v1944_v13, %v1943_v62 }
0x194d   : > { %v1964_v45 = vmul.f32 %v11279_v17, %v11279_v17  ;;  %v1966_v46 = vmul.f32 %v11282_v2, %v11282_v2  ;;  %v1937_v4 = vrot.slane %v1936_v9, 2 }
0x194e   : > { %v1970_v59 = vrot.slane %v1963_v36, 4  ;;  %v1982_v24 = vrot.slane %v1965_v18, 4  ;;  %v1946_v25 = vrot.slane %v1945_v20, 1  ;;  %v2292_v56 = vpop.f32.mrb[28].mxu0  ;;  %v2333_v26 = vpop.f32.mrb[28].mxu1  ;;  %v1934_v28 = vadd.f32 %v1933_v19, %v1932_v12 }
0x194f   : > { %v1976_v27 = vrot.slane %v1964_v45, 4  ;;  %v2293_v1 = vadd.f32 %v2292_v56, %v2078_v35  ;;  %v2294_v30 = vpop.f32.mrb[29].mxu0  ;;  %v11296_v31 = vpop.f32.mrb[29].mxu1  ;;  %v1988_v32 = vrot.slane %v1966_v46, 4  ;;  %v1938_v39 = vadd.f32 %v1937_v4, %v1936_v9 }
0x1950   : > { %v2296_v33 = vpop.f32.mrb[30].mxu0  ;;  %v2337_v37 = vpop.f32.mrb[30].mxu1  ;;  %v1971_v14 = vadd.f32 %v1970_v59, %v1963_v36  ;;  %v1983_v38 = vadd.f32 %v1982_v24, %v1965_v18  ;;  %v1947_v42 = vadd.f32 %v1946_v25, %v1945_v20  ;;  %v1953_v44 = vmul.f32 0.125, %v1934_v28 }
0x1951   : > { %v2297_v40 = vpop.f32.mrb[31].mxu0  ;;  %v2338_v41 = vpop.f32.mrb[31].mxu1  ;;  %vm2421_vm10 = vcmp.ge.f32.partialorder %v2293_v1, 0.0  ;;  %v1977_v43 = vadd.f32 %v1976_v27, %v1964_v45  ;;  %v2428_v47 = vmul.f32 0.01, %v2293_v1  ;;  %v1989_v48 = vadd.f32 %v1988_v32, %v1966_v46 }
0x1952   : > { %v1972_v49 = vrot.slane %v1971_v14, 2  ;;  %v1984_v51 = vrot.slane %v1983_v38, 2  ;;  %v1939_v53 = vrot.slane %v1938_v39, 1  ;;  %v1955_v55 = vmul.f32 0.125, %v1947_v42 }
0x1953   : > { %v2435_v54 = vsel %vm2421_vm10, %v2293_v1, %v2428_v47  ;;  %v1978_v60 = vrot.slane %v1977_v43, 2  ;;  %v11299_v62 = vsub.f32 %v11258_v29, %v1953_v44  ;;  %v1990_v3 = vrot.slane %v1989_v48, 2 }
0x1954   : > { %v2442_v8 = vrot.slane %v2435_v54, 4  ;;  %v1973_v5 = vadd.f32 %v1972_v49, %v1971_v14  ;;  %v1985_v6 = vadd.f32 %v1984_v51, %v1983_v38  ;;  %v1940_v12 = vadd.f32 %v1939_v53, %v1938_v39 }
0x1955   : > { %v11302_v13 = vsub.f32 %v11261_v34, %v1955_v55  ;;  %v2086_v9 = vrot.slane %v11269_v63, %v11208_v57  ;;  %v1979_v35 = vadd.f32 %v1978_v60, %v1977_v43  ;;  %v1967_v36 = vmul.f32 %v11299_v62, %v11299_v62 }
0x1956   : > { %v2443_v15 = vadd.f32 %v2442_v8, %v2435_v54  ;;  %v2082_v29 = vrot.slane %v11269_v63, %v11213_v58  ;;  %v1991_v18 = vadd.f32 %v1990_v3, %v1989_v48  ;;  %v1974_v20 = vrot.slane %v1973_v5, 1 }
0x1957   : > { %v1986_v45 = vrot.slane %v1985_v6, 1  ;;  %v1954_v46 = vmul.f32 0.125, %v1940_v12  ;;  %v2090_v34 = vrot.slane %v11269_v63, %v11216_v0  ;;  %v1969_v4 = vmul.f32 %v11302_v13, %v11302_v13 }
0x1958   : > { %v2444_v19 = vrot.slane %v2443_v15, 2  ;;  %v2334_v24 = vadd.f32 %v2333_v26, %v2086_v9  ;;  %v2094_v25 = vrot.slane %v11269_v63, %v11227_v16  ;;  %v1980_v28 = vrot.slane %v1979_v35, 1 }
0x1959   : > { %v1994_v1 = vrot.slane %v1967_v36, 4  ;;  %v2295_v32 = vadd.f32 %v2294_v30, %v2082_v29  ;;  %v2102_v33 = vrot.slane %v11269_v63, %v11230_v22  ;;  %v1992_v38 = vrot.slane %v1991_v18, 1 }
0x195a   : > { %v2445_v59 = vadd.f32 %v2444_v19, %v2443_v15  ;;  %vm2423_vm11 = vcmp.ge.f32.partialorder %v2334_v24, 0.0  ;;  %v2098_v26 = vrot.slane %v11269_v63, %v11233_v23  ;;  %v1975_v42 = vadd.f32 %v1974_v20, %v1973_v5 }
0x195b   : > { %v1987_v43 = vadd.f32 %v1986_v45, %v1985_v6  ;;  %v11323_v44 = vsub.f32 %v11267_v50, %v1954_v46  ;;  %v2430_v30 = vmul.f32 0.01, %v2334_v24  ;;  %v2006_v49 = vsel %vm937_vm0, %v1969_v4, 0.0 }
0x195c   : > { %v2446_v39 = vrot.slane %v2445_v59, 1  ;;  %vm2422_vm12 = vcmp.ge.f32.partialorder %v2295_v32, 0.0  ;;  %v2429_v53 = vmul.f32 0.01, %v2295_v32  ;;  %v1981_v55 = vadd.f32 %v1980_v28, %v1979_v35 }
0x195d   : > { %v1995_v60 = vadd.f32 %v1994_v1, %v1967_v36  ;;  %v2437_v8 = vsel %vm2423_vm11, %v2334_v24, %v2430_v30  ;;  %v2336_v63 = vadd.f32 %v11296_v31, %v2090_v34  ;;  %v1993_v3 = vadd.f32 %v1992_v38, %v1991_v18 }
0x195e   : > { %v2374_v56 = vpop.f32.mrb[32].mxu0  ;;  %v2415_v27 = vpop.f32.mrb[32].mxu1  ;;  %v2447_v51 = vadd.f32 %v2446_v39, %v2445_v59  ;;  %v2454_v6 = vrot.slane %v2437_v8, 4  ;;  %v2436_v12 = vsel %vm2422_vm12, %v2295_v32, %v2429_v53  ;;  %v2007_v50 = vrot.slane %v2006_v49, 4 }
0x195f   : > { %v11318_v37 = vpop.f32.mrb[33].mxu0  ;;  %v8728_v14 = vpop.f32.mrb[33].mxu1  ;;  %v1968_v15 = vmul.f32 %v11323_v44, %v11323_v44  ;;  %v2448_v9 = vrot.slane %v2436_v12, 4  ;;  %vm2424_vm13 = vcmp.ge.f32.partialorder %v2336_v63, 0.0  ;;  %v2013_v29 = vmul.f32 0.125, %v1975_v42 }
0x1960   : > { %v2378_v40 = vpop.f32.mrb[34].mxu0  ;;  %v2418_v41 = vpop.f32.mrb[34].mxu1  ;;  %v2485_v5 = vmul.f32 0.125, %v2447_v51  ;;  %v2455_v20 = vadd.f32 %v2454_v6, %v2437_v8  ;;  %v2431_v35 = vmul.f32 0.01, %v2336_v63  ;;  %v2015_v36 = vmul.f32 0.125, %v1987_v43 }
0x1961   : > { %v2379_v47 = vpop.f32.mrb[35].mxu0  ;;  %v8729_v48 = vpop.f32.mrb[35].mxu1  ;;  %v2014_v45 = vmul.f32 0.125, %v1981_v55  ;;  %v1996_v46 = vrot.slane %v1995_v60, 2  ;;  %v2449_v4 = vadd.f32 %v2448_v9, %v2436_v12  ;;  %v2375_v59 = vadd.f32 %v2374_v56, %v2094_v25 }
0x1962   : > { %v11330_v19 = vsub.f32 %v2435_v54, %v2485_v5  ;;  %v2456_v18 = vrot.slane %v2455_v20, 2  ;;  %v11334_v34 = vsel %vm2424_vm13, %v2336_v63, %v2431_v35  ;;  %v2016_v24 = vmul.f32 0.125, %v1993_v3 }
0x1963   : > { %v11336_v28 = vadd.f32 %v2007_v50, %v2006_v49  ;;  %v2450_v1 = vrot.slane %v2449_v4, 2  ;;  %v2416_v32 = vadd.f32 %v2415_v27, %v2102_v33  ;;  %v2000_v54 = vrot.slane %v1968_v15, 4 }
0x1964   : > { %v2499_v31 = vmul.f32 %v11330_v19, %v11330_v19  ;;  %v2457_v38 = vadd.f32 %v2456_v18, %v2455_v20  ;;  %v2460_v39 = vrot.slane %v11334_v34, 4  ;;  %v2020_v40 = vadd.f32 1e-05, %v2013_v29 }
0x1965   : > { %v11339_v41 = vadd.f32 1e-05, %v2015_v36  ;;  %v11341_v42 = vadd.f32 %v1996_v46, %v1995_v60  ;;  %v2451_v43 = vadd.f32 %v2450_v1, %v2449_v4  ;;  %vm2425_vm14 = vcmp.ge.f32.partialorder %v2375_v59, 0.0 }
0x1966   : > { %v2506_v14 = vrot.slane %v2499_v31, 4  ;;  %v2458_v47 = vrot.slane %v2457_v38, 1  ;;  %v2461_v25 = vadd.f32 %v2460_v39, %v11334_v34  ;;  %v2432_v48 = vmul.f32 0.01, %v2375_v59 }
0x1967   : > { %v2452_v56 = vrot.slane %v2451_v43, 1  ;;  %vm2427_vm15 = vcmp.ge.f32.partialorder %v2416_v32, 0.0  ;;  %v2434_v27 = vmul.f32 0.01, %v2416_v32  ;;  %v2377_v53 = vadd.f32 %v11318_v37, %v2098_v26 }
0x1968   : > { %v2507_v30 = vadd.f32 %v2506_v14, %v2499_v31  ;;  %v2459_v49 = vadd.f32 %v2458_v47, %v2457_v38  ;;  %v2462_v51 = vrot.slane %v2461_v25, 2  ;;  %v11345_v55 = vadd.f32 1e-05, %v2014_v45 }
0x1969   : > { %v2453_v63 = vadd.f32 %v2452_v56, %v2451_v43  ;;  %v11347_v60 = vsel %vm2425_vm14, %v2375_v59, %v2432_v48  ;;  %v11349_v3 = vsel %vm2427_vm15, %v2416_v32, %v2434_v27  ;;  %v11352_v29 = vadd.f32 1e-05, %v2016_v24 }
0x196a   : > { %v2508_v33 = vrot.slane %v2507_v30, 2  ;;  %v2487_v6 = vmul.f32 0.125, %v2459_v49  ;;  %v2463_v50 = vadd.f32 %v2462_v51, %v2461_v25  ;;  %v2466_v9 = vrot.slane %v11347_v60, 4 }
0x196b   : > { %v2486_v20 = vmul.f32 0.125, %v2453_v63  ;;  %v2478_v35 = vsel %vm937_vm0, %v11349_v3, 0.0  ;;  %vm2426_vm3 = vcmp.ge.f32.partialorder %v2377_v53, 0.0  ;;  %v2009_v46 = vrot.slane %v11336_v28, 2 }
0x196c   : > { %v2509_v5 = vadd.f32 %v2508_v33, %v2507_v30  ;;  %v11356_v26 = vsub.f32 %v2437_v8, %v2487_v6  ;;  %v2464_v36 = vrot.slane %v2463_v50, 1  ;;  %v2467_v45 = vadd.f32 %v2466_v9, %v11347_v60 }
0x196d   : > { %v11360_v4 = vsub.f32 %v2436_v12, %v2486_v20  ;;  %v2479_v31 = vrot.slane %v2478_v35, 4  ;;  %v2433_v18 = vmul.f32 0.01, %v2377_v53  ;;  %v2001_v59 = vadd.f32 %v2000_v54, %v1968_v15 }
0x196e   : > { %v2510_v37 = vrot.slane %v2509_v5, 1  ;;  %v2501_v1 = vmul.f32 %v11356_v26, %v11356_v26  ;;  %v2465_v32 = vadd.f32 %v2464_v36, %v2463_v50  ;;  %v2468_v8 = vrot.slane %v2467_v45, 2 }
0x196f   : > { %v2500_v14 = vmul.f32 %v11360_v4, %v11360_v4  ;;  %v2480_v38 = vadd.f32 %v2479_v31, %v2478_v35  ;;  %v11367_v39 = vsel %vm2426_vm3, %v2377_v53, %v2433_v18  ;;  %9183 = vrsqrt.f32 %v2020_v40 }
0x1970   : > { %v2511_v24 = vadd.f32 %v2510_v37, %v2509_v5  ;;  %v2518_v12 = vrot.slane %v2501_v1, 4  ;;  %v2488_v30 = vmul.f32 0.125, %v2465_v32  ;;  %v2469_v25 = vadd.f32 %v2468_v8, %v2467_v45 }
0x1971   : > { %v2512_v47 = vrot.slane %v2500_v14, 4  ;;  %v2481_v15 = vrot.slane %v2480_v38, 2  ;;  %v2472_v54 = vrot.slane %v11367_v39, 4  ;;  %v1998_v56 = vrot.slane %v11341_v42, 1 }
0x1972   : > { %v2549_v43 = vmul.f32 0.125, %v2511_v24  ;;  %v2519_v27 = vadd.f32 %v2518_v12, %v2501_v1  ;;  %v11372_v33 = vsub.f32 %v11334_v34, %v2488_v30  ;;  %v2470_v51 = vrot.slane %v2469_v25, 1 }
0x1973   : > { %v2513_v49 = vadd.f32 %v2512_v47, %v2500_v14  ;;  %v2482_v53 = vadd.f32 %v2481_v15, %v2480_v38  ;;  %v2473_v40 = vadd.f32 %v2472_v54, %v11367_v39  ;;  %v2010_v63 = vadd.f32 %v2009_v46, %v11336_v28 }
0x1974   : > { %v2556_v48 = vadd.f32 1e-05, %v2549_v43  ;;  %v2520_v5 = vrot.slane %v2519_v27, 2  ;;  %v2502_v6 = vmul.f32 %v11372_v33, %v11372_v33  ;;  %v2471_v9 = vadd.f32 %v2470_v51, %v2469_v25 }
0x1975   : > { %v2514_v50 = vrot.slane %v2513_v49, 2  ;;  %v2483_v20 = vrot.slane %v2482_v53, 1  ;;  %v2474_v35 = vrot.slane %v2473_v40, 2  ;;  %v2002_v34 = vrot.slane %v2001_v59, 2 }
0x1976   : > { %9185 = vrsqrt.f32 %v2556_v48  ;;  %v2521_v37 = vadd.f32 %v2520_v5, %v2519_v27  ;;  %v2524_v36 = vrot.slane %v2502_v6, 4  ;;  %v2489_v31 = vmul.f32 0.125, %v2471_v9 }
0x1977   : > { %9187 = vrsqrt.f32 %v11339_v41  ;;  %v2515_v45 = vadd.f32 %v2514_v50, %v2513_v49  ;;  %v2484_v18 = vadd.f32 %v2483_v20, %v2482_v53  ;;  %v2475_v24 = vadd.f32 %v2474_v35, %v2473_v40 }
0x1978   : > { %v1999_v28 = vadd.f32 %v1998_v56, %v11341_v42  ;;  %v2011_v46 = vrot.slane %v2010_v63, 1  ;;  %v2522_v1 = vrot.slane %v2521_v37, 1  ;;  %v2525_v32 = vadd.f32 %v2524_v36, %v2502_v6 }
0x1979   : > { %v2516_v14 = vrot.slane %v2515_v45, 1  ;;  %v11381_v8 = vsub.f32 %v11347_v60, %v2489_v31  ;;  %v2491_v38 = vmul.f32 0.125, %v2484_v18  ;;  %v2476_v43 = vrot.slane %v2475_v24, 1  ;;  %v9184_v12 = vpop.eup %9183 }
0x197a   : > { %9189 = vrsqrt.f32 %v11345_v55  ;;  %v2003_v41 = vadd.f32 %v2002_v34, %v2001_v59  ;;  %v2523_v30 = vadd.f32 %v2522_v1, %v2521_v37  ;;  %v2526_v47 = vrot.slane %v2525_v32, 2 }
0x197b   : > { %v2517_v25 = vadd.f32 %v2516_v14, %v2515_v45  ;;  %v2503_v15 = vmul.f32 %v11381_v8, %v11381_v8  ;;  %v11387_v42 = vsub.f32 %v11349_v3, %v2491_v38  ;;  %v2477_v54 = vadd.f32 %v2476_v43, %v2475_v24 }
0x197c   : > { %v2017_v56 = vmul.f32 0.125, %v1999_v28  ;;  %v2012_v48 = vadd.f32 %v2011_v46, %v2010_v63  ;;  %v2551_v60 = vmul.f32 0.125, %v2523_v30  ;;  %v2527_v27 = vadd.f32 %v2526_v47, %v2525_v32 }
0x197d   : > { %v2550_v49 = vmul.f32 0.125, %v2517_v25  ;;  %v2530_v51 = vrot.slane %v2503_v15, 4  ;;  %v2505_v55 = vmul.f32 %v11387_v42, %v11387_v42  ;;  %v2490_v59 = vmul.f32 0.125, %v2477_v54 }
0x197e   : > { %v2034_v40 = vmul.f32 %v9184_v12, %v11273_v10  ;;  %v2004_v5 = vrot.slane %v2003_v41, 1  ;;  %v2558_v6 = vadd.f32 1e-05, %v2551_v60  ;;  %v2528_v50 = vrot.slane %v2527_v27, 1 }
0x197f   : > { %v2557_v9 = vadd.f32 1e-05, %v2550_v49  ;;  %v2531_v20 = vadd.f32 %v2530_v51, %v2503_v15  ;;  %v2542_v63 = vsel %vm937_vm0, %v2505_v55, 0.0  ;;  %v11395_v36 = vsub.f32 %v11367_v39, %v2490_v59 }
0x1980   : > { %v9186_v53 = vpop.eup %9185  ;;  %9191 = vrsqrt.f32 %v2558_v6  ;;  %v2529_v34 = vadd.f32 %v2528_v50, %v2527_v27  ;;  %v2543_v37 = vrot.slane %v2542_v63, 4  ;;  %v2019_v45 = vmul.f32 0.125, %v2012_v48 }
0x1981   : > { %v2570_v3 = vmul.f32 %v9186_v53, %v11330_v19  ;;  %v9188_v35 = vpop.eup %9187  ;;  %9193 = vrsqrt.f32 %v2557_v9  ;;  %v2532_v10 = vrot.slane %v2531_v20, 2  ;;  %v2005_v18 = vadd.f32 %v2004_v5, %v2003_v41 }
0x1982   : > { %v2552_v24 = vmul.f32 0.125, %v2529_v34  ;;  %v2544_v28 = vadd.f32 %v2543_v37, %v2542_v63  ;;  %v2504_v19 = vmul.f32 %v11395_v36, %v11395_v36  ;;  %9195 = vrsqrt.f32 %v11352_v29 }
0x1983   : > { %v2577_v31 = vmul.f32 %v2570_v3, %v2034_v40  ;;  %v2533_v1 = vadd.f32 %v2532_v10, %v2531_v20  ;;  %v2024_v39 = vadd.f32 1e-05, %v2017_v56  ;;  %v2026_v12 = vadd.f32 1e-05, %v2019_v45 }
0x1984   : > { %v9190_v32 = vpop.eup %9189  ;;  %v2559_v14 = vadd.f32 1e-05, %v2552_v24  ;;  %v2545_v38 = vrot.slane %v2544_v28, 2  ;;  %v2536_v43 = vrot.slane %v2504_v19, 4  ;;  %v2018_v25 = vmul.f32 0.125, %v2005_v18 }
0x1985   : > { %v2584_v46 = vrot.slane %v2577_v31, 4  ;;  %v2534_v47 = vrot.slane %v2533_v1, 1  ;;  %v2036_v40 = vmul.f32 %v9188_v35, %v11276_v11  ;;  %v2035_v3 = vmul.f32 %v9190_v32, %v11279_v17 }
0x1986   : > { %9197 = vrsqrt.f32 %v2559_v14  ;;  %v2546_v41 = vadd.f32 %v2545_v38, %v2544_v28  ;;  %v2537_v15 = vadd.f32 %v2536_v43, %v2504_v19  ;;  %v2025_v29 = vadd.f32 1e-05, %v2018_v25 }
0x1987   : > { %v2585_v30 = vadd.f32 %v2584_v46, %v2577_v31  ;;  %v2535_v54 = vadd.f32 %v2534_v47, %v2533_v1  ;;  %9199 = vrsqrt.f32 %v2024_v39 }
0x1988   : > { %v2547_v60 = vrot.slane %v2546_v41, 1  ;;  %v2538_v27 = vrot.slane %v2537_v15, 2  ;;  %9201 = vrsqrt.f32 %v2026_v12 }
0x1989   : > { %v2586_v48 = vrot.slane %v2585_v30, 2  ;;  %v2553_v49 = vmul.f32 0.125, %v2535_v54 }
0x198a   : > { %v9192_v55 = vpop.eup %9191  ;;  %v2548_v59 = vadd.f32 %v2547_v60, %v2546_v41  ;;  %v2539_v53 = vadd.f32 %v2538_v27, %v2537_v15 }
0x198b   : > { %v2587_v51 = vadd.f32 %v2586_v48, %v2585_v30  ;;  %v9194_v56 = vpop.eup %9193  ;;  %v2572_v5 = vmul.f32 %v9192_v55, %v11356_v26  ;;  %v2560_v6 = vadd.f32 1e-05, %v2553_v49 }
0x198c   : > { %v2571_v9 = vmul.f32 %v9194_v56, %v11360_v4  ;;  %v2555_v20 = vmul.f32 0.125, %v2548_v59  ;;  %v2540_v63 = vrot.slane %v2539_v53, 1  ;;  %v9196_v45 = vpop.eup %9195 }
0x198d   : > { %v2588_v50 = vrot.slane %v2587_v51, 1  ;;  %v2579_v34 = vmul.f32 %v2572_v5, %v2036_v40  ;;  %9203 = vrsqrt.f32 %v2560_v6  ;;  %v2037_v17 = vmul.f32 %v9196_v45, %v11282_v2 }
0x198e   : > { %v2562_v10 = vadd.f32 1e-05, %v2555_v20  ;;  %v2541_v18 = vadd.f32 %v2540_v63, %v2539_v53  ;;  %v2578_v24 = vmul.f32 %v2571_v9, %v2035_v3  ;;  %9205 = vrsqrt.f32 %v2025_v29 }
0x198f   : > { %v2589_v37 = vadd.f32 %v2588_v50, %v2587_v51  ;;  %v2596_v28 = vrot.slane %v2579_v34, 4 }
0x1990   : > { %v9198_v35 = vpop.eup %9197  ;;  %9207 = vrsqrt.f32 %v2562_v10  ;;  %v2554_v26 = vmul.f32 0.125, %v2541_v18  ;;  %v2590_v19 = vrot.slane %v2578_v24, 4 }
0x1991   : > { %v2627_v11 = vmul.f32 0.125, %v2589_v37  ;;  %v2597_v46 = vadd.f32 %v2596_v28, %v2579_v34  ;;  %v2573_v4 = vmul.f32 %v9198_v35, %v11372_v33  ;;  %v9200_v38 = vpop.eup %9199 }
0x1992   : > { %v2561_v32 = vadd.f32 1e-05, %v2554_v26  ;;  %v2591_v14 = vadd.f32 %v2590_v19, %v2578_v24  ;;  %v9202_v30 = vpop.eup %9201  ;;  %v2038_v60 = vmul.f32 %v9200_v38, %v11299_v62 }
0x1993   : > { %v11406_v1 = vsub.f32 %v2577_v31, %v2627_v11  ;;  %v2580_v43 = vmul.f32 %v2573_v4, %v2037_v17  ;;  %v2598_v12 = vrot.slane %v2597_v46, 2  ;;  %v2040_v56 = vmul.f32 %v9202_v30, %v11302_v13 }
0x1994   : > { %9209 = vrsqrt.f32 %v2561_v32  ;;  %v2592_v47 = vrot.slane %v2591_v14, 2 }
0x1995   : > { %v2641_v39 = vmul.f32 %v11406_v1, %v11406_v1  ;;  %v2602_v25 = vrot.slane %v2580_v43, 4  ;;  %v2599_v15 = vadd.f32 %v2598_v12, %v2597_v46 }
0x1996   : > { %v2593_v2 = vadd.f32 %v2592_v47, %v2591_v14 }
0x1997   : > { %v2648_v41 = vrot.slane %v2641_v39, 4  ;;  %v9204_v54 = vpop.eup %9203  ;;  %v2603_v48 = vadd.f32 %v2602_v25, %v2580_v43  ;;  %v2600_v31 = vrot.slane %v2599_v15, 1 }
0x1998   : > { %v2574_v27 = vmul.f32 %v9204_v54, %v11381_v8  ;;  %v2594_v49 = vrot.slane %v2593_v2, 1  ;;  %v9206_v51 = vpop.eup %9205 }
0x1999   : > { %v2649_v33 = vadd.f32 %v2648_v41, %v2641_v39  ;;  %v2604_v55 = vrot.slane %v2603_v48, 2  ;;  %v2601_v59 = vadd.f32 %v2600_v31, %v2599_v15  ;;  %v2039_v10 = vmul.f32 %v9206_v51, %v11323_v44 }
0x199a   : > { %v9208_v53 = vpop.eup %9207  ;;  %v2581_v40 = vmul.f32 %v2574_v27, %v2038_v60  ;;  %v2595_v5 = vadd.f32 %v2594_v49, %v2593_v2 }
0x199b   : > { %v2650_v29 = vrot.slane %v2649_v33, 2  ;;  %v2576_v6 = vmul.f32 %v9208_v53, %v11387_v42  ;;  %v2605_v50 = vadd.f32 %v2604_v55, %v2603_v48  ;;  %v2629_v9 = vmul.f32 0.125, %v2601_v59 }
0x199c   : > { %v2608_v20 = vrot.slane %v2581_v40, 4  ;;  %v2628_v63 = vmul.f32 0.125, %v2595_v5 }
0x199d   : > { %v2651_v3 = vadd.f32 %v2650_v29, %v2649_v33  ;;  %v2583_v62 = vmul.f32 %v2576_v6, %v2040_v56  ;;  %v2606_v37 = vrot.slane %v2605_v50, 1  ;;  %v11414_v8 = vsub.f32 %v2579_v34, %v2629_v9 }
0x199e   : > { %v9210_v45 = vpop.eup %9209  ;;  %v2609_v18 = vadd.f32 %v2608_v20, %v2581_v40  ;;  %v11417_v28 = vsub.f32 %v2578_v24, %v2628_v63 }
0x199f   : > { %v2620_v13 = vsel %vm937_vm0, %v2583_v62, 0.0  ;;  %v2575_v11 = vmul.f32 %v9210_v45, %v11395_v36  ;;  %v2607_v42 = vadd.f32 %v2606_v37, %v2605_v50  ;;  %v2652_v35 = vrot.slane %v2651_v3, 1 }
0x19a0   : > { %v2621_v26 = vrot.slane %v2620_v13, 4  ;;  %v2642_v19 = vmul.f32 %v11417_v28, %v11417_v28  ;;  %v2643_v34 = vmul.f32 %v11414_v8, %v11414_v8  ;;  %v2610_v17 = vrot.slane %v2609_v18, 2 }
0x19a1   : > { %v2630_v46 = vmul.f32 0.125, %v2607_v42  ;;  %v2582_v4 = vmul.f32 %v2575_v11, %v2039_v10  ;;  %v2653_v39 = vadd.f32 %v2652_v35, %v2651_v3 }
0x19a2   : > { %v2622_v44 = vadd.f32 %v2621_v26, %v2620_v13  ;;  %v2654_v32 = vrot.slane %v2642_v19, 4  ;;  %v2660_v24 = vrot.slane %v2643_v34, 4  ;;  %v2611_v14 = vadd.f32 %v2610_v17, %v2609_v18 }
0x19a3   : > { %v11425_v38 = vsub.f32 %v2580_v43, %v2630_v46  ;;  %v2614_v36 = vrot.slane %v2582_v4, 4  ;;  %v2691_v60 = vmul.f32 0.125, %v2653_v39 }
0x19a4   : > { %v2623_v12 = vrot.slane %v2622_v44, 2  ;;  %v2655_v30 = vadd.f32 %v2654_v32, %v2642_v19  ;;  %v2661_v47 = vadd.f32 %v2660_v24, %v2643_v34  ;;  %v2612_v25 = vrot.slane %v2611_v14, 1 }
0x19a5   : > { %v2644_v41 = vmul.f32 %v11425_v38, %v11425_v38  ;;  %v2615_v15 = vadd.f32 %v2614_v36, %v2582_v4  ;;  %v2698_v3 = vadd.f32 1e-05, %v2691_v60 }
0x19a6   : > { %v2624_v2 = vadd.f32 %v2623_v12, %v2622_v44  ;;  %v2656_v54 = vrot.slane %v2655_v30, 2  ;;  %v2662_v48 = vrot.slane %v2661_v47, 2  ;;  %v2613_v33 = vadd.f32 %v2612_v25, %v2611_v14 }
0x19a7   : > { %v2666_v31 = vrot.slane %v2644_v41, 4  ;;  %v2616_v27 = vrot.slane %v2615_v15, 2  ;;  %9211 = vrsqrt.f32 %v2698_v3 }
0x19a8   : > { %v2625_v49 = vrot.slane %v2624_v2, 1  ;;  %v2657_v43 = vadd.f32 %v2656_v54, %v2655_v30  ;;  %v2663_v51 = vadd.f32 %v2662_v48, %v2661_v47  ;;  %v2631_v55 = vmul.f32 0.125, %v2613_v33 }
0x19a9   : > { %v2667_v29 = vadd.f32 %v2666_v31, %v2644_v41  ;;  %v2617_v59 = vadd.f32 %v2616_v27, %v2615_v15 }
0x19aa   : > { %v2626_v53 = vadd.f32 %v2625_v49, %v2624_v2  ;;  %v2658_v56 = vrot.slane %v2657_v43, 1  ;;  %v2664_v5 = vrot.slane %v2663_v51, 1  ;;  %v11429_v6 = vsub.f32 %v2581_v40, %v2631_v55 }
0x19ab   : > { %v2668_v50 = vrot.slane %v2667_v29, 2  ;;  %v2618_v9 = vrot.slane %v2617_v59, 1 }
0x19ac   : > { %v2633_v20 = vmul.f32 0.125, %v2626_v53  ;;  %v2659_v63 = vadd.f32 %v2658_v56, %v2657_v43  ;;  %v2665_v37 = vadd.f32 %v2664_v5, %v2663_v51  ;;  %v2645_v45 = vmul.f32 %v11429_v6, %v11429_v6 }
0x19ad   : > { %v2669_v10 = vadd.f32 %v2668_v50, %v2667_v29  ;;  %v2619_v18 = vadd.f32 %v2618_v9, %v2617_v59  ;;  %v9118_v59 = vld [vmem:[#allocation17 + $0x100] sm:$0xff]   ;;  %v9119_v50 = vld [vmem:[#allocation17 + $0x148] sm:$0xff]  }
0x19ae   : > { %v11433_v13 = vsub.f32 %v2583_v62, %v2633_v20  ;;  %v2692_v11 = vmul.f32 0.125, %v2659_v63  ;;  %v2693_v42 = vmul.f32 0.125, %v2665_v37  ;;  %v2672_v40 = vrot.slane %v2645_v45, 4 }
0x19af   : > { %v2670_v35 = vrot.slane %v2669_v10, 1  ;;  %v2632_v26 = vmul.f32 0.125, %v2619_v18  ;;  %v9121_v18 = vld [vmem:[#allocation17 + $0x150] sm:$0xff]  }
0x19b0   : > { %v2647_v19 = vmul.f32 %v11433_v13, %v11433_v13  ;;  %v2699_v34 = vadd.f32 1e-05, %v2692_v11  ;;  %v2700_v17 = vadd.f32 1e-05, %v2693_v42  ;;  %v2673_v39 = vadd.f32 %v2672_v40, %v2645_v45  ;;  %v9124_v11 = vld [vmem:[#allocation17 + $0x180] sm:$0xff]  }
0x19b1   : > { %v2671_v46 = vadd.f32 %v2670_v35, %v2669_v10  ;;  %v11437_v44 = vsub.f32 %v2582_v4, %v2632_v26  ;;  %v9212_v15 = vpop.eup %9211  ;;  %v3348_v35 = vld [vmem:[#allocation20] sm:$0xff] }
0x19b2   : > { %v2684_v32 = vsel %vm937_vm0, %v2647_v19, 0.0  ;;  %9213 = vrsqrt.f32 %v2699_v34  ;;  %v2674_v41 = vrot.slane %v2673_v39, 2  ;;  %v2712_v60 = vmul.f32 %v9212_v15, %v11406_v1  ;;  %v3352_v26 = vld [vmem:[#allocation20 + $0x20] sm:$0xff]  ;;  %v9127_v19 = vld [vmem:[#allocation17 + $0x188] sm:$0xff]  }
0x19b3   : > { %v2685_v24 = vrot.slane %v2684_v32, 4  ;;  %v2694_v62 = vmul.f32 0.125, %v2671_v46  ;;  %v2646_v14 = vmul.f32 %v11437_v44, %v11437_v44  ;;  %9215 = vrsqrt.f32 %v2700_v17  ;;  %v9268_v34 = vld [vmem:[#allocation30] sm:$0xff]  ;;  %v9129_v15 = vld [vmem:[#allocation17 + $0x168] sm:$0xff]  }
0x19b4   : > { %v2675_v33 = vadd.f32 %v2674_v41, %v2673_v39  ;;  %v2719_v5 = vpack.c.bf16 %v2712_v60, %v2712_v60  ;;  %v7970_v17 = vcombine.high %v3348_v35, %v3352_v26  ;;  %v9125_v46 = vld [vmem:[#allocation17 + $0x118] sm:$0xff]  }
0x19b5   : > { %v2686_v36 = vadd.f32 %v2685_v24, %v2684_v32  ;;  %v2701_v12 = vadd.f32 1e-05, %v2694_v62  ;;  %v2678_v30 = vrot.slane %v2646_v14, 4  ;;  %v9126_v24 = vld [vmem:[#allocation17 + $0x160] sm:$0xff]   ;;  %v3356_v39 = vld [vmem:[#allocation20 + $0x40] sm:$0xff] }
0x19b6   : > { %v2676_v56 = vrot.slane %v2675_v33, 1 }
0x19b7   : > { %v2687_v47 = vrot.slane %v2686_v36, 2  ;;  %9217 = vrsqrt.f32 %v2701_v12  ;;  %v2679_v25 = vadd.f32 %v2678_v30, %v2646_v14  ;;  %v9128_v30 = vld [vmem:[#allocation17 + $0x120] sm:$0xff]  }
0x19b8   : > { %v2677_v45 = vadd.f32 %v2676_v56, %v2675_v33  ;;  %v3350_v56 = vld [vmem:[#allocation20 + $0x10] sm:$0xff] }
0x19b9   : > { %v2688_v4 = vadd.f32 %v2687_v47, %v2686_v36  ;;  %v2680_v2 = vrot.slane %v2679_v25, 2  ;;  %v3360_v36 = vld [vmem:[#allocation20 + $0x60] sm:$0xff]  ;;  %v7969_v47 = vcombine.low %v3348_v35, %v3352_v26 }
0x19ba   : > { %v2695_v40 = vmul.f32 0.125, %v2677_v45  ;;  %v7977_v33 = vcombine.low %v3356_v39, %v3360_v36  ;;  %v3362_v45 = vld [vmem:[#allocation20 + $0x70] sm:$0xff] }
0x19bb   : > { %v2689_v54 = vrot.slane %v2688_v4, 1  ;;  %v2681_v48 = vadd.f32 %v2680_v2, %v2679_v25  ;;  %v3349_v2 = vld [vmem:[#allocation20 + $0x8] sm:$0xff] }
0x19bc   : > { %v9214_v31 = vpop.eup %9213  ;;  %v2702_v32 = vadd.f32 1e-05, %v2695_v40 }
0x19bd   : > { %v2690_v27 = vadd.f32 %v2689_v54, %v2688_v4  ;;  %v2713_v49 = vmul.f32 %v9214_v31, %v11417_v28  ;;  %v2682_v43 = vrot.slane %v2681_v48, 1  ;;  %v9216_v51 = vpop.eup %9215  ;;  %v9120_v28 = vld [vmem:[#allocation17 + $0x108] sm:$0xff]   ;;  %v7978_v4 = vcombine.high %v3356_v39, %v3360_v36  ;;  %v3353_v54 = vld [vmem:[#allocation20 + $0x28] sm:$0xff]  ;;  %v9131_v31 = vld [vmem:[#allocation17 + $0x170] sm:$0xff]  }
0x19be   : > { %v2714_v20 = vmul.f32 %v9216_v51, %v11414_v8  ;;  %v9122_v8 = vld [vmem:[#allocation17 + $0x110] sm:$0xff]   ;;  %v7972_v60 = vcombine.high %v3349_v2, %v3353_v54  ;;  %v9133_v51 = vld [vmem:[#allocation17 + $0x178] sm:$0xff]  }
0x19bf   : > { %v2697_v55 = vmul.f32 0.125, %v2690_v27  ;;  %v2720_v29 = vpack.c.bf16 %v2713_v49, %v2713_v49  ;;  %v2683_v53 = vadd.f32 %v2682_v43, %v2681_v48  ;;  %v3361_v27 = vld [vmem:[#allocation20 + $0x68] sm:$0xff]  ;;  %v9132_v49 = vld [vmem:[#allocation17 + $0x130] sm:$0xff]   ;;  %v7971_v43 = vcombine.low %v3349_v2, %v3353_v54 }
0x19c0   : > { %v2721_v42 = vpack.c.bf16 %v2714_v20, %v2714_v20 }
0x19c1   : > { %v9218_v3 = vpop.eup %9217  ;;  %v2704_v9 = vadd.f32 1e-05, %v2697_v55  ;;  %3168 = vmatprep.mubr.bf16.mxu0 %v2720_v29  ;;  %v2696_v63 = vmul.f32 0.125, %v2683_v53  ;;  %v3351_v29 = vld [vmem:[#allocation20 + $0x18] sm:$0xff] }
0x19c2   : > { %v2715_v1 = vmul.f32 %v9218_v3, %v11425_v38  ;;  %3169 = vmatmul.mubr.bf16.vlgmr.msra.gmra.mrb[36].mxu0 %v2719_v5  ;;  %v9123_v38 = vld [vmem:[#allocation17 + $0x158] sm:$0xff]   ;;  %v3355_v53 = vld [vmem:[#allocation20 + $0x38] sm:$0xff]  ;;  %v3354_v5 = vld [vmem:[#allocation20 + $0x30] sm:$0xff] }
0x19c3   : > { %9219 = vrsqrt.f32 %v2704_v9  ;;  %8491 = vmatpush3.bf16.msra.mxu0 %v9118_v59  ;;  %v2703_v37 = vadd.f32 1e-05, %v2696_v63  ;;  %v7976_v20 = vcombine.high %v3351_v29, %v3355_v53  ;;  %v7974_v63 = vcombine.high %v3350_v56, %v3354_v5 }
0x19c4   : > { %v2722_v10 = vpack.c.bf16 %v2715_v1, %v2715_v1  ;;  %8492 = vmatprep.subr.bf16.mxu0 %v9119_v50  ;;  %v9134_v50 = vld [vmem:[#allocation17 + $0x138] sm:$0xff]   ;;  %v3359_v1 = vld [vmem:[#allocation20 + $0x58] sm:$0xff] }
0x19c5   : > { %9221 = vrsqrt.f32 %v2703_v37  ;;  %v3358_v37 = vld [vmem:[#allocation20 + $0x50] sm:$0xff] }
0x19c6   : > { %3208 = vmatprep.mubr.bf16.mxu1 %v2722_v10  ;;  %9223 = vrsqrt.f32 %v2702_v32  ;;  %v7975_v10 = vcombine.low %v3351_v29, %v3355_v53  ;;  %v7982_v35 = vcombine.high %v3358_v37, %v3362_v45  ;;  %v7981_v26 = vcombine.low %v3358_v37, %v3362_v45 }
0x19c7   : > { %3209 = vmatmul.mubr.bf16.vlgmr.msra.gmra.mrb[36].mxu1 %v2721_v42  ;;  %8493 = vmatpush3.bf16.msra.mxu0 %v9120_v28  ;;  %v3363_v28 = vld [vmem:[#allocation20 + $0x78] sm:$0xff] }
0x19c8   : > { %8494 = vmatprep.subr.bf16.mxu0 %v9121_v18  ;;  %8731 = vmatpush3.bf16.msra.mxu1 %v9124_v11  ;;  %v7973_v18 = vcombine.low %v3350_v56, %v3354_v5  ;;  %v7984_v42 = vcombine.high %v3359_v1, %v3363_v28 }
0x19c9   : > { %8732 = vmatprep.subr.bf16.mxu1 %v9268_v34  ;;  %8734 = vmatprep.mubr.msk.bf16.mxu1 %vm10408_vm1, %v9268_v34  ;;  %vm3692_vm1 = vcmask 850944  }
0x19cb   : > { %8495 = vmatpush3.bf16.msra.mxu0 %v9122_v8 }
0x19cc   : > { %8496 = vmatprep.subr.bf16.mxu0 %v9123_v38  ;;  %8733 = vmatpush3.bf16.msra.mxu1 %v9127_v19  ;;  %v7917_v38 = vld [vmem:[#allocation18] ss:$0 sm:$0xff] }
0x19cd   : > { %v9220_v62 = vpop.eup %9219  ;;  %3486 = vmatprep.subr.bf16.mxu1 %v7970_v17 }
0x19ce   : > { %v2718_v14 = vmul.f32 %v9220_v62, %v11433_v13  ;;  %v9130_v13 = vld [vmem:[#allocation17 + $0x128] sm:$0xff]  }
0x19cf   : > { %v9222_v12 = vpop.eup %9221  ;;  %8497 = vmatpush3.bf16.msra.mxu0 %v9125_v46 }
0x19d0   : > { %8498 = vmatprep.subr.bf16.mxu0 %v9126_v24  ;;  %v2717_v25 = vmul.f32 %v9222_v12, %v11437_v44  ;;  %v2725_v41 = vpack.c.bf16 %v2718_v14, %v2718_v14  ;;  %v3357_v44 = vld [vmem:[#allocation20 + $0x48] sm:$0xff]  ;;  %v9224_v59 = vpop.eup %9223 }
0x19d1   : > { %v7980_v55 = vcombine.high %v3357_v44, %v3361_v27  ;;  %v7979_v3 = vcombine.low %v3357_v44, %v3361_v27  ;;  %v2716_v9 = vmul.f32 %v9224_v59, %v11429_v6  ;;  %v7983_v6 = vcombine.low %v3359_v1, %v3363_v28 }
0x19d2   : > { %v2724_v48 = vpack.c.bf16 %v2717_v25, %v2717_v25  ;;  %8735 = vmatmul.mubr.msk.bf16.vlgmr.msra.gmra.mrb[40].mxu1 %vm937_vm0, %v2725_v41 }
0x19d3   : > { %8499 = vmatpush3.bf16.msra.mxu0 %v9128_v30  ;;  %3487 = vmatpush1.bf16.msra.mxu1 %v7969_v47  ;;  %v2723_v11 = vpack.c.bf16 %v2716_v9, %v2716_v9 }
0x19d4   : > { %3248 = vmatprep.mubr.bf16.mxu0 %v2724_v48  ;;  %8500 = vmatprep.subr.bf16.mxu0 %v9129_v15 }
0x19d5   : > { %3488 = vmatprep.subr.bf16.mxu1 %v7978_v4  ;;  %3518 = vmatprep.mubr.bf16.mxu1 %v10409_v7 }
0x19d7   : > { %8501 = vmatpush3.bf16.msra.mxu0 %v9130_v13  ;;  %3489 = vmatpush1.bf16.msra.mxu1 %v7977_v33 }
0x19d8   : > { %8502 = vmatprep.subr.bf16.mxu0 %v9131_v31  ;;  %3527 = vmatprep.subr.bf16.mxu1 %v7972_v60 }
0x19da   : > { %7985 = vmatmul.mubr.msk.bf16.vlgmr.msra.gmra.mrb[44].mxu1 %vm937_vm0, %v11173_v21 }
0x19db   : > { %8503 = vmatpush3.bf16.msra.mxu0 %v9132_v49  ;;  %3528 = vmatpush1.bf16.msra.mxu1 %v7971_v43 }
0x19dc   : > { %8504 = vmatprep.subr.bf16.mxu0 %v9133_v51  ;;  %3529 = vmatprep.subr.bf16.mxu1 %v7980_v55 }
0x19dd   : > { %3559 = vmatprep.mubr.bf16.mxu1 %v10409_v7 }
0x19df   : > { %8505 = vmatpush3.bf16.msra.mxu0 %v9134_v50  ;;  %3530 = vmatpush1.bf16.msra.mxu1 %v7979_v3 }
0x19e0   : > { %3609 = vmatprep.subr.bf16.mxu0 %v7976_v20  ;;  %3568 = vmatprep.subr.bf16.mxu1 %v7974_v63 }
0x19e2   : > { %3249 = vmatmul.mubr.bf16.vlgmr.msra.gmra.mrb[40].mxu0 %v2723_v11  ;;  %7986 = vmatmul.mubr.msk.bf16.vlgmr.msra.gmra.mrb[48].mxu1 %vm937_vm0, %v11173_v21 }
0x19e3   : > { %3610 = vmatpush1.bf16.msra.mxu0 %v7975_v10  ;;  %3569 = vmatpush1.bf16.msra.mxu1 %v7973_v18 }
0x19e4   : > { %3611 = vmatprep.subr.bf16.mxu0 %v7984_v42  ;;  %3570 = vmatprep.subr.bf16.mxu1 %v7982_v35 }
0x19e5   : > { %3641 = vmatprep.mubr.bf16.mxu0 %v10409_v7  ;;  %3600 = vmatprep.mubr.bf16.mxu1 %v10409_v7 }
0x19e7   : > { %3612 = vmatpush1.bf16.msra.mxu0 %v7983_v6  ;;  %3571 = vmatpush1.bf16.msra.mxu1 %v7981_v26 }
0x19ea   : > { %7988 = vmatmul.mubr.msk.bf16.vlgmr.msra.gmra.mrb[44].mxu0 %vm937_vm0, %v11173_v21  ;;  %7987 = vmatmul.mubr.msk.bf16.vlgmr.msra.gmra.mrb[52].mxu1 %vm937_vm0, %v11173_v21  ;;  %vm3326_vm0 = vcmask 1048064  }
0x19eb   : > { %4075 = vmatprep.mubr.bf16.mxu1 %v10409_v7  ;;  %4116 = vmatprep.mubr.bf16.mxu0 %v10409_v7 }
0x1a95   : > { %v8462_v8 = vpop.f32.mrb[36].mxu0 }
0x1a96   : > { %v8463_v40 = vpop.f32.mrb[37].mxu0 }
0x1a97   : > { %v8464_v19 = vadd.f32 %v8463_v40, %v8462_v8  ;;  %v8465_v34 = vpop.f32.mrb[38].mxu0 }
0x1a98   : > { %v8466_v17 = vpop.f32.mrb[39].mxu0 }
0x1a99   : > { %v3171_v32 = vadd.f32 %v8464_v19, %v7917_v38 }
0x1a9a   : > { %v8484_v46 = vpop.f32.mrb[36].mxu1 }
0x1a9b   : > { %v8485_v24 = vpop.f32.mrb[37].mxu1 }
0x1a9c   : > { %v8486_v62 = vadd.f32 %v8485_v24, %v8484_v46  ;;  %v8487_v14 = vpop.f32.mrb[38].mxu1 }
0x1a9d   : > { %v8488_v39 = vpop.f32.mrb[39].mxu1 }
0x1a9e   : > { %v3211_v36 = vadd.f32 %v8486_v62, %v3171_v32 }
0x1aa5   : > { %v3290_v12 = vpop.f32.mrb[40].mxu1 }
0x1aa6   : > { %v8736_v30 = vpop.f32.mrb[41].mxu1 }
0x1aa7   : > { %v3293_v21 = vpop.f32.mrb[42].mxu1 }
0x1aa8   : > { %v8737_v47 = vpop.f32.mrb[43].mxu1 }
0x1aad   : > { %v11465_v25 = vpop.f32.mrb[44].mxu1 }
0x1aae   : > { %v11467_v41 = vpop.f32.mrb[45].mxu1 }
0x1aaf   : > { %v3524_v15 = vpop.f32.mrb[46].mxu1 }
0x1ab0   : > { %v3525_v4 = vpop.f32.mrb[47].mxu1  ;;  %v3806_v15 = vld [vmem:[#allocation23] sm:$0xff] }
0x1ab1   : > { %v3810_v4 = vld [vmem:[#allocation23 + $0x20] sm:$0xff] }
0x1ab5   : > { %v8506_v2 = vpop.f32.mrb[40].mxu0  ;;  %v11469_v54 = vpop.f32.mrb[48].mxu1 }
0x1ab6   : > { %v8507_v48 = vpop.f32.mrb[41].mxu0  ;;  %v11471_v13 = vpop.f32.mrb[49].mxu1 }
0x1ab7   : > { %v8508_v33 = vadd.f32 %v8507_v48, %v8506_v2  ;;  %v8509_v31 = vpop.f32.mrb[42].mxu0  ;;  %v3565_v60 = vpop.f32.mrb[50].mxu1  ;;  %v3807_v2 = vld [vmem:[#allocation23 + $0x8] sm:$0xff]  ;;  %v7989_v48 = vcombine.low %v3806_v15, %v3810_v4 }
0x1ab8   : > { %v8510_v44 = vpop.f32.mrb[43].mxu0  ;;  %v3566_v27 = vpop.f32.mrb[51].mxu1  ;;  %v3811_v31 = vld [vmem:[#allocation23 + $0x28] sm:$0xff]  ;;  %v3814_v60 = vld [vmem:[#allocation23 + $0x40] sm:$0xff] }
0x1ab9   : > { %v3251_v49 = vadd.f32 %v8508_v33, %v3211_v36  ;;  %v7990_v33 = vcombine.high %v3806_v15, %v3810_v4  ;;  %v3818_v44 = vld [vmem:[#allocation23 + $0x60] sm:$0xff]  ;;  %v7991_v27 = vcombine.low %v3807_v2, %v3811_v31 }
0x1abb   : > { %v3291_v43 = vadd.f32 %v3290_v12, %v3251_v49  ;;  %v7992_v49 = vcombine.high %v3807_v2, %v3811_v31  ;;  %4043 = vmatprep.subr.bf16.mxu1 %v7990_v33  ;;  %v3820_v33 = vld [vmem:[#allocation23 + $0x70] sm:$0xff]  ;;  %v3817_v31 = vld [vmem:[#allocation23 + $0x58] sm:$0xff] }
0x1abc   : > { %4044 = vmatpush1.bf16.msra.mxu1 %v7989_v48  ;;  %v3816_v48 = vld [vmem:[#allocation23 + $0x50] sm:$0xff] }
0x1abd   : > { %v3296_v51 = vrot.slane %v3291_v43, 4  ;;  %v11473_v55 = vpop.f32.mrb[44].mxu0  ;;  %v11475_v29 = vpop.f32.mrb[52].mxu1  ;;  %4084 = vmatprep.subr.bf16.mxu0 %v7992_v49 }
0x1abe   : > { %v11477_v59 = vpop.f32.mrb[45].mxu0  ;;  %v11479_v53 = vpop.f32.mrb[53].mxu1  ;;  %4085 = vmatpush1.bf16.msra.mxu0 %v7991_v27 }
0x1abf   : > { %v3297_v56 = vadd.f32 %v3296_v51, %v3291_v43  ;;  %v3647_v5 = vpop.f32.mrb[46].mxu0  ;;  %v3606_v50 = vpop.f32.mrb[54].mxu1  ;;  %v3815_v51 = vld [vmem:[#allocation23 + $0x48] sm:$0xff] }
0x1ac0   : > { %v3648_v3 = vpop.f32.mrb[47].mxu0  ;;  %v3607_v9 = vpop.f32.mrb[55].mxu1  ;;  %v3822_v5 = vld [vmem:[#allocation23 + $0x80] sm:$0xff] }
0x1ac1   : > { %v3298_v20 = vrot.slane %v3297_v56, 2  ;;  %v3826_v3 = vld [vmem:[#allocation23 + $0xa0] sm:$0xff]  ;;  %v3823_v9 = vld [vmem:[#allocation23 + $0x88] sm:$0xff] }
0x1ac3   : > { %v3299_v63 = vadd.f32 %v3298_v20, %v3297_v56  ;;  %v3819_v56 = vld [vmem:[#allocation23 + $0x68] sm:$0xff] }
0x1ac4   : > { %v8000_v50 = vcombine.high %v3815_v51, %v3819_v56  ;;  %v3827_v20 = vld [vmem:[#allocation23 + $0xa8] sm:$0xff] }
0x1ac5   : > { %v3300_v1 = vrot.slane %v3299_v63, 1 }
0x1ac6   : > { %4086 = vmatprep.subr.bf16.mxu0 %v8000_v50  ;;  %v3829_v50 = vld [vmem:[#allocation23 + $0xb8] sm:$0xff] }
0x1ac7   : > { %v3301_v28 = vadd.f32 %v3300_v1, %v3299_v63  ;;  %v7997_v63 = vcombine.low %v3814_v60, %v3818_v44  ;;  %v7999_v1 = vcombine.low %v3815_v51, %v3819_v56  ;;  %v3824_v56 = vld [vmem:[#allocation23 + $0x90] sm:$0xff] }
0x1ac9   : > { %v3302_v37 = vmul.f32 0.125, %v3301_v28  ;;  %v8006_v28 = vcombine.high %v3822_v5, %v3826_v3  ;;  %4087 = vmatpush1.bf16.msra.mxu0 %v7999_v1  ;;  %v3836_v1 = vld [vmem:[#allocation23 + $0xf0] sm:$0xff] }
0x1acb   : > { %v3303_v45 = vsub.f32 %v3291_v43, %v3302_v37  ;;  %v7998_v43 = vcombine.high %v3814_v60, %v3818_v44  ;;  %v8008_v37 = vcombine.high %v3823_v9, %v3827_v20  ;;  %v3821_v60 = vld [vmem:[#allocation23 + $0x78] sm:$0xff] }
0x1acc   : > { %v9269_v44 = vld [vmem:[#allocation9] sm:$0xff]  ;;  %v8004_v51 = vcombine.high %v3817_v31, %v3821_v60 }
0x1acd   : > { %v3304_v10 = vmul.f32 %v3303_v45, %v3303_v45  ;;  %4045 = vmatprep.subr.bf16.mxu1 %v7998_v43  ;;  %4088 = vmatprep.subr.bf16.mxu0 %v8008_v37  ;;  %v8002_v43 = vcombine.high %v3816_v48, %v3820_v33  ;;  %v3837_v37 = vld [vmem:[#allocation23 + $0xf8] sm:$0xff] }
0x1ace   : > { %4046 = vmatpush1.bf16.msra.mxu1 %v7997_v63  ;;  %v3832_v63 = vld [vmem:[#allocation23 + $0xd0] sm:$0xff] }
0x1acf   : > { %v3305_v18 = vrot.slane %v3304_v10, 4  ;;  %4047 = vmatprep.subr.bf16.mxu1 %v8006_v28  ;;  %v3833_v28 = vld [vmem:[#allocation23 + $0xd8] sm:$0xff] }
0x1ad1   : > { %v3306_v11 = vadd.f32 %v3305_v18, %v3304_v10  ;;  %v8007_v10 = vcombine.low %v3823_v9, %v3827_v20 }
0x1ad3   : > { %v3307_v42 = vrot.slane %v3306_v11, 2  ;;  %4089 = vmatpush1.bf16.msra.mxu0 %v8007_v10 }
0x1ad5   : > { %v3308_v35 = vadd.f32 %v3307_v42, %v3306_v11  ;;  %v3830_v11 = vld [vmem:[#allocation23 + $0xc0] sm:$0xff] }
0x1ad6   : > { %v3834_v42 = vld [vmem:[#allocation23 + $0xe0] sm:$0xff] }
0x1ad7   : > { %v3309_v6 = vrot.slane %v3308_v35, 1 }
0x1ad9   : > { %v3310_v26 = vadd.f32 %v3309_v6, %v3308_v35  ;;  %v3831_v35 = vld [vmem:[#allocation23 + $0xc8] sm:$0xff]  ;;  %v8013_v6 = vcombine.low %v3830_v11, %v3834_v42 }
0x1adb   : > { %v3311_v8 = vmul.f32 0.125, %v3310_v26  ;;  %v8014_v26 = vcombine.high %v3830_v11, %v3834_v42  ;;  %v8020_v11 = vcombine.high %v3833_v28, %v3837_v37  ;;  %v8017_v42 = vcombine.low %v3832_v63, %v3836_v1 }
0x1add   : > { %v3312_v40 = vadd.f32 1e-05, %v3311_v8  ;;  %v3835_v8 = vld [vmem:[#allocation23 + $0xe8] sm:$0xff] }
0x1adf   : > { %9225 = vrsqrt.f32 %v3312_v40  ;;  %v3808_v40 = vld [vmem:[#allocation23 + $0x10] sm:$0xff] }
0x1ae9   : > { %v9226_v38 = vpop.eup %9225 }
0x1aea   : > { %v3314_v19 = vmul.f32 %v9226_v38, %v3303_v45  ;;  %v8005_v45 = vcombine.low %v3822_v5, %v3826_v3  ;;  %v3812_v38 = vld [vmem:[#allocation23 + $0x30] sm:$0xff]  ;;  %v3825_v5 = vld [vmem:[#allocation23 + $0x98] sm:$0xff]  ;;  %v8003_v3 = vcombine.low %v3817_v31, %v3821_v60 }
0x1aeb   : > { %v8012_v20 = vcombine.high %v3825_v5, %v3829_v50  ;;  %v8011_v10 = vcombine.low %v3825_v5, %v3829_v50 }
0x1aec   : > { %v3327_v34 = vsel %vm3326_vm0, %v3314_v19, -inf  ;;  %v3315_v62 = vsel %vm2254_vm2, %v3314_v19, -inf  ;;  %4048 = vmatpush1.bf16.msra.mxu1 %v8005_v45 }
0x1aed   : > { %3328 = vmax.xlane.f32.xlu0 %v3327_v34  ;;  %v8016_v34 = vcombine.high %v3831_v35, %v3835_v8  ;;  %4049 = vmatprep.subr.bf16.mxu1 %v8014_v26 }
0x1aef   : > { %4090 = vmatprep.subr.bf16.mxu0 %v8016_v34 }
0x1af0   : > { %4050 = vmatpush1.bf16.msra.mxu1 %v8013_v6 }
0x1b7a   : > { %v3329_v17 = vpop.xlane.xlu0 %3328 }
0x1b7b   : > { %v3330_v46 = vsub.f32 %v3314_v19, %v3329_v17  ;;  %v7993_v17 = vcombine.low %v3808_v40, %v3812_v38 }
0x1b7d   : > { %v3331_v32 = vmul.f32 1.442695, %v3330_v46  ;;  %v7994_v46 = vcombine.high %v3808_v40, %v3812_v38 }
0x1b7f   : > { %9227 = vpow2.f32 %v3331_v32  ;;  %v3809_v32 = vld [vmem:[#allocation23 + $0x18] sm:$0xff]  ;;  %4125 = vmatprep.subr.bf16.mxu1 %v7994_v46 }
0x1b89   : > { %v11481_v24 = vpop.eup %9227 }
0x1b8a   : > { %3334 = vrot.lane.b32.xlu1 %v11481_v24, %s10410_s6 }
0x1bae   : > { %3316 = vmax.xlane.f32.xlu1 %v3315_v62  ;;  %v3813_v62 = vld [vmem:[#allocation23 + $0x38] sm:$0xff] }
0x1bfc   : > { %v3335_v14 = vpop.permute.xlu1 %3334 }
0x1bfd   : > { %v3337_v39 = vsel %vm2254_vm2, %v3335_v14, 0.0  ;;  %v7995_v14 = vcombine.low %v3809_v32, %v3813_v62 }
0x1bfe   : > { %3338 = vadd.xlane.f32.xlu0 %v3337_v39  ;;  %v7996_v39 = vcombine.high %v3809_v32, %v3813_v62 }
0x1c3b   : > { %v3317_v36 = vpop.xlane.xlu1 %3316 }
0x1c3c   : > { %v3318_v12 = vsub.f32 %v3314_v19, %v3317_v36  ;;  %v8015_v19 = vcombine.low %v3831_v35, %v3835_v8  ;;  %v8019_v35 = vcombine.low %v3833_v28, %v3837_v37 }
0x1c3e   : > { %v3319_v30 = vmul.f32 1.442695, %v3318_v12  ;;  %4091 = vmatpush1.bf16.msra.mxu0 %v8015_v19 }
0x1c3f   : > { %4166 = vmatprep.subr.bf16.mxu0 %v7996_v39 }
0x1c40   : > { %9229 = vpow2.f32 %v3319_v30 }
0x1c4a   : > { %v11487_v21 = vpop.eup %9229 }
0x1c4b   : > { %v3321_v47 = vsel %vm2254_vm2, %v11487_v21, 0.0 }
0x1c4c   : > { %3322 = vadd.xlane.f32.xlu0 %v3321_v47 }
0x1c8b   : > { %v3339_v18 = vpop.xlane.xlu0 %3338 }
0x1c8c   : > { %9231 = vrcp.f32 %v3339_v18  ;;  %v8018_v18 = vcombine.high %v3832_v63, %v3836_v1 }
0x1c96   : > { %v9232_v36 = vpop.eup %9231 }
0x1c97   : > { %v3341_v12 = vmul.f32 %v9232_v36, %v11481_v24  ;;  %v3828_v24 = vld [vmem:[#allocation23 + $0xb0] sm:$0xff] }
0x1c98   : > { %v8010_v9 = vcombine.high %v3824_v56, %v3828_v24  ;;  %v8009_v45 = vcombine.low %v3824_v56, %v3828_v24 }
0x1c99   : > { %3343 = vrot.lane.b32.xlu0 %v3341_v12, %s10410_s6 }
0x1cd9   : > { %v3323_v30 = vpop.xlane.xlu0 %3322 }
0x1cda   : > { %9233 = vrcp.f32 %v3323_v30 }
0x1ce4   : > { %v9234_v47 = vpop.eup %9233 }
0x1ce5   : > { %v3325_v15 = vmul.f32 %v9234_v47, %v11487_v21  ;;  %v8001_v21 = vcombine.low %v3816_v48, %v3820_v33 }
0x1d0b   : > { %v3344_v4 = vpop.permute.xlu0 %3343 }
0x1d0c   : > { %v3346_v2 = vadd.f32 %v3344_v4, %v3325_v15 }
0x1d0e   : > { %v3347_v27 = vmul.f32 %v9269_v44, %v3346_v2 }
0x1d10   : > { %v3805_v49 = vpack.c.bf16 %v3347_v27, %v3347_v27 }
0x1d12   : > { %8021 = vmatmul.mubr.msk.bf16.vlgmr.msra.gmra.mrb[56].mxu1 %vm2254_vm2, %v3805_v49  ;;  %8022 = vmatmul.mubr.msk.bf16.vlgmr.msra.gmra.mrb[48].mxu0 %vm2254_vm2, %v3805_v49 }
0x1d13   : > { %4126 = vmatpush1.bf16.msra.mxu1 %v7993_v17  ;;  %4167 = vmatpush1.bf16.msra.mxu0 %v7995_v14 }
0x1d14   : > { %4127 = vmatprep.subr.bf16.mxu1 %v8002_v43  ;;  %4168 = vmatprep.subr.bf16.mxu0 %v8004_v51 }
0x1d15   : > { %4157 = vmatprep.mubr.bf16.mxu1 %v10409_v7  ;;  %4198 = vmatprep.mubr.bf16.mxu0 %v10409_v7  ;;  %v3364_v7 = vld [vmem:[#allocation21] sm:$0xff] }
0x1d16   : > { %v3369_v6 = vrot.slane %v3364_v7, %v11205_v61  ;;  %v3373_v8 = vrot.slane %v3364_v7, %v11213_v58  ;;  %v3377_v40 = vrot.slane %v3364_v7, %v11208_v57  ;;  %v3381_v38 = vrot.slane %v3364_v7, %v11216_v0 }
0x1d17   : > { %4128 = vmatpush1.bf16.msra.mxu1 %v8001_v21  ;;  %4169 = vmatpush1.bf16.msra.mxu0 %v8003_v3  ;;  %v3389_v51 = vrot.slane %v3364_v7, %v11233_v23 }
0x1d18   : > { %4129 = vmatprep.subr.bf16.mxu1 %v8010_v9  ;;  %4170 = vmatprep.subr.bf16.mxu0 %v8012_v20  ;;  %v3521_v26 = vadd.f32 %v11465_v25, %v3369_v6  ;;  %v3523_v34 = vadd.f32 %v11467_v41, %v3373_v8  ;;  %v3562_v17 = vadd.f32 %v11469_v54, %v3377_v40  ;;  %v3396_v25 = vsub.s32 7, %v11202_v52 }
0x1d19   : > { %v3564_v46 = vadd.f32 %v11471_v13, %v3381_v38  ;;  %v3393_v54 = vrot.slane %v3364_v7, %v11230_v22  ;;  %v3385_v13 = vrot.slane %v3364_v7, %v11227_v16  ;;  %v11528_v9 = vadd.f32 %v11479_v53, %v3389_v51 }
0x1d1a   : > { %v3650_v19 = vrot.slane %v3521_v26, 4  ;;  %v3656_v62 = vrot.slane %v3523_v34, 4  ;;  %v3662_v14 = vrot.slane %v3562_v17, 4  ;;  %v3397_v2 = vrot.slane %v3364_v7, %v3396_v25 }
0x1d1b   : > { %4130 = vmatpush1.bf16.msra.mxu1 %v8009_v45  ;;  %4171 = vmatpush1.bf16.msra.mxu0 %v8011_v10  ;;  %v3668_v39 = vrot.slane %v3564_v46, 4  ;;  %v11517_v27 = vadd.f32 %v11473_v55, %v3393_v54  ;;  %v11520_v43 = vadd.f32 %v11475_v29, %v3385_v13  ;;  %v3680_v10 = vrot.slane %v11528_v9, 4 }
0x1d1c   : > { %4131 = vmatprep.subr.bf16.mxu1 %v8018_v18  ;;  %4172 = vmatprep.subr.bf16.mxu0 %v8020_v11  ;;  %v3651_v32 = vadd.f32 %v3650_v19, %v3521_v26  ;;  %v3657_v12 = vadd.f32 %v3656_v62, %v3523_v34  ;;  %v3663_v30 = vadd.f32 %v3662_v14, %v3562_v17 }
0x1d1d   : > { %v3669_v47 = vadd.f32 %v3668_v39, %v3564_v46  ;;  %v11514_v60 = vadd.f32 %v11477_v59, %v3397_v2  ;;  %v3686_v59 = vrot.slane %v11517_v27, 4  ;;  %v3674_v55 = vrot.slane %v11520_v43, 4 }
0x1d1e   : > { %v3652_v36 = vrot.slane %v3651_v32, 2  ;;  %v3658_v4 = vrot.slane %v3657_v12, 2  ;;  %v3664_v41 = vrot.slane %v3663_v30, 2  ;;  %v3681_v8 = vadd.f32 %v3680_v10, %v11528_v9 }
0x1d1f   : > { %4132 = vmatpush1.bf16.msra.mxu1 %v8017_v42  ;;  %4173 = vmatpush1.bf16.msra.mxu0 %v8019_v35  ;;  %v3670_v48 = vrot.slane %v3669_v47, 2  ;;  %v3693_v5 = vsel %vm3692_vm1, %v11514_v60, 0.0  ;;  %v3687_v1 = vadd.f32 %v3686_v59, %v11517_v27  ;;  %v3675_v45 = vadd.f32 %v3674_v55, %v11520_v43 }
0x1d20   : > { %v3653_v15 = vadd.f32 %v3652_v36, %v3651_v32  ;;  %v3659_v31 = vadd.f32 %v3658_v4, %v3657_v12  ;;  %v3665_v44 = vadd.f32 %v3664_v41, %v3663_v30  ;;  %v3694_v3 = vrot.slane %v3693_v5, 4 }
0x1d21   : > { %v3688_v35 = vrot.slane %v3687_v1, 2  ;;  %v3676_v53 = vrot.slane %v3675_v45, 2  ;;  %v3682_v39 = vrot.slane %v3681_v8, 2 }
0x1d22   : > { %8023 = vmatmul.mubr.msk.bf16.vlgmr.msra.gmra.mrb[60].mxu1 %vm2254_vm2, %v3805_v49  ;;  %8024 = vmatmul.mubr.msk.bf16.vlgmr.msra.gmra.mrb[52].mxu0 %vm2254_vm2, %v3805_v49  ;;  %v3654_v33 = vrot.slane %v3653_v15, 1  ;;  %v3671_v49 = vadd.f32 %v3670_v48, %v3669_v47  ;;  %v3660_v24 = vrot.slane %v3659_v31, 1  ;;  %v3666_v50 = vrot.slane %v3665_v44, 1 }
0x1d23   : > { %v3695_v37 = vadd.f32 %v3694_v3, %v3693_v5  ;;  %v3689_v32 = vadd.f32 %v3688_v35, %v3687_v1  ;;  %v3677_v14 = vadd.f32 %v3676_v53, %v3675_v45  ;;  %v3683_v4 = vadd.f32 %v3682_v39, %v3681_v8  ;;  %v11568_v8 = vld [vmem:[#allocation24] sm:$0xff] }
0x1d24   : > { %v3655_v56 = vadd.f32 %v3654_v33, %v3653_v15  ;;  %v3672_v21 = vrot.slane %v3671_v49, 1  ;;  %v3661_v29 = vadd.f32 %v3660_v24, %v3659_v31  ;;  %v3667_v63 = vadd.f32 %v3666_v50, %v3665_v44 }
0x1d25   : > { %v3696_v6 = vrot.slane %v3695_v37, 2  ;;  %v3690_v47 = vrot.slane %v3689_v32, 1  ;;  %v3684_v31 = vrot.slane %v3683_v4, 1  ;;  %vm4404_vm2 = vcmask 1043456  }
0x1d26   : > { %v3700_v20 = vmul.f32 0.125, %v3655_v56  ;;  %v3673_v28 = vadd.f32 %v3672_v21, %v3671_v49  ;;  %v3701_v11 = vmul.f32 0.125, %v3661_v29  ;;  %v3702_v42 = vmul.f32 0.125, %v3667_v63  ;;  %vm4406_vm5 = vmor %vm4405_vm4, %vm4404_vm2 }
0x1d27   : > { %v3691_v54 = vadd.f32 %v3690_v47, %v3689_v32  ;;  %v3685_v59 = vadd.f32 %v3684_v31, %v3683_v4 }
0x1d28   : > { %v11533_v18 = vsub.f32 %v3521_v26, %v3700_v20  ;;  %v3703_v7 = vmul.f32 0.125, %v3673_v28  ;;  %v11538_v38 = vsub.f32 %v3523_v34, %v3701_v11  ;;  %v11540_v19 = vsub.f32 %v3562_v17, %v3702_v42 }
0x1d29   : > { %v3697_v26 = vadd.f32 %v3696_v6, %v3695_v37  ;;  %v3678_v17 = vrot.slane %v3677_v14, 1  ;;  %v3706_v56 = vmul.f32 0.125, %v3691_v54  ;;  %v3705_v28 = vmul.f32 0.125, %v3685_v59 }
0x1d2a   : > { %v3716_v40 = vmul.f32 %v11533_v18, %v11533_v18  ;;  %v11542_v62 = vsub.f32 %v3564_v46, %v3703_v7  ;;  %v3717_v12 = vmul.f32 %v11538_v38, %v11538_v38  ;;  %v3718_v30 = vmul.f32 %v11540_v19, %v11540_v19 }
0x1d2b   : > { %v3698_v15 = vrot.slane %v3697_v26, 1  ;;  %v3679_v33 = vadd.f32 %v3678_v17, %v3677_v14  ;;  %v11551_v20 = vsub.f32 %v11517_v27, %v3706_v56 }
0x1d2c   : > { %v3724_v36 = vrot.slane %v3716_v40, 4  ;;  %v3719_v34 = vmul.f32 %v11542_v62, %v11542_v62  ;;  %v3730_v46 = vrot.slane %v3717_v12, 4  ;;  %v3736_v41 = vrot.slane %v3718_v30, 4 }
0x1d2d   : > { %v3699_v13 = vadd.f32 %v3698_v15, %v3697_v26  ;;  %v3704_v50 = vmul.f32 0.125, %v3679_v33  ;;  %v3722_v11 = vmul.f32 %v11551_v20, %v11551_v20  ;;  %v3855_v15 = vrot.slane %v11568_v8, %v11216_v0 }
0x1d2e   : > { %v3725_v2 = vadd.f32 %v3724_v36, %v3716_v40  ;;  %v3742_v48 = vrot.slane %v3719_v34, 4  ;;  %v3731_v49 = vadd.f32 %v3730_v46, %v3717_v12  ;;  %v3737_v51 = vadd.f32 %v3736_v41, %v3718_v30 }
0x1d2f   : > { %v3707_v5 = vmul.f32 0.125, %v3699_v13  ;;  %v11557_v1 = vsub.f32 %v11520_v43, %v3704_v50  ;;  %v3760_v53 = vrot.slane %v3722_v11, 4  ;;  %v3843_v12 = vrot.slane %v11568_v8, %v11205_v61 }
0x1d30   : > { %v3726_v44 = vrot.slane %v3725_v2, 2  ;;  %v3743_v24 = vadd.f32 %v3742_v48, %v3719_v34  ;;  %v3732_v3 = vrot.slane %v3731_v49, 2  ;;  %v3738_v55 = vrot.slane %v3737_v51, 2 }
0x1d31   : > { %v11554_v63 = vsub.f32 %v11514_v60, %v3707_v5  ;;  %v3720_v27 = vmul.f32 %v11557_v1, %v11557_v1  ;;  %v11566_v60 = vsub.f32 %v11528_v9, %v3705_v28  ;;  %v3851_v9 = vrot.slane %v11568_v8, %v11208_v57 }
0x1d32   : > { %v3727_v21 = vadd.f32 %v3726_v44, %v3725_v2  ;;  %v3744_v29 = vrot.slane %v3743_v24, 2  ;;  %v3733_v45 = vadd.f32 %v3732_v3, %v3731_v49  ;;  %v3739_v10 = vadd.f32 %v3738_v55, %v3737_v51 }
0x1d33   : > { %v3723_v35 = vmul.f32 %v11554_v63, %v11554_v63  ;;  %v3748_v26 = vrot.slane %v3720_v27, 4  ;;  %v3721_v14 = vmul.f32 %v11566_v60, %v11566_v60  ;;  %v3761_v47 = vadd.f32 %v3760_v53, %v3722_v11 }
0x1d34   : > { %v3728_v37 = vrot.slane %v3727_v21, 1  ;;  %v3745_v42 = vadd.f32 %v3744_v29, %v3743_v24  ;;  %v3734_v43 = vrot.slane %v3733_v45, 1  ;;  %v3740_v6 = vrot.slane %v3739_v10, 1 }
0x1d35   : > { %v3766_v32 = vsel %vm3692_vm1, %v3723_v35, 0.0  ;;  %v3847_v34 = vrot.slane %v11568_v8, %v11213_v58  ;;  %v3749_v2 = vadd.f32 %v3748_v26, %v3720_v27  ;;  %v3754_v46 = vrot.slane %v3721_v14, 4 }
0x1d36   : > { %v3729_v7 = vadd.f32 %v3728_v37, %v3727_v21  ;;  %v3746_v40 = vrot.slane %v3745_v42, 1  ;;  %v3735_v36 = vadd.f32 %v3734_v43, %v3733_v45  ;;  %v3741_v30 = vadd.f32 %v3740_v6, %v3739_v10 }
0x1d37   : > { %v3767_v4 = vrot.slane %v3766_v32, 4  ;;  %v3762_v49 = vrot.slane %v3761_v47, 2  ;;  %v3750_v55 = vrot.slane %v3749_v2, 2  ;;  %v3755_v29 = vadd.f32 %v3754_v46, %v3721_v14 }
0x1d38   : > { %v3773_v39 = vmul.f32 0.125, %v3729_v7  ;;  %v3747_v17 = vadd.f32 %v3746_v40, %v3745_v42  ;;  %v3774_v13 = vmul.f32 0.125, %v3735_v36  ;;  %v3775_v44 = vmul.f32 0.125, %v3741_v30 }
0x1d39   : > { %v3768_v5 = vadd.f32 %v3767_v4, %v3766_v32  ;;  %v3763_v35 = vadd.f32 %v3762_v49, %v3761_v47  ;;  %v3751_v32 = vadd.f32 %v3750_v55, %v3749_v2  ;;  %v3756_v26 = vrot.slane %v3755_v29, 2 }
0x1d3a   : > { %v3781_v48 = vadd.f32 1e-05, %v3773_v39  ;;  %v3776_v24 = vmul.f32 0.125, %v3747_v17  ;;  %v3782_v45 = vadd.f32 1e-05, %v3774_v13  ;;  %v3859_v13 = vrot.slane %v11568_v8, %v11227_v16 }
0x1d3b   : > { %v3783_v42 = vadd.f32 1e-05, %v3775_v44  ;;  %v3769_v6 = vrot.slane %v3768_v5, 2  ;;  %v3752_v4 = vrot.slane %v3751_v32, 1  ;;  %v11599_v46 = vadd.f32 %v3756_v26, %v3755_v29 }
0x1d3c   : > { %9235 = vrsqrt.f32 %v3781_v48  ;;  %v3784_v43 = vadd.f32 1e-05, %v3776_v24  ;;  %v3863_v49 = vrot.slane %v11568_v8, %v11233_v23 }
0x1d3d   : > { %9237 = vrsqrt.f32 %v3782_v45  ;;  %v11597_v47 = vadd.f32 %v3769_v6, %v3768_v5 }
0x1d3e   : > { %9239 = vrsqrt.f32 %v3783_v42 }
0x1d3f   : > { %9241 = vrsqrt.f32 %v3784_v43  ;;  %v3771_v5 = vrot.slane %v11597_v47, 1 }
0x1de5   : > { %v4077_v41 = vpop.f32.mrb[56].mxu1  ;;  %v4118_v54 = vpop.f32.mrb[48].mxu0 }
0x1de6   : > { %v11581_v61 = vadd.f32 %v4077_v41, %v3843_v12  ;;  %v11583_v33 = vadd.f32 %v4118_v54, %v3851_v9  ;;  %v4079_v57 = vpop.f32.mrb[57].mxu1  ;;  %v4120_v31 = vpop.f32.mrb[49].mxu0  ;;  %v3764_v9 = vrot.slane %v3763_v35, 1 }
0x1de7   : > { %v11585_v58 = vadd.f32 %v4079_v57, %v3847_v34  ;;  %v11587_v51 = vadd.f32 %v4120_v31, %v3855_v15  ;;  %v4081_v0 = vpop.f32.mrb[58].mxu1  ;;  %v4122_v56 = vpop.f32.mrb[50].mxu0  ;;  %v3867_v57 = vrot.slane %v11568_v8, %v11230_v22  ;;  %v3758_v22 = vrot.slane %v11599_v46, 1 }
0x1de8   : > { %v4207_v50 = vrot.slane %v11581_v61, 4  ;;  %v4219_v59 = vrot.slane %v11583_v33, 4  ;;  %v4082_v21 = vpop.f32.mrb[59].mxu1  ;;  %v4123_v3 = vpop.f32.mrb[51].mxu0  ;;  %v3871_v0 = vrot.slane %v11568_v8, %v3396_v25  ;;  %v11612_v24 = vadd.f32 %v3764_v9, %v3763_v35 }
0x1de9   : > { %v4213_v28 = vrot.slane %v11585_v58, 4  ;;  %v4225_v37 = vrot.slane %v11587_v51, 4  ;;  %v11610_v56 = vpop.eup %9235 }
0x1dea   : > { %v4208_v10 = vadd.f32 %v4207_v50, %v11581_v61  ;;  %v4220_v11 = vadd.f32 %v4219_v59, %v11583_v33  ;;  %v11615_v59 = vadd.f32 %v3752_v4, %v3751_v32 }
0x1deb   : > { %v4214_v27 = vadd.f32 %v4213_v28, %v11585_v58  ;;  %v4226_v7 = vadd.f32 %v4225_v37, %v11587_v51 }
0x1dec   : > { %v4209_v53 = vrot.slane %v4208_v10, 2  ;;  %v4221_v40 = vrot.slane %v4220_v11, 2 }
0x1ded   : > { %v4215_v14 = vrot.slane %v4214_v27, 2  ;;  %v4227_v39 = vrot.slane %v4226_v7, 2 }
0x1dee   : > { %v4210_v36 = vadd.f32 %v4209_v53, %v4208_v10  ;;  %v4222_v12 = vadd.f32 %v4221_v40, %v4220_v11 }
0x1def   : > { %v4216_v30 = vadd.f32 %v4215_v14, %v4214_v27  ;;  %v4228_v34 = vadd.f32 %v4227_v39, %v4226_v7 }
0x1df0   : > { %v4211_v15 = vrot.slane %v4210_v36, 1  ;;  %v4223_v17 = vrot.slane %v4222_v12, 1 }
0x1df1   : > { %v4217_v41 = vrot.slane %v4216_v30, 1  ;;  %v4229_v2 = vrot.slane %v4228_v34, 1 }
0x1df2   : > { %v4212_v54 = vadd.f32 %v4211_v15, %v4210_v36  ;;  %v4224_v48 = vadd.f32 %v4223_v17, %v4222_v12 }
0x1df3   : > { %v4218_v31 = vadd.f32 %v4217_v41, %v4216_v30  ;;  %v4230_v44 = vadd.f32 %v4229_v2, %v4228_v34 }
0x1df4   : > { %v4256_v50 = vmul.f32 0.125, %v4212_v54  ;;  %v4258_v16 = vmul.f32 0.125, %v4224_v48 }
0x1df5   : > { %v4257_v21 = vmul.f32 0.125, %v4218_v31  ;;  %v4259_v3 = vmul.f32 0.125, %v4230_v44  ;;  %v4159_v55 = vpop.f32.mrb[60].mxu1  ;;  %v4200_v23 = vpop.f32.mrb[52].mxu0 }
0x1df6   : > { %v11619_v52 = vsub.f32 %v11581_v61, %v4256_v50  ;;  %v11622_v25 = vsub.f32 %v11583_v33, %v4258_v16  ;;  %v11624_v8 = vadd.f32 %v4159_v55, %v3859_v13  ;;  %v11626_v29 = vadd.f32 %v4200_v23, %v3867_v57  ;;  %v4161_v28 = vpop.f32.mrb[61].mxu1  ;;  %v4202_v37 = vpop.f32.mrb[53].mxu0 }
0x1df7   : > { %v11629_v45 = vsub.f32 %v11585_v58, %v4257_v21  ;;  %v11632_v10 = vsub.f32 %v11587_v51, %v4259_v3  ;;  %v11634_v11 = vadd.f32 %v4161_v28, %v3863_v49  ;;  %v11636_v42 = vadd.f32 %v4202_v37, %v3871_v0  ;;  %v4163_v61 = vpop.f32.mrb[62].mxu1  ;;  %v4204_v35 = vpop.f32.mrb[54].mxu0 }
0x1df8   : > { %v11638_v33 = vpop.eup %9237  ;;  %v4272_v27 = vmul.f32 %v11619_v52, %v11619_v52  ;;  %v4274_v7 = vmul.f32 %v11622_v25, %v11622_v25  ;;  %v4231_v58 = vrot.slane %v11624_v8, 4  ;;  %v4243_v43 = vrot.slane %v11626_v29, 4  ;;  %v4164_v51 = vpop.f32.mrb[63].mxu1 }
0x1df9   : > { %v4205_v6 = vpop.f32.mrb[55].mxu0  ;;  %v11646_v53 = vpop.eup %9239  ;;  %v4273_v40 = vmul.f32 %v11629_v45, %v11629_v45  ;;  %v4275_v32 = vmul.f32 %v11632_v10, %v11632_v10  ;;  %v4237_v26 = vrot.slane %v11634_v11, 4  ;;  %v4249_v14 = vsel %vm3692_vm1, %v11636_v42, 0.0 }
0x1dfa   : > { %v11655_v39 = vpop.eup %9241  ;;  %v4280_v36 = vrot.slane %v4272_v27, 4  ;;  %v4292_v12 = vrot.slane %v4274_v7, 4  ;;  %v4232_v9 = vadd.f32 %v4231_v58, %v11624_v8  ;;  %v4244_v30 = vadd.f32 %v4243_v43, %v11626_v29 }
0x1dfb   : > { %v4286_v34 = vrot.slane %v4273_v40, 4  ;;  %v4298_v15 = vrot.slane %v4275_v32, 4  ;;  %v4238_v17 = vadd.f32 %v4237_v26, %v11634_v11  ;;  %v4250_v4 = vrot.slane %v4249_v14, 4 }
0x1dfc   : > { %v4281_v41 = vadd.f32 %v4280_v36, %v4272_v27  ;;  %v4293_v2 = vadd.f32 %v4292_v12, %v4274_v7  ;;  %v4233_v54 = vrot.slane %v4232_v9, 2  ;;  %v4245_v48 = vrot.slane %v4244_v30, 2 }
0x1dfd   : > { %v4287_v13 = vadd.f32 %v4286_v34, %v4273_v40  ;;  %v4299_v57 = vadd.f32 %v4298_v15, %v4275_v32  ;;  %v4239_v31 = vrot.slane %v4238_v17, 2  ;;  %v4251_v44 = vadd.f32 %v4250_v4, %v4249_v14 }
0x1dfe   : > { %v4282_v49 = vrot.slane %v4281_v41, 2  ;;  %v4294_v0 = vrot.slane %v4293_v2, 2  ;;  %v4234_v50 = vadd.f32 %v4233_v54, %v4232_v9  ;;  %v4246_v16 = vadd.f32 %v4245_v48, %v4244_v30 }
0x1dff   : > { %v4288_v21 = vrot.slane %v4287_v13, 2  ;;  %v4300_v3 = vrot.slane %v4299_v57, 2  ;;  %v4240_v55 = vadd.f32 %v4239_v31, %v4238_v17  ;;  %v4252_v23 = vrot.slane %v4251_v44, 2 }
0x1e00   : > { %v4283_v28 = vadd.f32 %v4282_v49, %v4281_v41  ;;  %v4295_v37 = vadd.f32 %v4294_v0, %v4293_v2  ;;  %v4235_v61 = vrot.slane %v4234_v50, 1  ;;  %v4247_v35 = vrot.slane %v4246_v16, 1 }
0x1e01   : > { %v4289_v27 = vadd.f32 %v4288_v21, %v4287_v13  ;;  %v4301_v7 = vadd.f32 %v4300_v3, %v4299_v57  ;;  %v4241_v58 = vrot.slane %v4240_v55, 1  ;;  %v4253_v43 = vadd.f32 %v4252_v23, %v4251_v44 }
0x1e02   : > { %v4284_v51 = vrot.slane %v4283_v28, 1  ;;  %v4296_v6 = vrot.slane %v4295_v37, 1  ;;  %v4236_v40 = vadd.f32 %v4235_v61, %v4234_v50  ;;  %v4248_v32 = vadd.f32 %v4247_v35, %v4246_v16 }
0x1e03   : > { %v4290_v26 = vrot.slane %v4289_v27, 1  ;;  %v4302_v14 = vrot.slane %v4301_v7, 1  ;;  %v4242_v36 = vadd.f32 %v4241_v58, %v4240_v55  ;;  %v4254_v12 = vrot.slane %v4253_v43, 1 }
0x1e04   : > { %v4285_v9 = vadd.f32 %v4284_v51, %v4283_v28  ;;  %v4297_v30 = vadd.f32 %v4296_v6, %v4295_v37  ;;  %v4260_v34 = vmul.f32 0.125, %v4236_v40  ;;  %v4262_v15 = vmul.f32 0.125, %v4248_v32 }
0x1e05   : > { %v4291_v17 = vadd.f32 %v4290_v26, %v4289_v27  ;;  %v4303_v4 = vadd.f32 %v4302_v14, %v4301_v7  ;;  %v4261_v41 = vmul.f32 0.125, %v4242_v36  ;;  %v4255_v2 = vadd.f32 %v4254_v12, %v4253_v43 }
0x1e06   : > { %v4329_v54 = vmul.f32 0.125, %v4285_v9  ;;  %v4331_v48 = vmul.f32 0.125, %v4297_v30  ;;  %v11661_v13 = vsub.f32 %v11624_v8, %v4260_v34  ;;  %v11664_v57 = vsub.f32 %v11626_v29, %v4262_v15 }
0x1e07   : > { %v4330_v31 = vmul.f32 0.125, %v4291_v17  ;;  %v4332_v44 = vmul.f32 0.125, %v4303_v4  ;;  %v11667_v49 = vsub.f32 %v11634_v11, %v4261_v41  ;;  %v4263_v0 = vmul.f32 0.125, %v4255_v2 }
0x1e08   : > { %v4337_v50 = vadd.f32 1e-05, %v4329_v54  ;;  %v4339_v16 = vadd.f32 1e-05, %v4331_v48  ;;  %v4276_v21 = vmul.f32 %v11661_v13, %v11661_v13  ;;  %v4278_v3 = vmul.f32 %v11664_v57, %v11664_v57 }
0x1e09   : > { %v4338_v55 = vadd.f32 1e-05, %v4330_v31  ;;  %v4340_v8 = vadd.f32 1e-05, %v4332_v44  ;;  %v4277_v29 = vmul.f32 %v11667_v49, %v11667_v49  ;;  %v11676_v23 = vsub.f32 %v11636_v42, %v4263_v0 }
0x1e0a   : > { %v3779_v11 = vmul.f32 0.125, %v11612_v24  ;;  %9243 = vrsqrt.f32 %v4337_v50  ;;  %v4304_v28 = vrot.slane %v4276_v21, 4  ;;  %v4316_v37 = vrot.slane %v4278_v3, 4 }
0x1e0b   : > { %v3772_v61 = vadd.f32 %v3771_v5, %v11597_v47  ;;  %9245 = vrsqrt.f32 %v4339_v16  ;;  %v4310_v35 = vrot.slane %v4277_v29, 4  ;;  %v4279_v27 = vmul.f32 %v11676_v23, %v11676_v23 }
0x1e0c   : > { %v3777_v7 = vmul.f32 0.125, %v11615_v59  ;;  %9247 = vrsqrt.f32 %v4338_v55  ;;  %v4305_v58 = vadd.f32 %v4304_v28, %v4276_v21  ;;  %v4317_v42 = vadd.f32 %v4316_v37, %v4278_v3 }
0x1e0d   : > { %v3759_v24 = vadd.f32 %v3758_v22, %v11599_v46  ;;  %9249 = vrsqrt.f32 %v4340_v8  ;;  %v4311_v43 = vadd.f32 %v4310_v35, %v4277_v29  ;;  %v4322_v51 = vsel %vm3692_vm1, %v4279_v27, 0.0 }
0x1e0e   : > { %v4306_v6 = vrot.slane %v4305_v58, 2  ;;  %v4318_v47 = vrot.slane %v4317_v42, 2  ;;  %v4323_v5 = vrot.slane %v4322_v51, 4  ;;  %v3787_v40 = vadd.f32 1e-05, %v3779_v11 }
0x1e0f   : > { %v3780_v32 = vmul.f32 0.125, %v3772_v61  ;;  %v4312_v26 = vrot.slane %v4311_v43, 2  ;;  %v3785_v14 = vadd.f32 1e-05, %v3777_v7  ;;  %v3778_v9 = vmul.f32 0.125, %v3759_v24 }
0x1e10   : > { %v4307_v36 = vadd.f32 %v4306_v6, %v4305_v58  ;;  %v4319_v59 = vadd.f32 %v4318_v47, %v4317_v42  ;;  %v4324_v12 = vadd.f32 %v4323_v5, %v4322_v51  ;;  %v3797_v34 = vmul.f32 %v11610_v56, %v11533_v18 }
0x1e11   : > { %v4313_v30 = vadd.f32 %v4312_v26, %v4311_v43  ;;  %v3798_v17 = vmul.f32 %v11638_v33, %v11538_v38  ;;  %9251 = vrsqrt.f32 %v3787_v40  ;;  %v3788_v4 = vadd.f32 1e-05, %v3780_v32 }
0x1e12   : > { %v4308_v46 = vrot.slane %v4307_v36, 1  ;;  %v4320_v22 = vrot.slane %v4319_v59, 1  ;;  %v4325_v15 = vrot.slane %v4324_v12, 2  ;;  %9253 = vrsqrt.f32 %v3785_v14 }
0x1e13   : > { %v4314_v41 = vrot.slane %v4313_v30, 1  ;;  %v3799_v0 = vmul.f32 %v11646_v53, %v11540_v19  ;;  %v3786_v50 = vadd.f32 1e-05, %v3778_v9  ;;  %v3800_v8 = vmul.f32 %v11655_v39, %v11542_v62 }
0x1e14   : > { %v9244_v2 = vpop.eup %9243  ;;  %v4309_v54 = vadd.f32 %v4308_v46, %v4307_v36  ;;  %v4321_v48 = vadd.f32 %v4320_v22, %v4319_v59  ;;  %v4326_v31 = vadd.f32 %v4325_v15, %v4324_v12 }
0x1e15   : > { %v9246_v44 = vpop.eup %9245  ;;  %v4353_v18 = vmul.f32 %v9244_v2, %v11619_v52  ;;  %v4315_v56 = vadd.f32 %v4314_v41, %v4313_v30  ;;  %9255 = vrsqrt.f32 %v3786_v50 }
0x1e16   : > { %v9248_v16 = vpop.eup %9247  ;;  %v4355_v21 = vmul.f32 %v9246_v44, %v11622_v25  ;;  %v4333_v38 = vmul.f32 0.125, %v4309_v54  ;;  %v4335_v33 = vmul.f32 0.125, %v4321_v48  ;;  %v4327_v3 = vrot.slane %v4326_v31, 1 }
0x1e17   : > { %v9250_v55 = vpop.eup %9249  ;;  %v4361_v29 = vmul.f32 %v4353_v18, %v3797_v34  ;;  %v4354_v11 = vmul.f32 %v9248_v16, %v11629_v45  ;;  %v4334_v28 = vmul.f32 0.125, %v4315_v56 }
0x1e18   : > { %v4363_v37 = vmul.f32 %v4355_v21, %v3799_v0  ;;  %v4356_v19 = vmul.f32 %v9250_v55, %v11632_v10  ;;  %v4341_v53 = vadd.f32 1e-05, %v4333_v38  ;;  %v4343_v52 = vadd.f32 1e-05, %v4335_v33 }
0x1e19   : > { %v4362_v61 = vmul.f32 %v4354_v11, %v3798_v17  ;;  %v4342_v35 = vadd.f32 1e-05, %v4334_v28  ;;  %v4328_v25 = vadd.f32 %v4327_v3, %v4326_v31 }
0x1e1a   : > { %v4364_v27 = vmul.f32 %v4356_v19, %v3800_v8  ;;  %9257 = vrsqrt.f32 %v4341_v53 }
0x1e1b   : > { %v8404_v7 = vpack.c.bf16 %v4362_v61, %v4361_v29  ;;  %9259 = vrsqrt.f32 %v4343_v52  ;;  %v4336_v58 = vmul.f32 0.125, %v4328_v25  ;;  %v9252_v62 = vpop.eup %9251 }
0x1e1c   : > { %v8405_v42 = vpack.c.bf16 %v4364_v27, %v4363_v37  ;;  %9261 = vrsqrt.f32 %v4342_v35  ;;  %v9254_v39 = vpop.eup %9253  ;;  %v3803_v5 = vmul.f32 %v9252_v62, %v11551_v20 }
0x1e1d   : > { %9263 = vrsqrt.f32 %v3788_v4  ;;  %4401 = vst [vmem:[#allocation2] sm:$0xff] %v8404_v7  ;;  %v4344_v45 = vadd.f32 1e-05, %v4336_v58  ;;  %v3801_v51 = vmul.f32 %v9254_v39, %v11557_v1 }
0x1e1e   : > { %4402 = vst [vmem:[#allocation2 + $0x8] sm:$0xff] %v8405_v42 }
0x1e1f   : > { %9265 = vrsqrt.f32 %v4344_v45  ;;  %v9256_v10 = vpop.eup %9255 }
0x1e20   : > { %v3802_v26 = vmul.f32 %v9256_v10, %v11566_v60 }
0x1e24   : > { %v9258_v24 = vpop.eup %9257 }
0x1e25   : > { %v9260_v43 = vpop.eup %9259  ;;  %v4357_v6 = vmul.f32 %v9258_v24, %v11661_v13 }
0x1e26   : > { %v9262_v47 = vpop.eup %9261  ;;  %v4359_v40 = vmul.f32 %v9260_v43, %v11664_v57 }
0x1e27   : > { %v9264_v32 = vpop.eup %9263  ;;  %v4365_v14 = vmul.f32 %v4357_v6, %v3801_v51  ;;  %v4358_v36 = vmul.f32 %v9262_v47, %v11667_v49 }
0x1e28   : > { %v4367_v59 = vmul.f32 %v4359_v40, %v3803_v5  ;;  %v3804_v30 = vmul.f32 %v9264_v32, %v11554_v63 }
0x1e29   : > { %v9266_v12 = vpop.eup %9265  ;;  %v4366_v9 = vmul.f32 %v4358_v36, %v3802_v26 }
0x1e2a   : > { %v4360_v1 = vmul.f32 %v9266_v12, %v11676_v23 }
0x1e2b   : > { %v8406_v13 = vpack.c.bf16 %v4366_v9, %v4365_v14 }
0x1e2c   : > { %v4368_v34 = vmul.f32 %v4360_v1, %v3804_v30 }
0x1e2d   : > { %4403 = vst [vmem:[#allocation2 + $0x10] sm:$0xff] %v8406_v13 }
0x1e2e   : > { %v8407_v20 = vpack.c.bf16 %v4368_v34, %v4367_v59 }
0x1e30   : > { %4407 = vst.msk [vmem:[#allocation2 + $0x18] sm:$0xff] %vm4406_vm5, %v8407_v20 }
0x1e31 PF: > { %v9270_v63 = vld [vmem:[%s11017_s19 + $0x4] ss:$20 sps:$4 sm:$0xff]   ;;  %v9272_v60 = vld [vmem:[%s11017_s19 + $0xc] ss:$20 sps:$4 sm:$0xff]   ;;  %v9275_v49 = vld [vmem:[%s11017_s19 + $0x8] ss:$20 sps:$4 sm:$0xff]  }
0x1e32   : > { %6487 = vmatprep.subr.bf16.mxu0 %v9270_v63  ;;  %v9274_v57 = vld [vmem:[%s11017_s19] ss:$20 sps:$4 sm:$0xff]   ;;  %6651 = vmatprep.subr.bf16.mxu1 %v9272_v60  ;;  %v9280_v22 = vld [vmem:[%s11017_s19 + $0x28] ss:$20 sps:$4 sm:$0xff]   ;;  %v9281_v15 = vld [vmem:[%s11017_s19 + $0x30] ss:$20 sps:$4 sm:$0xff]  }
0x1e33   : > { %v9276_v23 = vld [vmem:[%s11017_s19 + $0x2c] ss:$20 sps:$4 sm:$0xff]   ;;  %6488 = vmatpush1.bf16.msra.mxu0 %v9274_v57  ;;  %6652 = vmatpush1.bf16.msra.mxu1 %v9275_v49  ;;  %v9278_v46 = vld [vmem:[%s11017_s19 + $0x34] ss:$20 sps:$4 sm:$0xff]   ;;  %v9284_v4 = vld [vmem:[%s11017_s19 + $0x5c] ss:$20 sps:$4 sm:$0xff]  }
0x1e34   : > { %6489 = vmatprep.subr.bf16.mxu0 %v9276_v23  ;;  %6653 = vmatprep.subr.bf16.mxu1 %v9278_v46  ;;  %v9282_v17 = vld [vmem:[%s11017_s19 + $0x54] ss:$20 sps:$4 sm:$0xff]   ;;  %v9286_v41 = vld [vmem:[%s11017_s19 + $0x50] ss:$20 sps:$4 sm:$0xff]   ;;  %v9287_v2 = vld [vmem:[%s11017_s19 + $0x58] ss:$20 sps:$4 sm:$0xff]  }
0x1e35   : > { %v9288_v54 = vld [vmem:[%s11017_s19 + $0x7c] ss:$20 sps:$4 sm:$0xff]   ;;  %v9290_v48 = vld [vmem:[%s11017_s19 + $0x84] ss:$20 sps:$4 sm:$0xff]   ;;  %v9293_v44 = vld [vmem:[%s11017_s19 + $0x80] ss:$20 sps:$4 sm:$0xff]  }
0x1e36   : > { %v9292_v31 = vld [vmem:[%s11017_s19 + $0x78] ss:$20 sps:$4 sm:$0xff]   ;;  %v9298_v18 = vld [vmem:[%s11017_s19 + $0xa0] ss:$20 sps:$4 sm:$0xff]   ;;  %v9299_v56 = vld [vmem:[%s11017_s19 + $0xa8] ss:$20 sps:$4 sm:$0xff]  }
0x1e37   : > { %6490 = vmatpush1.bf16.msra.mxu0 %v9280_v22  ;;  %6654 = vmatpush1.bf16.msra.mxu1 %v9281_v15  ;;  %v9294_v0 = vld [vmem:[%s11017_s19 + $0xa4] ss:$20 sps:$4 sm:$0xff]   ;;  %v9296_v50 = vld [vmem:[%s11017_s19 + $0xac] ss:$20 sps:$4 sm:$0xff]   ;;  %v9302_v21 = vld [vmem:[%s11017_s19 + $0xd4] ss:$20 sps:$4 sm:$0xff]  }
0x1e38   : > { %6491 = vmatprep.subr.bf16.mxu0 %v9282_v17  ;;  %6655 = vmatprep.subr.bf16.mxu1 %v9284_v4  ;;  %v9300_v16 = vld [vmem:[%s11017_s19 + $0xcc] ss:$20 sps:$4 sm:$0xff]   ;;  %v9304_v38 = vld [vmem:[%s11017_s19 + $0xc8] ss:$20 sps:$4 sm:$0xff]   ;;  %v9305_v33 = vld [vmem:[%s11017_s19 + $0xd0] ss:$20 sps:$4 sm:$0xff]  }
0x1e39   : > { %v9306_v3 = vld [vmem:[%s11017_s19 + $0xf4] ss:$20 sps:$4 sm:$0xff]   ;;  %v9308_v55 = vld [vmem:[%s11017_s19 + $0xfc] ss:$20 sps:$4 sm:$0xff]   ;;  %v9311_v29 = vld [vmem:[%s11017_s19 + $0xf8] ss:$20 sps:$4 sm:$0xff]  }
0x1e3a   : > { %v9310_v8 = vld [vmem:[%s11017_s19 + $0xf0] ss:$20 sps:$4 sm:$0xff]   ;;  %v9316_v37 = vld [vmem:[%s11017_s19 + $0x118] ss:$20 sps:$4 sm:$0xff]   ;;  %v9317_v19 = vld [vmem:[%s11017_s19 + $0x120] ss:$20 sps:$4 sm:$0xff]  }
0x1e3b   : > { %6492 = vmatpush1.bf16.msra.mxu0 %v9286_v41  ;;  %6656 = vmatpush1.bf16.msra.mxu1 %v9287_v2  ;;  %v9312_v11 = vld [vmem:[%s11017_s19 + $0x11c] ss:$20 sps:$4 sm:$0xff]   ;;  %v9314_v28 = vld [vmem:[%s11017_s19 + $0x124] ss:$20 sps:$4 sm:$0xff]   ;;  %v9320_v52 = vld [vmem:[%s11017_s19 + $0x14c] ss:$20 sps:$4 sm:$0xff]  }
0x1e3c   : > { %6493 = vmatprep.subr.bf16.mxu0 %v9288_v54  ;;  %6657 = vmatprep.subr.bf16.mxu1 %v9290_v48  ;;  %v9318_v53 = vld [vmem:[%s11017_s19 + $0x144] ss:$20 sps:$4 sm:$0xff]   ;;  %v9322_v61 = vld [vmem:[%s11017_s19 + $0x140] ss:$20 sps:$4 sm:$0xff]   ;;  %v9323_v35 = vld [vmem:[%s11017_s19 + $0x148] ss:$20 sps:$4 sm:$0xff]  }
0x1e3d   : > { %v9324_v25 = vld [vmem:[%s11017_s19 + $0x16c] ss:$20 sps:$4 sm:$0xff]   ;;  %v9326_v27 = vld [vmem:[%s11017_s19 + $0x174] ss:$20 sps:$4 sm:$0xff]   ;;  %v9329_v58 = vld [vmem:[%s11017_s19 + $0x170] ss:$20 sps:$4 sm:$0xff]  }
0x1e3e   : > { %v9328_v7 = vld [vmem:[%s11017_s19 + $0x168] ss:$20 sps:$4 sm:$0xff]   ;;  %v9334_v45 = vld [vmem:[%s11017_s19 + $0x190] ss:$20 sps:$4 sm:$0xff]   ;;  %v9335_v39 = vld [vmem:[%s11017_s19 + $0x198] ss:$20 sps:$4 sm:$0xff]  }
0x1e3f   : > { %6494 = vmatpush1.bf16.msra.mxu0 %v9292_v31  ;;  %6658 = vmatpush1.bf16.msra.mxu1 %v9293_v44  ;;  %v9330_v42 = vld [vmem:[%s11017_s19 + $0x194] ss:$20 sps:$4 sm:$0xff]   ;;  %v9332_v62 = vld [vmem:[%s11017_s19 + $0x19c] ss:$20 sps:$4 sm:$0xff]   ;;  %v9338_v24 = vld [vmem:[%s11017_s19 + $0x1c4] ss:$20 sps:$4 sm:$0xff]  }
0x1e40   : > { %6495 = vmatprep.subr.bf16.mxu0 %v9294_v0  ;;  %6659 = vmatprep.subr.bf16.mxu1 %v9296_v50  ;;  %v9336_v10 = vld [vmem:[%s11017_s19 + $0x1bc] ss:$20 sps:$4 sm:$0xff]   ;;  %v9340_v51 = vld [vmem:[%s11017_s19 + $0x1b8] ss:$20 sps:$4 sm:$0xff]   ;;  %v9341_v47 = vld [vmem:[%s11017_s19 + $0x1c0] ss:$20 sps:$4 sm:$0xff]  }
0x1e41   : > { %v4409_v43 = vld [vmem:[#allocation2] sm:$0xff]  ;;  %v9344_v40 = vld [vmem:[%s11017_s19 + $0x1ec] ss:$20 sps:$4 sm:$0xff]   ;;  %v9347_v26 = vld [vmem:[%s11017_s19 + $0x1e8] ss:$20 sps:$4 sm:$0xff]   ;;  %vm6467_vm6 = vcmask 850944  }
0x1e42   : > { %v11756_v6 = vcombine.high %v4409_v43, %v4409_v43  ;;  %v9342_v5 = vld [vmem:[%s11017_s19 + $0x1e4] ss:$20 sps:$4 sm:$0xff]   ;;  %v9346_v32 = vld [vmem:[%s11017_s19 + $0x1e0] ss:$20 sps:$4 sm:$0xff]   ;;  %v9352_v59 = vld [vmem:[%s11017_s19 + $0x208] ss:$20 sps:$4 sm:$0xff]   ;;  %v11780_v46 = vcombine.low %v4409_v43, %v4409_v43 }
0x1e43   : > { %6496 = vmatpush1.bf16.msra.mxu0 %v9298_v18  ;;  %6660 = vmatpush1.bf16.msra.mxu1 %v9299_v56  ;;  %v9348_v14 = vld [vmem:[%s11017_s19 + $0x20c] ss:$20 sps:$4 sm:$0xff]   ;;  %v9350_v36 = vld [vmem:[%s11017_s19 + $0x214] ss:$20 sps:$4 sm:$0xff]   ;;  %v9353_v12 = vld [vmem:[%s11017_s19 + $0x210] ss:$20 sps:$4 sm:$0xff]  }
0x1e44   : > { %6497 = vmatprep.subr.bf16.mxu0 %v9300_v16  ;;  %6661 = vmatprep.subr.bf16.mxu1 %v9302_v21  ;;  %v9354_v9 = vld [vmem:[%s11017_s19 + $0x234] ss:$20 sps:$4 sm:$0xff]   ;;  %v9356_v30 = vld [vmem:[%s11017_s19 + $0x23c] ss:$20 sps:$4 sm:$0xff]   ;;  %v9359_v13 = vld [vmem:[%s11017_s19 + $0x238] ss:$20 sps:$4 sm:$0xff]  }
0x1e45   : > { %6519 = vmatprep.mubr.bf16.mxu0 %v11756_v6  ;;  %6683 = vmatprep.mubr.bf16.mxu1 %v11756_v6  ;;  %v9358_v1 = vld [vmem:[%s11017_s19 + $0x230] ss:$20 sps:$4 sm:$0xff]   ;;  %v9364_v63 = vld [vmem:[%s11017_s19 + $0x258] ss:$20 sps:$4 sm:$0xff]   ;;  %v9365_v60 = vld [vmem:[%s11017_s19 + $0x260] ss:$20 sps:$4 sm:$0xff]  }
0x1e46   : > { %v9360_v34 = vld [vmem:[%s11017_s19 + $0x25c] ss:$20 sps:$4 sm:$0xff]   ;;  %v9362_v20 = vld [vmem:[%s11017_s19 + $0x264] ss:$20 sps:$4 sm:$0xff]   ;;  %v9372_v49 = vld [vmem:[%s11017_s19 + $0x28c] ss:$20 sps:$4 sm:$0xff]  }
0x1e47   : > { %6498 = vmatpush1.bf16.msra.mxu0 %v9304_v38  ;;  %6662 = vmatpush1.bf16.msra.mxu1 %v9305_v33  ;;  %v9369_v57 = vld [vmem:[%s11017_s19 + $0x284] ss:$20 sps:$4 sm:$0xff]   ;;  %v9367_v23 = vld [vmem:[%s11017_s19 + $0x280] ss:$20 sps:$4 sm:$0xff]   ;;  %v9370_v22 = vld [vmem:[%s11017_s19 + $0x288] ss:$20 sps:$4 sm:$0xff]  }
0x1e48   : > { %6499 = vmatprep.subr.bf16.mxu0 %v9306_v3  ;;  %6663 = vmatprep.subr.bf16.mxu1 %v9308_v55  ;;  %v9376_v15 = vld [vmem:[%s11017_s19 + $0x2ac] ss:$20 sps:$4 sm:$0xff]   ;;  %v9379_v17 = vld [vmem:[%s11017_s19 + $0x2b4] ss:$20 sps:$4 sm:$0xff]   ;;  %v9377_v41 = vld [vmem:[%s11017_s19 + $0x2b0] ss:$20 sps:$4 sm:$0xff]  }
0x1e49   : > { %v9374_v4 = vld [vmem:[%s11017_s19 + $0x2a8] ss:$20 sps:$4 sm:$0xff]   ;;  %v9380_v48 = vld [vmem:[%s11017_s19 + $0x2d0] ss:$20 sps:$4 sm:$0xff]   ;;  %v9383_v31 = vld [vmem:[%s11017_s19 + $0x2d8] ss:$20 sps:$4 sm:$0xff]  }
0x1e4a   : > { %v9382_v2 = vld [vmem:[%s11017_s19 + $0x2d4] ss:$20 sps:$4 sm:$0xff]   ;;  %v9385_v54 = vld [vmem:[%s11017_s19 + $0x2dc] ss:$20 sps:$4 sm:$0xff]   ;;  %v9391_v0 = vld [vmem:[%s11017_s19 + $0x304] ss:$20 sps:$4 sm:$0xff]  }
0x1e4b   : > { %6500 = vmatpush1.bf16.msra.mxu0 %v9310_v8  ;;  %6664 = vmatpush1.bf16.msra.mxu1 %v9311_v29  ;;  %v9388_v44 = vld [vmem:[%s11017_s19 + $0x2fc] ss:$20 sps:$4 sm:$0xff]   ;;  %v9386_v50 = vld [vmem:[%s11017_s19 + $0x2f8] ss:$20 sps:$4 sm:$0xff]   ;;  %v9389_v18 = vld [vmem:[%s11017_s19 + $0x300] ss:$20 sps:$4 sm:$0xff]  }
0x1e4c   : > { %6501 = vmatprep.subr.bf16.mxu0 %v9312_v11  ;;  %6665 = vmatprep.subr.bf16.mxu1 %v9314_v28  ;;  %v9394_v56 = vld [vmem:[%s11017_s19 + $0x324] ss:$20 sps:$4 sm:$0xff]   ;;  %v9397_v16 = vld [vmem:[%s11017_s19 + $0x32c] ss:$20 sps:$4 sm:$0xff]   ;;  %v9395_v38 = vld [vmem:[%s11017_s19 + $0x328] ss:$20 sps:$4 sm:$0xff]  }
0x1e4d   : > { %v9392_v21 = vld [vmem:[%s11017_s19 + $0x320] ss:$20 sps:$4 sm:$0xff]   ;;  %v9398_v55 = vld [vmem:[%s11017_s19 + $0x348] ss:$20 sps:$4 sm:$0xff]   ;;  %v9401_v8 = vld [vmem:[%s11017_s19 + $0x350] ss:$20 sps:$4 sm:$0xff]  }
0x1e4e   : > { %v9400_v33 = vld [vmem:[%s11017_s19 + $0x34c] ss:$20 sps:$4 sm:$0xff]   ;;  %v9403_v3 = vld [vmem:[%s11017_s19 + $0x354] ss:$20 sps:$4 sm:$0xff]   ;;  %v9409_v11 = vld [vmem:[%s11017_s19 + $0x37c] ss:$20 sps:$4 sm:$0xff]  }
0x1e4f   : > { %6502 = vmatpush1.bf16.msra.mxu0 %v9316_v37  ;;  %6666 = vmatpush1.bf16.msra.mxu1 %v9317_v19  ;;  %v9406_v29 = vld [vmem:[%s11017_s19 + $0x374] ss:$20 sps:$4 sm:$0xff]   ;;  %v11807_v28 = vld [vmem:[#allocation2 + $0x8] sm:$0xff]  ;;  %v9404_v19 = vld [vmem:[%s11017_s19 + $0x370] ss:$20 sps:$4 sm:$0xff]   ;;  %vm6471_vm7 = vcmask 1043456  }
0x1e50   : > { %6503 = vmatprep.subr.bf16.mxu0 %v9318_v53  ;;  %6667 = vmatprep.subr.bf16.mxu1 %v9320_v52  ;;  %v11811_v37 = vcombine.high %v11807_v28, %v11807_v28  ;;  %v9407_v53 = vld [vmem:[%s11017_s19 + $0x378] ss:$20 sps:$4 sm:$0xff]   ;;  %v9412_v52 = vld [vmem:[%s11017_s19 + $0x39c] ss:$20 sps:$4 sm:$0xff]   ;;  %vm10414_vm12 = vmmov 0   ;;  %s12353_s17 = sld [smem:[#allocation44_spill]] }
0x1e51   : > { %v9433_v43 = vld [vmem:[%s11017_s19 + $0x41c] ss:$20 sps:$4 sm:$0xff]  }
0x1e53   : > { %6504 = vmatpush1.bf16.msra.mxu0 %v9322_v61  ;;  %6668 = vmatpush1.bf16.msra.mxu1 %v9323_v35  ;;  %v9415_v61 = vld [vmem:[%s11017_s19 + $0x3a4] ss:$20 sps:$4 sm:$0xff]  }
0x1e54   : > { %6505 = vmatprep.subr.bf16.mxu0 %v9324_v25  ;;  %6669 = vmatprep.subr.bf16.mxu1 %v9326_v27  ;;  %v9410_v35 = vld [vmem:[%s11017_s19 + $0x398] ss:$20 sps:$4 sm:$0xff]   ;;  %v9413_v25 = vld [vmem:[%s11017_s19 + $0x3a0] ss:$20 sps:$4 sm:$0xff]  }
0x1e55   : > { %v9418_v27 = vld [vmem:[%s11017_s19 + $0x3c4] ss:$20 sps:$4 sm:$0xff]  }
0x1e56   : > { %p8397_p10 = scmp.ne.s32.totalorder %s12353_s17, 3 }
0x1e57   : > { %6506 = vmatpush1.bf16.msra.mxu0 %v9328_v7  ;;  %6670 = vmatpush1.bf16.msra.mxu1 %v9329_v58  ;;  %v9421_v7 = vld [vmem:[%s11017_s19 + $0x3cc] ss:$20 sps:$4 sm:$0xff]  }
0x1e58   : > { %6507 = vmatprep.subr.bf16.mxu0 %v9330_v42  ;;  %6671 = vmatprep.subr.bf16.mxu1 %v9332_v62  ;;  %v9416_v58 = vld [vmem:[%s11017_s19 + $0x3c0] ss:$20 sps:$4 sm:$0xff]   ;;  %v9419_v42 = vld [vmem:[%s11017_s19 + $0x3c8] ss:$20 sps:$4 sm:$0xff]  }
0x1e59   : > { %v9424_v62 = vld [vmem:[%s11017_s19 + $0x3ec] ss:$20 sps:$4 sm:$0xff]  }
0x1e5b   : > { %6508 = vmatpush1.bf16.msra.mxu0 %v9334_v45  ;;  %6672 = vmatpush1.bf16.msra.mxu1 %v9335_v39  ;;  %v9427_v45 = vld [vmem:[%s11017_s19 + $0x3f4] ss:$20 sps:$4 sm:$0xff]  }
0x1e5c   : > { %6509 = vmatprep.subr.bf16.mxu0 %v9336_v10  ;;  %6673 = vmatprep.subr.bf16.mxu1 %v9338_v24  ;;  %v9422_v39 = vld [vmem:[%s11017_s19 + $0x3e8] ss:$20 sps:$4 sm:$0xff]   ;;  %v9425_v10 = vld [vmem:[%s11017_s19 + $0x3f0] ss:$20 sps:$4 sm:$0xff]  }
0x1e5d   : > { %v9430_v24 = vld [vmem:[%s11017_s19 + $0x414] ss:$20 sps:$4 sm:$0xff]  }
0x1e5f   : > { %6510 = vmatpush1.bf16.msra.mxu0 %v9340_v51  ;;  %6674 = vmatpush1.bf16.msra.mxu1 %v9341_v47  ;;  %v9428_v51 = vld [vmem:[%s11017_s19 + $0x410] ss:$20 sps:$4 sm:$0xff]   ;;  %v9431_v47 = vld [vmem:[%s11017_s19 + $0x418] ss:$20 sps:$4 sm:$0xff]  }
0x1e60   : > { %6511 = vmatprep.subr.bf16.mxu0 %v9342_v5  ;;  %6675 = vmatprep.subr.bf16.mxu1 %v9344_v40  ;;  %v9436_v5 = vld [vmem:[%s11017_s19 + $0x43c] ss:$20 sps:$4 sm:$0xff]   ;;  %v9439_v40 = vld [vmem:[%s11017_s19 + $0x444] ss:$20 sps:$4 sm:$0xff]  }
0x1e63   : > { %6512 = vmatpush1.bf16.msra.mxu0 %v9346_v32  ;;  %6676 = vmatpush1.bf16.msra.mxu1 %v9347_v26  ;;  %v9434_v32 = vld [vmem:[%s11017_s19 + $0x438] ss:$20 sps:$4 sm:$0xff]   ;;  %v9437_v26 = vld [vmem:[%s11017_s19 + $0x440] ss:$20 sps:$4 sm:$0xff]  }
0x1e64   : > { %6513 = vmatprep.subr.bf16.mxu0 %v9348_v14  ;;  %6677 = vmatprep.subr.bf16.mxu1 %v9350_v36  ;;  %v9442_v14 = vld [vmem:[%s11017_s19 + $0x464] ss:$20 sps:$4 sm:$0xff]   ;;  %v9445_v36 = vld [vmem:[%s11017_s19 + $0x46c] ss:$20 sps:$4 sm:$0xff]  }
0x1e67   : > { %6514 = vmatpush1.bf16.msra.mxu0 %v9352_v59  ;;  %6678 = vmatpush1.bf16.msra.mxu1 %v9353_v12  ;;  %v9440_v59 = vld [vmem:[%s11017_s19 + $0x460] ss:$20 sps:$4 sm:$0xff]   ;;  %v9443_v12 = vld [vmem:[%s11017_s19 + $0x468] ss:$20 sps:$4 sm:$0xff]  }
0x1e68   : > { %6515 = vmatprep.subr.bf16.mxu0 %v9354_v9  ;;  %6679 = vmatprep.subr.bf16.mxu1 %v9356_v30  ;;  %v9448_v9 = vld [vmem:[%s11017_s19 + $0x48c] ss:$20 sps:$4 sm:$0xff]   ;;  %v9451_v30 = vld [vmem:[%s11017_s19 + $0x494] ss:$20 sps:$4 sm:$0xff]  }
0x1e6b   : > { %6516 = vmatpush1.bf16.msra.mxu0 %v9358_v1  ;;  %6680 = vmatpush1.bf16.msra.mxu1 %v9359_v13  ;;  %v9446_v1 = vld [vmem:[%s11017_s19 + $0x488] ss:$20 sps:$4 sm:$0xff]   ;;  %v9449_v13 = vld [vmem:[%s11017_s19 + $0x490] ss:$20 sps:$4 sm:$0xff]  }
0x1e6c   : > { %6517 = vmatprep.subr.bf16.mxu0 %v9360_v34  ;;  %6681 = vmatprep.subr.bf16.mxu1 %v9362_v20  ;;  %v9454_v34 = vld [vmem:[%s11017_s19 + $0x4b4] ss:$20 sps:$4 sm:$0xff]   ;;  %v9457_v20 = vld [vmem:[%s11017_s19 + $0x4bc] ss:$20 sps:$4 sm:$0xff]  }
0x1e6f   : > { %6518 = vmatpush1.bf16.msra.mxu0 %v9364_v63  ;;  %6682 = vmatpush1.bf16.msra.mxu1 %v9365_v60  ;;  %v9452_v63 = vld [vmem:[%s11017_s19 + $0x4b0] ss:$20 sps:$4 sm:$0xff]   ;;  %v9455_v60 = vld [vmem:[%s11017_s19 + $0x4b8] ss:$20 sps:$4 sm:$0xff]  }
0x1e70   : > { %6528 = vmatprep.subr.bf16.mxu0 %v9369_v57  ;;  %6692 = vmatprep.subr.bf16.mxu1 %v9372_v49  ;;  %v9460_v57 = vld [vmem:[%s11017_s19 + $0x4dc] ss:$20 sps:$4 sm:$0xff]   ;;  %v9463_v49 = vld [vmem:[%s11017_s19 + $0x4e4] ss:$20 sps:$4 sm:$0xff]  }
0x1e72   : > { %6520 = vmatmul.mubr.bf16.vlgmr.msra.gmra.mrb[0].mxu0 %v11780_v46  ;;  %6684 = vmatmul.mubr.bf16.vlgmr.msra.gmra.mrb[0].mxu1 %v11780_v46 }
0x1e73   : > { %6529 = vmatpush1.bf16.msra.mxu0 %v9367_v23  ;;  %6693 = vmatpush1.bf16.msra.mxu1 %v9370_v22  ;;  %v9458_v23 = vld [vmem:[%s11017_s19 + $0x4d8] ss:$20 sps:$4 sm:$0xff]   ;;  %v9461_v22 = vld [vmem:[%s11017_s19 + $0x4e0] ss:$20 sps:$4 sm:$0xff]  }
0x1e74   : > { %6530 = vmatprep.subr.bf16.mxu0 %v9376_v15  ;;  %6694 = vmatprep.subr.bf16.mxu1 %v9379_v17  ;;  %v9468_v15 = vld [vmem:[%s11017_s19 + $0x504] ss:$20 sps:$4 sm:$0xff]   ;;  %v9471_v17 = vld [vmem:[%s11017_s19 + $0x50c] ss:$20 sps:$4 sm:$0xff]  }
0x1e75   : > { %6560 = vmatprep.mubr.bf16.mxu0 %v11811_v37  ;;  %6724 = vmatprep.mubr.bf16.mxu1 %v11811_v37 }
0x1e77   : > { %6531 = vmatpush1.bf16.msra.mxu0 %v9374_v4  ;;  %6695 = vmatpush1.bf16.msra.mxu1 %v9377_v41  ;;  %v11857_v4 = vcombine.low %v11807_v28, %v11807_v28  ;;  %v9466_v41 = vld [vmem:[%s11017_s19 + $0x500] ss:$20 sps:$4 sm:$0xff]   ;;  %v9493_v28 = vld [vmem:[%s11017_s19 + $0x5a8] ss:$20 sps:$4 sm:$0xff]  }
0x1e78   : > { %6532 = vmatprep.subr.bf16.mxu0 %v9382_v2  ;;  %6696 = vmatprep.subr.bf16.mxu1 %v9385_v54  ;;  %v9469_v2 = vld [vmem:[%s11017_s19 + $0x508] ss:$20 sps:$4 sm:$0xff]   ;;  %v9474_v54 = vld [vmem:[%s11017_s19 + $0x52c] ss:$20 sps:$4 sm:$0xff]  }
0x1e7b   : > { %6533 = vmatpush1.bf16.msra.mxu0 %v9380_v48  ;;  %6697 = vmatpush1.bf16.msra.mxu1 %v9383_v31  ;;  %v11862_v48 = vld [vmem:[#allocation2 + $0x10] sm:$0xff] }
0x1e7c   : > { %6534 = vmatprep.subr.bf16.mxu0 %v9388_v44  ;;  %6698 = vmatprep.subr.bf16.mxu1 %v9391_v0  ;;  %v9477_v31 = vld [vmem:[%s11017_s19 + $0x534] ss:$20 sps:$4 sm:$0xff]   ;;  %v11867_v44 = vcombine.high %v11862_v48, %v11862_v48 }
0x1e7d   : > { %v9472_v0 = vld [vmem:[%s11017_s19 + $0x528] ss:$20 sps:$4 sm:$0xff]  }
0x1e7f   : > { %6535 = vmatpush1.bf16.msra.mxu0 %v9386_v50  ;;  %6699 = vmatpush1.bf16.msra.mxu1 %v9389_v18  ;;  %v9475_v50 = vld [vmem:[%s11017_s19 + $0x530] ss:$20 sps:$4 sm:$0xff]   ;;  %v9480_v18 = vld [vmem:[%s11017_s19 + $0x554] ss:$20 sps:$4 sm:$0xff]  }
0x1e80   : > { %6536 = vmatprep.subr.bf16.mxu0 %v9394_v56  ;;  %6700 = vmatprep.subr.bf16.mxu1 %v9397_v16  ;;  %v9483_v56 = vld [vmem:[%s11017_s19 + $0x55c] ss:$20 sps:$4 sm:$0xff]  }
0x1e81   : > { %v9478_v16 = vld [vmem:[%s11017_s19 + $0x550] ss:$20 sps:$4 sm:$0xff]  }
0x1e83   : > { %6537 = vmatpush1.bf16.msra.mxu0 %v9392_v21  ;;  %6701 = vmatpush1.bf16.msra.mxu1 %v9395_v38  ;;  %v9481_v21 = vld [vmem:[%s11017_s19 + $0x558] ss:$20 sps:$4 sm:$0xff]   ;;  %v9486_v38 = vld [vmem:[%s11017_s19 + $0x57c] ss:$20 sps:$4 sm:$0xff]  }
0x1e84   : > { %6538 = vmatprep.subr.bf16.mxu0 %v9400_v33  ;;  %6702 = vmatprep.subr.bf16.mxu1 %v9403_v3  ;;  %v9489_v33 = vld [vmem:[%s11017_s19 + $0x584] ss:$20 sps:$4 sm:$0xff]  }
0x1e85   : > { %v9484_v3 = vld [vmem:[%s11017_s19 + $0x578] ss:$20 sps:$4 sm:$0xff]  }
0x1e87   : > { %6539 = vmatpush1.bf16.msra.mxu0 %v9398_v55  ;;  %6703 = vmatpush1.bf16.msra.mxu1 %v9401_v8  ;;  %v9487_v55 = vld [vmem:[%s11017_s19 + $0x580] ss:$20 sps:$4 sm:$0xff]   ;;  %v9492_v8 = vld [vmem:[%s11017_s19 + $0x5a4] ss:$20 sps:$4 sm:$0xff]  }
0x1e88   : > { %6540 = vmatprep.subr.bf16.mxu0 %v9406_v29  ;;  %6704 = vmatprep.subr.bf16.mxu1 %v9409_v11  ;;  %v9495_v29 = vld [vmem:[%s11017_s19 + $0x5ac] ss:$20 sps:$4 sm:$0xff]  }
0x1e89   : > { %v9490_v11 = vld [vmem:[%s11017_s19 + $0x5a0] ss:$20 sps:$4 sm:$0xff]  }
0x1e8b   : > { %6541 = vmatpush1.bf16.msra.mxu0 %v9404_v19  ;;  %6705 = vmatpush1.bf16.msra.mxu1 %v9407_v53  ;;  %v9498_v19 = vld [vmem:[%s11017_s19 + $0x5cc] ss:$20 sps:$4 sm:$0xff]   ;;  %v9501_v53 = vld [vmem:[%s11017_s19 + $0x5d4] ss:$20 sps:$4 sm:$0xff]  }
0x1e8c   : > { %6542 = vmatprep.subr.bf16.mxu0 %v9412_v52  ;;  %6706 = vmatprep.subr.bf16.mxu1 %v9415_v61  ;;  %v9496_v52 = vld [vmem:[%s11017_s19 + $0x5c8] ss:$20 sps:$4 sm:$0xff]   ;;  %v9499_v61 = vld [vmem:[%s11017_s19 + $0x5d0] ss:$20 sps:$4 sm:$0xff]  }
0x1e8f   : > { %6543 = vmatpush1.bf16.msra.mxu0 %v9410_v35  ;;  %6707 = vmatpush1.bf16.msra.mxu1 %v9413_v25  ;;  %v9504_v35 = vld [vmem:[%s11017_s19 + $0x5f4] ss:$20 sps:$4 sm:$0xff]   ;;  %v9507_v25 = vld [vmem:[%s11017_s19 + $0x5fc] ss:$20 sps:$4 sm:$0xff]  }
0x1e90   : > { %6544 = vmatprep.subr.bf16.mxu0 %v9418_v27  ;;  %6708 = vmatprep.subr.bf16.mxu1 %v9421_v7  ;;  %v9502_v27 = vld [vmem:[%s11017_s19 + $0x5f0] ss:$20 sps:$4 sm:$0xff]   ;;  %v9505_v7 = vld [vmem:[%s11017_s19 + $0x5f8] ss:$20 sps:$4 sm:$0xff]  }
0x1e93   : > { %6545 = vmatpush1.bf16.msra.mxu0 %v9416_v58  ;;  %6709 = vmatpush1.bf16.msra.mxu1 %v9419_v42  ;;  %v9510_v58 = vld [vmem:[%s11017_s19 + $0x61c] ss:$20 sps:$4 sm:$0xff]   ;;  %v9513_v42 = vld [vmem:[%s11017_s19 + $0x624] ss:$20 sps:$4 sm:$0xff]  }
0x1e94   : > { %6546 = vmatprep.subr.bf16.mxu0 %v9424_v62  ;;  %6710 = vmatprep.subr.bf16.mxu1 %v9427_v45  ;;  %v9508_v62 = vld [vmem:[%s11017_s19 + $0x618] ss:$20 sps:$4 sm:$0xff]   ;;  %v9511_v45 = vld [vmem:[%s11017_s19 + $0x620] ss:$20 sps:$4 sm:$0xff]  }
0x1e97   : > { %6547 = vmatpush1.bf16.msra.mxu0 %v9422_v39  ;;  %6711 = vmatpush1.bf16.msra.mxu1 %v9425_v10  ;;  %v9516_v39 = vld [vmem:[%s11017_s19 + $0x644] ss:$20 sps:$4 sm:$0xff]   ;;  %v9519_v10 = vld [vmem:[%s11017_s19 + $0x64c] ss:$20 sps:$4 sm:$0xff]  }
0x1e98   : > { %6548 = vmatprep.subr.bf16.mxu0 %v9430_v24  ;;  %6712 = vmatprep.subr.bf16.mxu1 %v9433_v43  ;;  %v9514_v24 = vld [vmem:[%s11017_s19 + $0x640] ss:$20 sps:$4 sm:$0xff]   ;;  %v9517_v43 = vld [vmem:[%s11017_s19 + $0x648] ss:$20 sps:$4 sm:$0xff]  }
0x1e9b   : > { %6549 = vmatpush1.bf16.msra.mxu0 %v9428_v51  ;;  %6713 = vmatpush1.bf16.msra.mxu1 %v9431_v47  ;;  %v9522_v51 = vld [vmem:[%s11017_s19 + $0x66c] ss:$20 sps:$4 sm:$0xff]   ;;  %v9525_v47 = vld [vmem:[%s11017_s19 + $0x674] ss:$20 sps:$4 sm:$0xff]  }
0x1e9c   : > { %6550 = vmatprep.subr.bf16.mxu0 %v9436_v5  ;;  %6714 = vmatprep.subr.bf16.mxu1 %v9439_v40  ;;  %v9520_v5 = vld [vmem:[%s11017_s19 + $0x668] ss:$20 sps:$4 sm:$0xff]   ;;  %v9523_v40 = vld [vmem:[%s11017_s19 + $0x670] ss:$20 sps:$4 sm:$0xff]  }
0x1e9f   : > { %6551 = vmatpush1.bf16.msra.mxu0 %v9434_v32  ;;  %6715 = vmatpush1.bf16.msra.mxu1 %v9437_v26  ;;  %v9528_v32 = vld [vmem:[%s11017_s19 + $0x694] ss:$20 sps:$4 sm:$0xff]   ;;  %v9531_v26 = vld [vmem:[%s11017_s19 + $0x69c] ss:$20 sps:$4 sm:$0xff]  }
0x1ea0   : > { %6552 = vmatprep.subr.bf16.mxu0 %v9442_v14  ;;  %6716 = vmatprep.subr.bf16.mxu1 %v9445_v36  ;;  %v9526_v14 = vld [vmem:[%s11017_s19 + $0x690] ss:$20 sps:$4 sm:$0xff]   ;;  %v9529_v36 = vld [vmem:[%s11017_s19 + $0x698] ss:$20 sps:$4 sm:$0xff]  }
0x1ea3   : > { %6553 = vmatpush1.bf16.msra.mxu0 %v9440_v59  ;;  %6717 = vmatpush1.bf16.msra.mxu1 %v9443_v12  ;;  %v9534_v59 = vld [vmem:[%s11017_s19 + $0x6bc] ss:$20 sps:$4 sm:$0xff]   ;;  %v9537_v12 = vld [vmem:[%s11017_s19 + $0x6c4] ss:$20 sps:$4 sm:$0xff]  }
0x1ea4   : > { %6554 = vmatprep.subr.bf16.mxu0 %v9448_v9  ;;  %6718 = vmatprep.subr.bf16.mxu1 %v9451_v30  ;;  %v9532_v9 = vld [vmem:[%s11017_s19 + $0x6b8] ss:$20 sps:$4 sm:$0xff]   ;;  %v9535_v30 = vld [vmem:[%s11017_s19 + $0x6c0] ss:$20 sps:$4 sm:$0xff]  }
0x1ea7   : > { %6555 = vmatpush1.bf16.msra.mxu0 %v9446_v1  ;;  %6719 = vmatpush1.bf16.msra.mxu1 %v9449_v13  ;;  %v9540_v1 = vld [vmem:[%s11017_s19 + $0x6e4] ss:$20 sps:$4 sm:$0xff]   ;;  %v9543_v13 = vld [vmem:[%s11017_s19 + $0x6ec] ss:$20 sps:$4 sm:$0xff]  }
0x1ea8   : > { %6556 = vmatprep.subr.bf16.mxu0 %v9454_v34  ;;  %6720 = vmatprep.subr.bf16.mxu1 %v9457_v20  ;;  %v9538_v34 = vld [vmem:[%s11017_s19 + $0x6e0] ss:$20 sps:$4 sm:$0xff]   ;;  %v9541_v20 = vld [vmem:[%s11017_s19 + $0x6e8] ss:$20 sps:$4 sm:$0xff]  }
0x1eab   : > { %6557 = vmatpush1.bf16.msra.mxu0 %v9452_v63  ;;  %6721 = vmatpush1.bf16.msra.mxu1 %v9455_v60  ;;  %v9546_v63 = vld [vmem:[%s11017_s19 + $0x70c] ss:$20 sps:$4 sm:$0xff]   ;;  %v9549_v60 = vld [vmem:[%s11017_s19 + $0x714] ss:$20 sps:$4 sm:$0xff]  }
0x1eac   : > { %6558 = vmatprep.subr.bf16.mxu0 %v9460_v57  ;;  %6722 = vmatprep.subr.bf16.mxu1 %v9463_v49  ;;  %v9544_v57 = vld [vmem:[%s11017_s19 + $0x708] ss:$20 sps:$4 sm:$0xff]   ;;  %v9547_v49 = vld [vmem:[%s11017_s19 + $0x710] ss:$20 sps:$4 sm:$0xff]  }
0x1eaf   : > { %6559 = vmatpush1.bf16.msra.mxu0 %v9458_v23  ;;  %6723 = vmatpush1.bf16.msra.mxu1 %v9461_v22  ;;  %v9552_v23 = vld [vmem:[%s11017_s19 + $0x734] ss:$20 sps:$4 sm:$0xff]   ;;  %v9555_v22 = vld [vmem:[%s11017_s19 + $0x73c] ss:$20 sps:$4 sm:$0xff]  }
0x1eb0   : > { %6569 = vmatprep.subr.bf16.mxu0 %v9468_v15  ;;  %6733 = vmatprep.subr.bf16.mxu1 %v9471_v17  ;;  %v9550_v15 = vld [vmem:[%s11017_s19 + $0x730] ss:$20 sps:$4 sm:$0xff]   ;;  %v9553_v17 = vld [vmem:[%s11017_s19 + $0x738] ss:$20 sps:$4 sm:$0xff]  }
0x1eb2   : > { %6561 = vmatmul.mubr.bf16.vlgmr.msra.gmra.mrb[0].mxu0 %v11857_v4  ;;  %6725 = vmatmul.mubr.bf16.vlgmr.msra.gmra.mrb[0].mxu1 %v11857_v4 }
0x1eb3   : > { %6570 = vmatpush1.bf16.msra.mxu0 %v9466_v41  ;;  %6734 = vmatpush1.bf16.msra.mxu1 %v9469_v2  ;;  %v9558_v41 = vld [vmem:[%s11017_s19 + $0x75c] ss:$20 sps:$4 sm:$0xff]   ;;  %v9561_v2 = vld [vmem:[%s11017_s19 + $0x764] ss:$20 sps:$4 sm:$0xff]  }
0x1eb4   : > { %6571 = vmatprep.subr.bf16.mxu0 %v9474_v54  ;;  %6735 = vmatprep.subr.bf16.mxu1 %v9477_v31  ;;  %v9556_v54 = vld [vmem:[%s11017_s19 + $0x758] ss:$20 sps:$4 sm:$0xff]   ;;  %v9559_v31 = vld [vmem:[%s11017_s19 + $0x760] ss:$20 sps:$4 sm:$0xff]  }
0x1eb5   : > { %6601 = vmatprep.mubr.bf16.mxu0 %v11867_v44  ;;  %6765 = vmatprep.mubr.bf16.mxu1 %v11867_v44 }
0x1eb7   : > { %6572 = vmatpush1.bf16.msra.mxu0 %v9472_v0  ;;  %6736 = vmatpush1.bf16.msra.mxu1 %v9475_v50  ;;  %v9566_v0 = vld [vmem:[%s11017_s19 + $0x784] ss:$20 sps:$4 sm:$0xff]   ;;  %v9569_v50 = vld [vmem:[%s11017_s19 + $0x78c] ss:$20 sps:$4 sm:$0xff]  }
0x1eb8   : > { %6573 = vmatprep.subr.bf16.mxu0 %v9480_v18  ;;  %6737 = vmatprep.subr.bf16.mxu1 %v9483_v56  ;;  %v9564_v18 = vld [vmem:[%s11017_s19 + $0x780] ss:$20 sps:$4 sm:$0xff]   ;;  %v9567_v56 = vld [vmem:[%s11017_s19 + $0x788] ss:$20 sps:$4 sm:$0xff]  }
0x1ebb   : > { %6574 = vmatpush1.bf16.msra.mxu0 %v9478_v16  ;;  %6738 = vmatpush1.bf16.msra.mxu1 %v9481_v21  ;;  %v11937_v16 = vcombine.low %v11862_v48, %v11862_v48  ;;  %v11939_v21 = vld [vmem:[#allocation2 + $0x18] sm:$0xff] }
0x1ebc   : > { %6575 = vmatprep.subr.bf16.mxu0 %v9486_v38  ;;  %6739 = vmatprep.subr.bf16.mxu1 %v9489_v33  ;;  %v9572_v38 = vld [vmem:[%s11017_s19 + $0x7ac] ss:$20 sps:$4 sm:$0xff]   ;;  %v9575_v33 = vld [vmem:[%s11017_s19 + $0x7b4] ss:$20 sps:$4 sm:$0xff]   ;;  %v9573_v48 = vld [vmem:[%s11017_s19 + $0x7b0] ss:$20 sps:$4 sm:$0xff]  }
0x1ebf   : > { %6576 = vmatpush1.bf16.msra.mxu0 %v9484_v3  ;;  %6740 = vmatpush1.bf16.msra.mxu1 %v9487_v55  ;;  %v9570_v3 = vld [vmem:[%s11017_s19 + $0x7a8] ss:$20 sps:$4 sm:$0xff]   ;;  %v11946_v55 = vcombine.high %v11939_v21, %v11939_v21 }
0x1ec0   : > { %6577 = vmatprep.subr.bf16.mxu0 %v9492_v8  ;;  %6741 = vmatprep.subr.bf16.mxu1 %v9495_v29  ;;  %v9578_v8 = vld [vmem:[%s11017_s19 + $0x7d4] ss:$20 sps:$4 sm:$0xff]   ;;  %v9581_v29 = vld [vmem:[%s11017_s19 + $0x7dc] ss:$20 sps:$4 sm:$0xff]  }
0x1ec3   : > { %6578 = vmatpush1.bf16.msra.mxu0 %v9490_v11  ;;  %6742 = vmatpush1.bf16.msra.mxu1 %v9493_v28  ;;  %v9576_v11 = vld [vmem:[%s11017_s19 + $0x7d0] ss:$20 sps:$4 sm:$0xff]   ;;  %v9579_v28 = vld [vmem:[%s11017_s19 + $0x7d8] ss:$20 sps:$4 sm:$0xff]  }
0x1ec4   : > { %6579 = vmatprep.subr.bf16.mxu0 %v9498_v19  ;;  %6743 = vmatprep.subr.bf16.mxu1 %v9501_v53  ;;  %v9584_v19 = vld [vmem:[%s11017_s19 + $0x7fc] ss:$20 sps:$4 sm:$0xff]   ;;  %v9587_v53 = vld [vmem:[%s11017_s19 + $0x804] ss:$20 sps:$4 sm:$0xff]  }
0x1ec7   : > { %6580 = vmatpush1.bf16.msra.mxu0 %v9496_v52  ;;  %6744 = vmatpush1.bf16.msra.mxu1 %v9499_v61  ;;  %v9582_v52 = vld [vmem:[%s11017_s19 + $0x7f8] ss:$20 sps:$4 sm:$0xff]   ;;  %v9585_v61 = vld [vmem:[%s11017_s19 + $0x800] ss:$20 sps:$4 sm:$0xff]  }
0x1ec8   : > { %6581 = vmatprep.subr.bf16.mxu0 %v9504_v35  ;;  %6745 = vmatprep.subr.bf16.mxu1 %v9507_v25  ;;  %v9590_v35 = vld [vmem:[%s11017_s19 + $0x824] ss:$20 sps:$4 sm:$0xff]   ;;  %v9593_v25 = vld [vmem:[%s11017_s19 + $0x82c] ss:$20 sps:$4 sm:$0xff]  }
0x1ecb   : > { %6582 = vmatpush1.bf16.msra.mxu0 %v9502_v27  ;;  %6746 = vmatpush1.bf16.msra.mxu1 %v9505_v7  ;;  %v9588_v27 = vld [vmem:[%s11017_s19 + $0x820] ss:$20 sps:$4 sm:$0xff]   ;;  %v9591_v7 = vld [vmem:[%s11017_s19 + $0x828] ss:$20 sps:$4 sm:$0xff]  }
0x1ecc   : > { %6583 = vmatprep.subr.bf16.mxu0 %v9510_v58  ;;  %6747 = vmatprep.subr.bf16.mxu1 %v9513_v42  ;;  %v9596_v58 = vld [vmem:[%s11017_s19 + $0x84c] ss:$20 sps:$4 sm:$0xff]   ;;  %v9599_v42 = vld [vmem:[%s11017_s19 + $0x854] ss:$20 sps:$4 sm:$0xff]  }
0x1ecf   : > { %6584 = vmatpush1.bf16.msra.mxu0 %v9508_v62  ;;  %6748 = vmatpush1.bf16.msra.mxu1 %v9511_v45  ;;  %v9594_v62 = vld [vmem:[%s11017_s19 + $0x848] ss:$20 sps:$4 sm:$0xff]   ;;  %v9597_v45 = vld [vmem:[%s11017_s19 + $0x850] ss:$20 sps:$4 sm:$0xff]  }
0x1ed0   : > { %6585 = vmatprep.subr.bf16.mxu0 %v9516_v39  ;;  %6749 = vmatprep.subr.bf16.mxu1 %v9519_v10  ;;  %v9602_v39 = vld [vmem:[%s11017_s19 + $0x874] ss:$20 sps:$4 sm:$0xff]   ;;  %v9605_v10 = vld [vmem:[%s11017_s19 + $0x87c] ss:$20 sps:$4 sm:$0xff]  }
0x1ed3   : > { %6586 = vmatpush1.bf16.msra.mxu0 %v9514_v24  ;;  %6750 = vmatpush1.bf16.msra.mxu1 %v9517_v43  ;;  %v9600_v24 = vld [vmem:[%s11017_s19 + $0x870] ss:$20 sps:$4 sm:$0xff]   ;;  %v9603_v43 = vld [vmem:[%s11017_s19 + $0x878] ss:$20 sps:$4 sm:$0xff]  }
0x1ed4   : > { %6587 = vmatprep.subr.bf16.mxu0 %v9522_v51  ;;  %6751 = vmatprep.subr.bf16.mxu1 %v9525_v47  ;;  %v9608_v51 = vld [vmem:[%s11017_s19 + $0x89c] ss:$20 sps:$4 sm:$0xff]   ;;  %v9611_v47 = vld [vmem:[%s11017_s19 + $0x8a4] ss:$20 sps:$4 sm:$0xff]  }
0x1ed7   : > { %6588 = vmatpush1.bf16.msra.mxu0 %v9520_v5  ;;  %6752 = vmatpush1.bf16.msra.mxu1 %v9523_v40  ;;  %v9606_v5 = vld [vmem:[%s11017_s19 + $0x898] ss:$20 sps:$4 sm:$0xff]   ;;  %v9609_v40 = vld [vmem:[%s11017_s19 + $0x8a0] ss:$20 sps:$4 sm:$0xff]  }
0x1ed8   : > { %6589 = vmatprep.subr.bf16.mxu0 %v9528_v32  ;;  %6753 = vmatprep.subr.bf16.mxu1 %v9531_v26  ;;  %v9614_v32 = vld [vmem:[%s11017_s19 + $0x8c4] ss:$20 sps:$4 sm:$0xff]   ;;  %v9617_v26 = vld [vmem:[%s11017_s19 + $0x8cc] ss:$20 sps:$4 sm:$0xff]  }
0x1edb   : > { %6590 = vmatpush1.bf16.msra.mxu0 %v9526_v14  ;;  %6754 = vmatpush1.bf16.msra.mxu1 %v9529_v36  ;;  %v9612_v14 = vld [vmem:[%s11017_s19 + $0x8c0] ss:$20 sps:$4 sm:$0xff]   ;;  %v9615_v36 = vld [vmem:[%s11017_s19 + $0x8c8] ss:$20 sps:$4 sm:$0xff]  }
0x1edc   : > { %6591 = vmatprep.subr.bf16.mxu0 %v9534_v59  ;;  %6755 = vmatprep.subr.bf16.mxu1 %v9537_v12  ;;  %v9620_v59 = vld [vmem:[%s11017_s19 + $0x8ec] ss:$20 sps:$4 sm:$0xff]   ;;  %v9623_v12 = vld [vmem:[%s11017_s19 + $0x8f4] ss:$20 sps:$4 sm:$0xff]  }
0x1edf   : > { %6592 = vmatpush1.bf16.msra.mxu0 %v9532_v9  ;;  %6756 = vmatpush1.bf16.msra.mxu1 %v9535_v30  ;;  %v4785_v9 = vld [vmem:[%s11017_s19 + $0x9b0] sm:$0xff]  ;;  %v4786_v30 = vld [vmem:[%s11017_s19 + $0x9b8] sm:$0xff] }
0x1ee0   : > { %6593 = vmatprep.subr.bf16.mxu0 %v9540_v1  ;;  %6757 = vmatprep.subr.bf16.mxu1 %v9543_v13  ;;  %v9618_v1 = vld [vmem:[%s11017_s19 + $0x8e8] ss:$20 sps:$4 sm:$0xff]   ;;  %v9621_v13 = vld [vmem:[%s11017_s19 + $0x8f0] ss:$20 sps:$4 sm:$0xff]  }
0x1ee3   : > { %6594 = vmatpush1.bf16.msra.mxu0 %v9538_v34  ;;  %6758 = vmatpush1.bf16.msra.mxu1 %v9541_v20  ;;  %v9626_v34 = vld [vmem:[%s11017_s19 + $0x914] ss:$20 sps:$4 sm:$0xff]   ;;  %v8347_v20 = vcombine.low %v4785_v9, %v4785_v9 }
0x1ee4   : > { %6595 = vmatprep.subr.bf16.mxu0 %v9546_v63  ;;  %6759 = vmatprep.subr.bf16.mxu1 %v9549_v60  ;;  %v8349_v63 = vcombine.low %v4786_v30, %v4786_v30  ;;  %v9629_v60 = vld [vmem:[%s11017_s19 + $0x91c] ss:$20 sps:$4 sm:$0xff]  }
0x1ee7   : > { %6596 = vmatpush1.bf16.msra.mxu0 %v9544_v57  ;;  %6760 = vmatpush1.bf16.msra.mxu1 %v9547_v49  ;;  %v9624_v57 = vld [vmem:[%s11017_s19 + $0x910] ss:$20 sps:$4 sm:$0xff]   ;;  %v9627_v49 = vld [vmem:[%s11017_s19 + $0x918] ss:$20 sps:$4 sm:$0xff]  }
0x1ee8   : > { %6597 = vmatprep.subr.bf16.mxu0 %v9552_v23  ;;  %6761 = vmatprep.subr.bf16.mxu1 %v9555_v22  ;;  %v9632_v23 = vld [vmem:[%s11017_s19 + $0x93c] ss:$20 sps:$4 sm:$0xff]   ;;  %v9635_v22 = vld [vmem:[%s11017_s19 + $0x944] ss:$20 sps:$4 sm:$0xff]  }
0x1eeb   : > { %6598 = vmatpush1.bf16.msra.mxu0 %v9550_v15  ;;  %6762 = vmatpush1.bf16.msra.mxu1 %v9553_v17  ;;  %v6473_v15 = vsel %vm6471_vm7, %v8347_v20, 0  ;;  %v6479_v17 = vsel %vm6471_vm7, %v8349_v63, 0  ;;  %v9690_v20 = vld [vmem:[%s11017_s19 + $0x538] ss:$20 sps:$4 sm:$0xff]  }
0x1eec   : > { %6599 = vmatprep.subr.bf16.mxu0 %v9558_v41  ;;  %6763 = vmatprep.subr.bf16.mxu1 %v9561_v2  ;;  %v9630_v41 = vld [vmem:[%s11017_s19 + $0x938] ss:$20 sps:$4 sm:$0xff]   ;;  %v9633_v2 = vld [vmem:[%s11017_s19 + $0x940] ss:$20 sps:$4 sm:$0xff]  }
0x1eed   : > { %v9691_v63 = vld [vmem:[%s11017_s19 + $0x7b8] ss:$20 sps:$4 sm:$0xff]  }
0x1eef   : > { %6600 = vmatpush1.bf16.msra.mxu0 %v9556_v54  ;;  %6764 = vmatpush1.bf16.msra.mxu1 %v9559_v31  ;;  %v9638_v54 = vld [vmem:[%s11017_s19 + $0x964] ss:$20 sps:$4 sm:$0xff]   ;;  %v9641_v31 = vld [vmem:[%s11017_s19 + $0x96c] ss:$20 sps:$4 sm:$0xff]  }
0x1ef0   : > { %6610 = vmatprep.subr.bf16.mxu0 %v9566_v0  ;;  %6774 = vmatprep.subr.bf16.mxu1 %v9569_v50  ;;  %v9636_v0 = vld [vmem:[%s11017_s19 + $0x960] ss:$20 sps:$4 sm:$0xff]   ;;  %v9639_v50 = vld [vmem:[%s11017_s19 + $0x968] ss:$20 sps:$4 sm:$0xff]  }
0x1ef2   : > { %6602 = vmatmul.mubr.bf16.vlgmr.msra.gmra.mrb[0].mxu0 %v11937_v16  ;;  %6766 = vmatmul.mubr.bf16.vlgmr.msra.gmra.mrb[0].mxu1 %v11937_v16 }
0x1ef3   : > { %6611 = vmatpush1.bf16.msra.mxu0 %v9564_v18  ;;  %6775 = vmatpush1.bf16.msra.mxu1 %v9567_v56  ;;  %v9644_v18 = vld [vmem:[%s11017_s19 + $0x98c] ss:$20 sps:$4 sm:$0xff]   ;;  %v9647_v56 = vld [vmem:[%s11017_s19 + $0x994] ss:$20 sps:$4 sm:$0xff]  }
0x1ef4   : > { %6612 = vmatprep.subr.bf16.mxu0 %v9572_v38  ;;  %6776 = vmatprep.subr.bf16.mxu1 %v9575_v33  ;;  %v9642_v38 = vld [vmem:[%s11017_s19 + $0x988] ss:$20 sps:$4 sm:$0xff]   ;;  %v9645_v33 = vld [vmem:[%s11017_s19 + $0x990] ss:$20 sps:$4 sm:$0xff]  }
0x1ef5   : > { %8353 = vmatprep.mubr.msk.bf16.mxu0 %vm6467_vm6, %v11946_v55  ;;  %8355 = vmatprep.mubr.msk.bf16.mxu1 %vm6467_vm6, %v11946_v55 }
0x1ef7   : > { %6613 = vmatpush1.bf16.msra.mxu0 %v9570_v3  ;;  %6777 = vmatpush1.bf16.msra.mxu1 %v9573_v48  ;;  %v8348_v3 = vcombine.high %v4785_v9, %v4785_v9  ;;  %v8350_v48 = vcombine.high %v4786_v30, %v4786_v30  ;;  %v9686_v9 = vld [vmem:[%s11017_s19 + $0x650] ss:$20 sps:$4 sm:$0xff]  }
0x1ef8   : > { %6614 = vmatprep.subr.bf16.mxu0 %v9578_v8  ;;  %6778 = vmatprep.subr.bf16.mxu1 %v9581_v29  ;;  %v9654_v8 = vld [vmem:[%s11017_s19 + $0x150] ss:$20 sps:$4 sm:$0xff]  }
0x1ef9   : > { %v9655_v29 = vld [vmem:[%s11017_s19 + $0x3d0] ss:$20 sps:$4 sm:$0xff]  }
0x1efa   : > { %v9687_v30 = vld [vmem:[%s11017_s19 + $0x510] ss:$20 sps:$4 sm:$0xff]  }
0x1efb   : > { %6615 = vmatpush1.bf16.msra.mxu0 %v9576_v11  ;;  %6779 = vmatpush1.bf16.msra.mxu1 %v9579_v28  ;;  %v9656_v11 = vld [vmem:[%s11017_s19 + $0x10] ss:$20 sps:$4 sm:$0xff]  }
0x1efc   : > { %6616 = vmatprep.subr.bf16.mxu0 %v9584_v19  ;;  %6780 = vmatprep.subr.bf16.mxu1 %v9587_v53  ;;  %v9657_v28 = vld [vmem:[%s11017_s19 + $0x290] ss:$20 sps:$4 sm:$0xff]   ;;  %v12015_v19 = vcombine.low %v11939_v21, %v11939_v21  ;;  %v9658_v53 = vld [vmem:[%s11017_s19 + $0x178] ss:$20 sps:$4 sm:$0xff]   ;;  %v9664_v21 = vld [vmem:[%s11017_s19 + $0x60] ss:$20 sps:$4 sm:$0xff]  }
0x1eff   : > { %6617 = vmatpush1.bf16.msra.mxu0 %v9582_v52  ;;  %6781 = vmatpush1.bf16.msra.mxu1 %v9585_v61  ;;  %v9659_v52 = vld [vmem:[%s11017_s19 + $0x3f8] ss:$20 sps:$4 sm:$0xff]  }
0x1f00   : > { %6618 = vmatprep.subr.bf16.mxu0 %v9590_v35  ;;  %6782 = vmatprep.subr.bf16.mxu1 %v9593_v25  ;;  %v9660_v61 = vld [vmem:[%s11017_s19 + $0x38] ss:$20 sps:$4 sm:$0xff]   ;;  %v9662_v25 = vld [vmem:[%s11017_s19 + $0x1a0] ss:$20 sps:$4 sm:$0xff]  }
0x1f01   : > { %v9661_v35 = vld [vmem:[%s11017_s19 + $0x2b8] ss:$20 sps:$4 sm:$0xff]  }
0x1f03   : > { %6619 = vmatpush1.bf16.msra.mxu0 %v9588_v27  ;;  %6783 = vmatpush1.bf16.msra.mxu1 %v9591_v7  ;;  %v9663_v27 = vld [vmem:[%s11017_s19 + $0x420] ss:$20 sps:$4 sm:$0xff]  }
0x1f04   : > { %6620 = vmatprep.subr.bf16.mxu0 %v9596_v58  ;;  %6784 = vmatprep.subr.bf16.mxu1 %v9599_v42  ;;  %v9665_v7 = vld [vmem:[%s11017_s19 + $0x2e0] ss:$20 sps:$4 sm:$0xff]   ;;  %v9666_v58 = vld [vmem:[%s11017_s19 + $0x1c8] ss:$20 sps:$4 sm:$0xff]  }
0x1f05   : > { %v9667_v42 = vld [vmem:[%s11017_s19 + $0x448] ss:$20 sps:$4 sm:$0xff]  }
0x1f07   : > { %6621 = vmatpush1.bf16.msra.mxu0 %v9594_v62  ;;  %6785 = vmatpush1.bf16.msra.mxu1 %v9597_v45  ;;  %v9668_v62 = vld [vmem:[%s11017_s19 + $0x88] ss:$20 sps:$4 sm:$0xff]   ;;  %v9671_v45 = vld [vmem:[%s11017_s19 + $0x470] ss:$20 sps:$4 sm:$0xff]  }
0x1f08   : > { %6622 = vmatprep.subr.bf16.mxu0 %v9602_v39  ;;  %6786 = vmatprep.subr.bf16.mxu1 %v9605_v10  ;;  %v9672_v39 = vld [vmem:[%s11017_s19 + $0xb0] ss:$20 sps:$4 sm:$0xff]  }
0x1f09   : > { %v9673_v10 = vld [vmem:[%s11017_s19 + $0x330] ss:$20 sps:$4 sm:$0xff]  }
0x1f0b   : > { %6623 = vmatpush1.bf16.msra.mxu0 %v9600_v24  ;;  %6787 = vmatpush1.bf16.msra.mxu1 %v9603_v43  ;;  %v9674_v24 = vld [vmem:[%s11017_s19 + $0x218] ss:$20 sps:$4 sm:$0xff]  }
0x1f0c   : > { %6624 = vmatprep.subr.bf16.mxu0 %v9608_v51  ;;  %6788 = vmatprep.subr.bf16.mxu1 %v9611_v47  ;;  %v9675_v43 = vld [vmem:[%s11017_s19 + $0x498] ss:$20 sps:$4 sm:$0xff]  }
0x1f0d   : > { %v9676_v51 = vld [vmem:[%s11017_s19 + $0xd8] ss:$20 sps:$4 sm:$0xff]  }
0x1f0e   : > { %v9677_v47 = vld [vmem:[%s11017_s19 + $0x358] ss:$20 sps:$4 sm:$0xff]  }
0x1f0f   : > { %6625 = vmatpush1.bf16.msra.mxu0 %v9606_v5  ;;  %6789 = vmatpush1.bf16.msra.mxu1 %v9609_v40  ;;  %v9678_v5 = vld [vmem:[%s11017_s19 + $0x240] ss:$20 sps:$4 sm:$0xff]  }
0x1f10   : > { %6626 = vmatprep.subr.bf16.mxu0 %v9614_v32  ;;  %6790 = vmatprep.subr.bf16.mxu1 %v9617_v26  ;;  %v9679_v40 = vld [vmem:[%s11017_s19 + $0x4c0] ss:$20 sps:$4 sm:$0xff]  }
0x1f11   : > { %v9680_v32 = vld [vmem:[%s11017_s19 + $0x100] ss:$20 sps:$4 sm:$0xff]  }
0x1f12   : > { %v9681_v26 = vld [vmem:[%s11017_s19 + $0x380] ss:$20 sps:$4 sm:$0xff]  }
0x1f13   : > { %6627 = vmatpush1.bf16.msra.mxu0 %v9612_v14  ;;  %6791 = vmatpush1.bf16.msra.mxu1 %v9615_v36  ;;  %v9682_v14 = vld [vmem:[%s11017_s19 + $0x268] ss:$20 sps:$4 sm:$0xff]  }
0x1f14   : > { %6628 = vmatprep.subr.bf16.mxu0 %v9620_v59  ;;  %6792 = vmatprep.subr.bf16.mxu1 %v9623_v12  ;;  %v9683_v36 = vld [vmem:[%s11017_s19 + $0x4e8] ss:$20 sps:$4 sm:$0xff]  }
0x1f15   : > { %v9684_v59 = vld [vmem:[%s11017_s19 + $0x128] ss:$20 sps:$4 sm:$0xff]  }
0x1f16   : > { %v9685_v12 = vld [vmem:[%s11017_s19 + $0x3a8] ss:$20 sps:$4 sm:$0xff]  }
0x1f17   : > { %6629 = vmatpush1.bf16.msra.mxu0 %v9618_v1  ;;  %6793 = vmatpush1.bf16.msra.mxu1 %v9621_v13  ;;  %v9688_v1 = vld [vmem:[%s11017_s19 + $0x790] ss:$20 sps:$4 sm:$0xff]   ;;  %v10412_v13 = vmov 0  }
0x1f18   : > { %6630 = vmatprep.subr.bf16.mxu0 %v9626_v34  ;;  %6794 = vmatprep.subr.bf16.mxu1 %v9629_v60  ;;  %v9689_v34 = vld [vmem:[%s11017_s19 + $0x678] ss:$20 sps:$4 sm:$0xff]   ;;  %v9692_v60 = vld [vmem:[%s11017_s19 + $0x6a0] ss:$20 sps:$4 sm:$0xff]  }
0x1f1b   : > { %6631 = vmatpush1.bf16.msra.mxu0 %v9624_v57  ;;  %6795 = vmatpush1.bf16.msra.mxu1 %v9627_v49  ;;  %v9695_v57 = vld [vmem:[%s11017_s19 + $0x6c8] ss:$20 sps:$4 sm:$0xff]  }
0x1f1c   : > { %6632 = vmatprep.subr.bf16.mxu0 %v9632_v23  ;;  %6796 = vmatprep.subr.bf16.mxu1 %v9635_v22  ;;  %v9696_v49 = vld [vmem:[%s11017_s19 + $0x588] ss:$20 sps:$4 sm:$0xff]   ;;  %v9699_v23 = vld [vmem:[%s11017_s19 + $0x5b0] ss:$20 sps:$4 sm:$0xff]  }
0x1f1d   : > { %v9700_v22 = vld [vmem:[%s11017_s19 + $0x830] ss:$20 sps:$4 sm:$0xff]  }
0x1f1f   : > { %6633 = vmatpush1.bf16.msra.mxu0 %v9630_v41  ;;  %6797 = vmatpush1.bf16.msra.mxu1 %v9633_v2  ;;  %v9703_v41 = vld [vmem:[%s11017_s19 + $0x858] ss:$20 sps:$4 sm:$0xff]   ;;  %v9704_v2 = vld [vmem:[%s11017_s19 + $0x740] ss:$20 sps:$4 sm:$0xff]  }
0x1f20   : > { %6634 = vmatprep.subr.bf16.mxu0 %v9638_v54  ;;  %6798 = vmatprep.subr.bf16.mxu1 %v9641_v31  ;;  %v9705_v54 = vld [vmem:[%s11017_s19 + $0x600] ss:$20 sps:$4 sm:$0xff]  }
0x1f21   : > { %v9706_v31 = vld [vmem:[%s11017_s19 + $0x880] ss:$20 sps:$4 sm:$0xff]  }
0x1f23   : > { %6635 = vmatpush1.bf16.msra.mxu0 %v9636_v0  ;;  %6799 = vmatpush1.bf16.msra.mxu1 %v9639_v50  ;;  %v9707_v0 = vld [vmem:[%s11017_s19 + $0x768] ss:$20 sps:$4 sm:$0xff]  }
0x1f24   : > { %6636 = vmatprep.subr.bf16.mxu0 %v9644_v18  ;;  %6800 = vmatprep.subr.bf16.mxu1 %v9647_v56  ;;  %v9708_v50 = vld [vmem:[%s11017_s19 + $0x628] ss:$20 sps:$4 sm:$0xff]   ;;  %v9710_v56 = vld [vmem:[%s11017_s19 + $0x8d0] ss:$20 sps:$4 sm:$0xff]  }
0x1f25   : > { %v9709_v18 = vld [vmem:[%s11017_s19 + $0x8a8] ss:$20 sps:$4 sm:$0xff]  }
0x1f27   : > { %6637 = vmatpush1.bf16.msra.mxu0 %v9642_v38  ;;  %6801 = vmatpush1.bf16.msra.mxu1 %v9645_v33  ;;  %v9711_v38 = vld [vmem:[%s11017_s19 + $0x8f8] ss:$20 sps:$4 sm:$0xff]   ;;  %v9712_v33 = vld [vmem:[%s11017_s19 + $0x920] ss:$20 sps:$4 sm:$0xff]  }
0x1f28   : > { %8352 = vmatprep.subr.msk.bf16.mxu0 %vm6471_vm7, %v8348_v3  ;;  %8354 = vmatprep.subr.msk.bf16.mxu1 %vm6471_vm7, %v8350_v48  ;;  %v9713_v3 = vld [vmem:[%s11017_s19 + $0x948] ss:$20 sps:$4 sm:$0xff]   ;;  %v9714_v48 = vld [vmem:[%s11017_s19 + $0x970] ss:$20 sps:$4 sm:$0xff]  }
0x1f2b   : > { %6639 = vmatpush1.bf16.msra.mxu0 %v6473_v15  ;;  %6803 = vmatpush1.bf16.msra.mxu1 %v6479_v17  ;;  %v9701_v15 = vld [vmem:[%s11017_s19 + $0x718] ss:$20 sps:$4 sm:$0xff]  }
0x1f2c   : > { %8515 = vmatprep.subr.bf16.mxu0 %v9654_v8  ;;  %8537 = vmatprep.subr.bf16.mxu1 %v9655_v29  ;;  %v9702_v17 = vld [vmem:[%s11017_s19 + $0x5d8] ss:$20 sps:$4 sm:$0xff]   ;;  %v9716_v8 = vld [vmem:[%s11017_s19 + $0x9c0] ss:$0 sps:$4 sm:$0xff]  }
0x1f2d   : > { %v6485_v29 = vsel %vm6471_vm7, %v9716_v8, 0 }
0x1f2e   : > { %6643 = vmatmul.mubr.bf16.vlgmr.msra.gmra.mrb[0].mxu0 %v12015_v19  ;;  %6807 = vmatmul.mubr.bf16.vlgmr.msra.gmra.mrb[0].mxu1 %v12015_v19 }
0x1f2f   : > { %8516 = vmatpush3.bf16.msra.mxu0 %v9656_v11  ;;  %8538 = vmatpush3.bf16.msra.mxu1 %v9657_v28  ;;  %v9717_v11 = vld [vmem:[%s11025_s14 + $0x40] sm:$0xff]  }
0x1f30   : > { %8517 = vmatprep.subr.bf16.mxu0 %v9658_v53  ;;  %8539 = vmatprep.subr.bf16.mxu1 %v9659_v52  ;;  %v9718_v28 = vld [vmem:[%s11025_s14 + $0xc0] sm:$0xff]  }
0x1f31   : > { %6847 = vmatprep.mubr.bf16.mxu0 %v11756_v6  ;;  %6887 = vmatprep.mubr.bf16.mxu1 %v11811_v37  ;;  %v9669_v6 = vld [vmem:[%s11017_s19 + $0x308] ss:$20 sps:$4 sm:$0xff]   ;;  %v9670_v37 = vld [vmem:[%s11017_s19 + $0x1f0] ss:$20 sps:$4 sm:$0xff]  }
0x1f32   : > { %v9719_v53 = vld [vmem:[%s11025_s14] sm:$0xff]  }
0x1f33   : > { %8518 = vmatpush3.bf16.msra.mxu0 %v9660_v61  ;;  %8540 = vmatpush3.bf16.msra.mxu1 %v9661_v35  ;;  %v9720_v52 = vld [vmem:[%s11025_s14 + $0x80] sm:$0xff]   ;;  %v9721_v61 = vld [vmem:[%s11025_s14 + $0x48] sm:$0xff]  }
0x1f34   : > { %8519 = vmatprep.subr.bf16.mxu0 %v9662_v25  ;;  %8541 = vmatprep.subr.bf16.mxu1 %v9663_v27  ;;  %v9722_v35 = vld [vmem:[%s11025_s14 + $0xc8] sm:$0xff]  }
0x1f35   : > { %v9723_v25 = vld [vmem:[%s11025_s14 + $0x8] sm:$0xff]  }
0x1f36   : > { %v9724_v27 = vld [vmem:[%s11025_s14 + $0x88] sm:$0xff]  }
0x1f37   : > { %8520 = vmatpush3.bf16.msra.mxu0 %v9664_v21  ;;  %8542 = vmatpush3.bf16.msra.mxu1 %v9665_v7  ;;  %v9726_v21 = vld [vmem:[%s11025_s14 + $0xd0] sm:$0xff]  }
0x1f38   : > { %8521 = vmatprep.subr.bf16.mxu0 %v9666_v58  ;;  %8543 = vmatprep.subr.bf16.mxu1 %v9667_v42  ;;  %v9727_v7 = vld [vmem:[%s11025_s14 + $0x10] sm:$0xff]   ;;  %v9729_v42 = vld [vmem:[%s11025_s14 + $0x58] sm:$0xff]  }
0x1f39   : > { %v9728_v58 = vld [vmem:[%s11025_s14 + $0x90] sm:$0xff]  }
0x1f3b   : > { %8522 = vmatpush3.bf16.msra.mxu0 %v9668_v62  ;;  %8544 = vmatpush3.bf16.msra.mxu1 %v9669_v6  ;;  %v9730_v62 = vld [vmem:[%s11025_s14 + $0xd8] sm:$0xff]  }
0x1f3c   : > { %8523 = vmatprep.subr.bf16.mxu0 %v9670_v37  ;;  %8545 = vmatprep.subr.bf16.mxu1 %v9671_v45  ;;  %v9731_v6 = vld [vmem:[%s11025_s14 + $0x18] sm:$0xff]   ;;  %v9733_v45 = vld [vmem:[%s11025_s14 + $0x60] sm:$0xff]  }
0x1f3d   : > { %v9732_v37 = vld [vmem:[%s11025_s14 + $0x98] sm:$0xff]  }
0x1f3f   : > { %8524 = vmatpush3.bf16.msra.mxu0 %v9672_v39  ;;  %8546 = vmatpush3.bf16.msra.mxu1 %v9673_v10  ;;  %v9734_v39 = vld [vmem:[%s11025_s14 + $0xe0] sm:$0xff]  }
0x1f40   : > { %8525 = vmatprep.subr.bf16.mxu0 %v9674_v24  ;;  %8547 = vmatprep.subr.bf16.mxu1 %v9675_v43  ;;  %v9735_v10 = vld [vmem:[%s11025_s14 + $0x20] sm:$0xff]   ;;  %v9737_v43 = vld [vmem:[%s11025_s14 + $0x68] sm:$0xff]  }
0x1f41   : > { %v9736_v24 = vld [vmem:[%s11025_s14 + $0xa0] sm:$0xff]  }
0x1f43   : > { %8526 = vmatpush3.bf16.msra.mxu0 %v9676_v51  ;;  %8548 = vmatpush3.bf16.msra.mxu1 %v9677_v47  ;;  %v9738_v51 = vld [vmem:[%s11025_s14 + $0xe8] sm:$0xff]  }
0x1f44   : > { %8527 = vmatprep.subr.bf16.mxu0 %v9678_v5  ;;  %8549 = vmatprep.subr.bf16.mxu1 %v9679_v40  ;;  %v9739_v47 = vld [vmem:[%s11025_s14 + $0x28] sm:$0xff]   ;;  %v9741_v40 = vld [vmem:[%s11025_s14 + $0x70] sm:$0xff]  }
0x1f45   : > { %v9740_v5 = vld [vmem:[%s11025_s14 + $0xa8] sm:$0xff]  }
0x1f47   : > { %8528 = vmatpush3.bf16.msra.mxu0 %v9680_v32  ;;  %8550 = vmatpush3.bf16.msra.mxu1 %v9681_v26  ;;  %v9742_v32 = vld [vmem:[%s11025_s14 + $0xf0] sm:$0xff]  }
0x1f48   : > { %8529 = vmatprep.subr.bf16.mxu0 %v9682_v14  ;;  %8551 = vmatprep.subr.bf16.mxu1 %v9683_v36  ;;  %v9743_v26 = vld [vmem:[%s11025_s14 + $0x30] sm:$0xff]   ;;  %v9745_v36 = vld [vmem:[%s11025_s14 + $0x78] sm:$0xff]  }
0x1f49   : > { %v9744_v14 = vld [vmem:[%s11025_s14 + $0xb0] sm:$0xff]  }
0x1f4b   : > { %8530 = vmatpush3.bf16.msra.mxu0 %v9684_v59  ;;  %8552 = vmatpush3.bf16.msra.mxu1 %v9685_v12  ;;  %v9746_v59 = vld [vmem:[%s11025_s14 + $0xf8] sm:$0xff]  }
0x1f4c   : > { %8559 = vmatprep.subr.bf16.mxu0 %v9686_v9  ;;  %6935 = vmatprep.subr.bf16.mxu1 %v10412_v13  ;;  %v9747_v12 = vld [vmem:[%s11025_s14 + $0x38] sm:$0xff]  }
0x1f4d   : > { %v9748_v9 = vld [vmem:[%s11025_s14 + $0xb8] sm:$0xff]  }
0x1f4e   : > { %6848 = vmatmul.mubr.bf16.vlgmr.msra.gmra.mrb[4].mxu0 %v11780_v46  ;;  %6888 = vmatmul.mubr.bf16.vlgmr.msra.gmra.mrb[4].mxu1 %v11857_v4  ;;  %v9693_v46 = vld [vmem:[%s11017_s19 + $0x560] ss:$20 sps:$4 sm:$0xff]  }
0x1f4f   : > { %8560 = vmatpush3.bf16.msra.mxu0 %v9687_v30  ;;  %6936 = vmatpush1.bf16.msra.mxu1 %v9688_v1  ;;  %v9694_v4 = vld [vmem:[%s11017_s19 + $0x7e0] ss:$20 sps:$4 sm:$0xff]   ;;  %v4790_v30 = vlaneseq }
0x1f50   : > { %8561 = vmatprep.subr.bf16.mxu0 %v9689_v34  ;;  %6937 = vmatprep.subr.bf16.mxu1 %v10412_v13 }
0x1f51   : > { %6927 = vmatprep.mubr.bf16.mxu0 %v11867_v44  ;;  %8356 = vmatprep.mubr.msk.bf16.mxu1 %vm6467_vm6, %v11946_v55  ;;  %v9697_v44 = vld [vmem:[%s11017_s19 + $0x808] ss:$20 sps:$4 sm:$0xff]   ;;  %v9698_v55 = vld [vmem:[%s11017_s19 + $0x6f0] ss:$20 sps:$4 sm:$0xff]   ;;  %v12135_v1 = vshrl.u32 %v4790_v30, 7 }
0x1f53   : > { %8562 = vmatpush3.bf16.msra.mxu0 %v9690_v20  ;;  %6938 = vmatpush1.bf16.msra.mxu1 %v9691_v63  ;;  %v4792_v34 = vsub.s32 0, %v12135_v1  ;;  %v4800_v20 = vsub.s32 2, %v12135_v1  ;;  %v12141_v63 = vld [vmem:[%s11023_s20] sm:$0x1f] }
0x1f54   : > { %8563 = vmatprep.subr.bf16.mxu0 %v9692_v60  ;;  %6939 = vmatprep.subr.bf16.mxu1 %v10412_v13  ;;  %v4796_v60 = vsub.s32 1, %v12135_v1 }
0x1f57   : > { %8564 = vmatpush3.bf16.msra.mxu0 %v9693_v46  ;;  %6940 = vmatpush1.bf16.msra.mxu1 %v9694_v4  ;;  %v4804_v46 = vsub.s32 3, %v12135_v1  ;;  %v4793_v4 = vrot.slane %v12141_v63, %v4792_v34 }
0x1f58   : > { %8565 = vmatprep.subr.bf16.mxu0 %v9695_v57  ;;  %6941 = vmatprep.subr.bf16.mxu1 %v10412_v13  ;;  %v4801_v57 = vrot.slane %v12141_v63, %v4800_v20 }
0x1f5b   : > { %8566 = vmatpush3.bf16.msra.mxu0 %v9696_v49  ;;  %6942 = vmatpush1.bf16.msra.mxu1 %v9697_v44  ;;  %v4797_v49 = vrot.slane %v12141_v63, %v4796_v60  ;;  %v4805_v44 = vrot.slane %v12141_v63, %v4804_v46 }
0x1f5c   : > { %8567 = vmatprep.subr.bf16.mxu0 %v9698_v55  ;;  %6943 = vmatprep.subr.bf16.mxu1 %v10412_v13 }
0x1f5f   : > { %8568 = vmatpush3.bf16.msra.mxu0 %v9699_v23  ;;  %6944 = vmatpush1.bf16.msra.mxu1 %v9700_v22 }
0x1f60   : > { %8569 = vmatprep.subr.bf16.mxu0 %v9701_v15  ;;  %6945 = vmatprep.subr.bf16.mxu1 %v10412_v13 }
0x1f63   : > { %8570 = vmatpush3.bf16.msra.mxu0 %v9702_v17  ;;  %6946 = vmatpush1.bf16.msra.mxu1 %v9703_v41 }
0x1f64   : > { %8571 = vmatprep.subr.bf16.mxu0 %v9704_v2  ;;  %6947 = vmatprep.subr.bf16.mxu1 %v10412_v13 }
0x1f67   : > { %8572 = vmatpush3.bf16.msra.mxu0 %v9705_v54  ;;  %6948 = vmatpush1.bf16.msra.mxu1 %v9706_v31 }
0x1f68   : > { %8573 = vmatprep.subr.bf16.mxu0 %v9707_v0  ;;  %6949 = vmatprep.subr.bf16.mxu1 %v10412_v13 }
0x1f6b   : > { %8574 = vmatpush3.bf16.msra.mxu0 %v9708_v50  ;;  %6950 = vmatpush1.bf16.msra.mxu1 %v9709_v18 }
0x1f6c   : > { %6951 = vmatprep.subr.bf16.mxu1 %v10412_v13  ;;  %8581 = vmatprep.subr.bf16.mxu0 %v9717_v11 }
0x1f6e   : > { %6928 = vmatmul.mubr.bf16.vlgmr.msra.gmra.mrb[8].mxu0 %v11937_v16  ;;  %v9715_v16 = vld [vmem:[%s11017_s19 + $0x998] ss:$20 sps:$4 sm:$0xff]  }
0x1f6f   : > { %6952 = vmatpush1.bf16.msra.mxu1 %v9710_v56  ;;  %8582 = vmatpush3.bf16.msra.mxu0 %v9719_v53 }
0x1f70   : > { %6953 = vmatprep.subr.bf16.mxu1 %v10412_v13  ;;  %8583 = vmatprep.subr.bf16.mxu0 %v9721_v61 }
0x1f73   : > { %6954 = vmatpush1.bf16.msra.mxu1 %v9711_v38  ;;  %8584 = vmatpush3.bf16.msra.mxu0 %v9723_v25 }
0x1f74   : > { %6955 = vmatprep.subr.bf16.mxu1 %v10412_v13 }
0x1f77   : > { %6956 = vmatpush1.bf16.msra.mxu1 %v9712_v33 }
0x1f78   : > { %6957 = vmatprep.subr.bf16.mxu1 %v10412_v13 }
0x1f7b   : > { %6958 = vmatpush1.bf16.msra.mxu1 %v9713_v3 }
0x1f7c   : > { %6959 = vmatprep.subr.bf16.mxu1 %v10412_v13 }
0x1f7f   : > { %6960 = vmatpush1.bf16.msra.mxu1 %v9714_v48 }
0x1f80   : > { %6961 = vmatprep.subr.bf16.mxu1 %v10412_v13 }
0x1f83   : > { %6962 = vmatpush1.bf16.msra.mxu1 %v9715_v16 }
0x1f84   : > { %6963 = vmatprep.subr.bf16.mxu1 %v10412_v13  ;;  %v10413_v13 = vmov 0.0  }
0x1f87   : > { %6964 = vmatpush1.bf16.msra.mxu1 %v6485_v29 }
0x1f88   : > { %8603 = vmatprep.subr.bf16.mxu1 %v9718_v28 }
0x1f8a   : > { %6968 = vmatmul.mubr.bf16.vlgmr.msra.gmra.mrb[8].mxu1 %v12015_v19  ;;  %v9725_v19 = vld [vmem:[%s11025_s14 + $0x50] sm:$0xff]  }
0x1f8b   : > { %8604 = vmatpush3.bf16.msra.mxu1 %v9720_v52  ;;  %8585 = vmatprep.subr.bf16.mxu0 %v9725_v19 }
0x1f8c   : > { %8605 = vmatprep.subr.bf16.mxu1 %v9722_v35  ;;  %8586 = vmatpush3.bf16.msra.mxu0 %v9727_v7 }
0x1f8d   : > { %8587 = vmatprep.subr.bf16.mxu0 %v9729_v42 }
0x1f8f   : > { %8606 = vmatpush3.bf16.msra.mxu1 %v9724_v27 }
0x1f90   : > { %8607 = vmatprep.subr.bf16.mxu1 %v9726_v21  ;;  %8588 = vmatpush3.bf16.msra.mxu0 %v9731_v6 }
0x1f91   : > { %8589 = vmatprep.subr.bf16.mxu0 %v9733_v45 }
0x1f93   : > { %8608 = vmatpush3.bf16.msra.mxu1 %v9728_v58 }
0x1f94   : > { %8609 = vmatprep.subr.bf16.mxu1 %v9730_v62  ;;  %8590 = vmatpush3.bf16.msra.mxu0 %v9735_v10 }
0x1f95   : > { %8591 = vmatprep.subr.bf16.mxu0 %v9737_v43 }
0x1f97   : > { %8610 = vmatpush3.bf16.msra.mxu1 %v9732_v37 }
0x1f98   : > { %8611 = vmatprep.subr.bf16.mxu1 %v9734_v39  ;;  %8592 = vmatpush3.bf16.msra.mxu0 %v9739_v47 }
0x1f99   : > { %8593 = vmatprep.subr.bf16.mxu0 %v9741_v40 }
0x1f9b   : > { %8612 = vmatpush3.bf16.msra.mxu1 %v9736_v24 }
0x1f9c   : > { %8613 = vmatprep.subr.bf16.mxu1 %v9738_v51  ;;  %8594 = vmatpush3.bf16.msra.mxu0 %v9743_v26 }
0x1f9d   : > { %8595 = vmatprep.subr.bf16.mxu0 %v9745_v36 }
0x1f9f   : > { %8614 = vmatpush3.bf16.msra.mxu1 %v9740_v5 }
0x1fa0   : > { %8615 = vmatprep.subr.bf16.mxu1 %v9742_v32  ;;  %8596 = vmatpush3.bf16.msra.mxu0 %v9747_v12 }
0x1fa1   : > { %8738 = vmatprep.subr.bf16.mxu0 %v10413_v13 }
0x1fa3   : > { %8616 = vmatpush3.bf16.msra.mxu1 %v9744_v14 }
0x1fa4   : > { %8617 = vmatprep.subr.bf16.mxu1 %v9746_v59 }
0x1fa7   : > { %8618 = vmatpush3.bf16.msra.mxu1 %v9748_v9 }
0x2001   : > { %v6644_v55 = vpop.f32.mrb[0].mxu0  ;;  %v6808_v23 = vpop.f32.mrb[0].mxu1 }
0x2002   : > { %v8758_v22 = vadd.f32 %v6644_v55, %v4793_v4  ;;  %v8760_v15 = vadd.f32 %v6808_v23, %v4801_v57  ;;  %v6646_v17 = vpop.f32.mrb[1].mxu0  ;;  %v6810_v41 = vpop.f32.mrb[1].mxu1 }
0x2003   : > { %v8759_v2 = vadd.f32 %v6646_v17, %v4797_v49  ;;  %v8761_v54 = vadd.f32 %v6810_v41, %v4805_v44  ;;  %v6648_v31 = vpop.f32.mrb[2].mxu0  ;;  %v6812_v0 = vpop.f32.mrb[2].mxu1  ;;  %v4808_v41 = vsub.s32 4, %v12135_v1 }
0x2004   : > { %vm6975_vm8 = vcmp.ge.f32.partialorder %v8758_v22, 0.0  ;;  %v6980_v50 = vmul.f32 0.01, %v8758_v22  ;;  %vm6977_vm9 = vcmp.ge.f32.partialorder %v8760_v15, 0.0  ;;  %v6982_v18 = vmul.f32 0.01, %v8760_v15 }
0x2005   : > { %vm6976_vm10 = vcmp.ge.f32.partialorder %v8759_v2, 0.0  ;;  %v6981_v56 = vmul.f32 0.01, %v8759_v2  ;;  %vm6978_vm11 = vcmp.ge.f32.partialorder %v8761_v54, 0.0  ;;  %v6983_v38 = vmul.f32 0.01, %v8761_v54 }
0x2006   : > { %v6985_v33 = vsel %vm6975_vm8, %v8758_v22, %v6980_v50  ;;  %v6987_v3 = vsel %vm6977_vm9, %v8760_v15, %v6982_v18  ;;  %v6649_v48 = vpop.f32.mrb[3].mxu0  ;;  %v6813_v16 = vpop.f32.mrb[3].mxu1 }
0x2007   : > { %v6990_v8 = vrot.slane %v6985_v33, 4  ;;  %v7002_v29 = vrot.slane %v6987_v3, 4  ;;  %v6986_v11 = vsel %vm6976_vm10, %v8759_v2, %v6981_v56  ;;  %v6988_v28 = vsel %vm6978_vm11, %v8761_v54, %v6983_v38 }
0x2008   : > { %v6996_v53 = vrot.slane %v6986_v11, 4  ;;  %v7008_v52 = vrot.slane %v6988_v28, 4  ;;  %v4809_v48 = vrot.slane %v12141_v63, %v4808_v41 }
0x2009   : > { %v6991_v61 = vadd.f32 %v6990_v8, %v6985_v33  ;;  %v7003_v35 = vadd.f32 %v7002_v29, %v6987_v3 }
0x200a   : > { %v6997_v25 = vadd.f32 %v6996_v53, %v6986_v11  ;;  %v7009_v27 = vadd.f32 %v7008_v52, %v6988_v28 }
0x200b   : > { %v6992_v19 = vrot.slane %v6991_v61, 2  ;;  %v7004_v21 = vrot.slane %v7003_v35, 2 }
0x200c   : > { %v6998_v7 = vrot.slane %v6997_v25, 2  ;;  %v7010_v58 = vrot.slane %v7009_v27, 2 }
0x200d   : > { %v6993_v42 = vadd.f32 %v6992_v19, %v6991_v61  ;;  %v7005_v62 = vadd.f32 %v7004_v21, %v7003_v35 }
0x200e   : > { %v6999_v6 = vadd.f32 %v6998_v7, %v6997_v25  ;;  %v7011_v37 = vadd.f32 %v7010_v58, %v7009_v27 }
0x200f   : > { %v6994_v45 = vrot.slane %v6993_v42, 1  ;;  %v7006_v39 = vrot.slane %v7005_v62, 1 }
0x2010   : > { %v7000_v10 = vrot.slane %v6999_v6, 1  ;;  %v7012_v24 = vrot.slane %v7011_v37, 1 }
0x2011   : > { %v6995_v43 = vadd.f32 %v6994_v45, %v6993_v42  ;;  %v7007_v51 = vadd.f32 %v7006_v39, %v7005_v62 }
0x2012   : > { %v7001_v47 = vadd.f32 %v7000_v10, %v6999_v6  ;;  %v7013_v5 = vadd.f32 %v7012_v24, %v7011_v37 }
0x2013   : > { %v7021_v40 = vmul.f32 0.125, %v6995_v43  ;;  %v7023_v32 = vmul.f32 0.125, %v7007_v51 }
0x2014   : > { %v7022_v26 = vmul.f32 0.125, %v7001_v47  ;;  %v7024_v14 = vmul.f32 0.125, %v7013_v5 }
0x2015   : > { %v7026_v36 = vsub.f32 %v6985_v33, %v7021_v40  ;;  %v12149_v59 = vsub.f32 %v6987_v3, %v7023_v32 }
0x2016   : > { %v7027_v12 = vsub.f32 %v6986_v11, %v7022_v26  ;;  %v7029_v9 = vsub.f32 %v6988_v28, %v7024_v14 }
0x2017   : > { %v7031_v30 = vmul.f32 %v7026_v36, %v7026_v36  ;;  %v7033_v34 = vmul.f32 %v12149_v59, %v12149_v59 }
0x2018   : > { %v7032_v20 = vmul.f32 %v7027_v12, %v7027_v12  ;;  %v7034_v60 = vmul.f32 %v7029_v9, %v7029_v9 }
0x2019   : > { %v7036_v46 = vrot.slane %v7031_v30, 4  ;;  %v7048_v4 = vrot.slane %v7033_v34, 4 }
0x201a   : > { %v7042_v57 = vrot.slane %v7032_v20, 4  ;;  %v7054_v49 = vrot.slane %v7034_v60, 4 }
0x201b   : > { %v7037_v44 = vadd.f32 %v7036_v46, %v7031_v30  ;;  %v7049_v55 = vadd.f32 %v7048_v4, %v7033_v34  ;;  %v9749_v30 = vld [vmem:[%s11025_s14 + $0x100] sm:$0xff]   ;;  %v9750_v46 = vld [vmem:[%s11025_s14 + $0x108] sm:$0xff]  }
0x201c   : > { %v7043_v23 = vadd.f32 %v7042_v57, %v7032_v20  ;;  %v7055_v22 = vadd.f32 %v7054_v49, %v7034_v60  ;;  %v9752_v49 = vld [vmem:[%s11025_s14 + $0x118] sm:$0xff]  }
0x201d   : > { %v7038_v15 = vrot.slane %v7037_v44, 2  ;;  %v7050_v17 = vrot.slane %v7049_v55, 2 }
0x201e   : > { %v7044_v2 = vrot.slane %v7043_v23, 2  ;;  %v7056_v54 = vrot.slane %v7055_v22, 2 }
0x201f   : > { %v7039_v31 = vadd.f32 %v7038_v15, %v7037_v44  ;;  %v7051_v0 = vadd.f32 %v7050_v17, %v7049_v55  ;;  %v9753_v55 = vld [vmem:[%s11025_s14 + $0x120] sm:$0xff]   ;;  %v9756_v15 = vld [vmem:[%s11025_s14 + $0x138] sm:$0xff]  }
0x2020   : > { %v7045_v50 = vadd.f32 %v7044_v2, %v7043_v23  ;;  %v7057_v18 = vadd.f32 %v7056_v54, %v7055_v22  ;;  %v9754_v23 = vld [vmem:[%s11025_s14 + $0x128] sm:$0xff]   ;;  %v9755_v22 = vld [vmem:[%s11025_s14 + $0x130] sm:$0xff]  }
0x2021   : > { %v7040_v56 = vrot.slane %v7039_v31, 1  ;;  %v7052_v38 = vrot.slane %v7051_v0, 1  ;;  %v8531_v33 = vpop.f32.mrb[4].mxu0  ;;  %v8553_v3 = vpop.f32.mrb[4].mxu1 }
0x2022   : > { %v8532_v16 = vpop.f32.mrb[5].mxu0  ;;  %v8554_v8 = vpop.f32.mrb[5].mxu1  ;;  %v7046_v29 = vrot.slane %v7045_v50, 1  ;;  %v7058_v11 = vrot.slane %v7057_v18, 1 }
0x2023   : > { %v7041_v28 = vadd.f32 %v7040_v56, %v7039_v31  ;;  %v7053_v53 = vadd.f32 %v7052_v38, %v7051_v0  ;;  %v8533_v52 = vadd.f32 %v8532_v16, %v8531_v33  ;;  %v8555_v1 = vadd.f32 %v8554_v8, %v8553_v3  ;;  %v8556_v61 = vpop.f32.mrb[6].mxu1  ;;  %v8534_v35 = vpop.f32.mrb[6].mxu0 }
0x2024   : > { %v8557_v25 = vpop.f32.mrb[7].mxu1  ;;  %v8535_v27 = vpop.f32.mrb[7].mxu0  ;;  %v7047_v19 = vadd.f32 %v7046_v29, %v7045_v50  ;;  %v7059_v21 = vadd.f32 %v7058_v11, %v7057_v18 }
0x2025   : > { %v7066_v7 = vmul.f32 0.125, %v7041_v28  ;;  %v7068_v58 = vmul.f32 0.125, %v7053_v53  ;;  %v6850_v42 = vadd.f32 %v8533_v52, %v4809_v48 }
0x2026   : > { %v7067_v62 = vmul.f32 0.125, %v7047_v19  ;;  %v7069_v6 = vmul.f32 0.125, %v7059_v21 }
0x2027   : > { %v7071_v63 = vadd.f32 1e-05, %v7066_v7  ;;  %v7073_v37 = vadd.f32 1e-05, %v7068_v58  ;;  %v6890_v45 = vadd.f32 %v8555_v1, %v6850_v42 }
0x2028   : > { %v7072_v39 = vadd.f32 1e-05, %v7067_v62  ;;  %v7074_v10 = vadd.f32 1e-05, %v7069_v6 }
0x2029   : > { %9757 = vrsqrt.f32 %v7071_v63 }
0x202a   : > { %9759 = vrsqrt.f32 %v7073_v37 }
0x202b   : > { %9761 = vrsqrt.f32 %v7072_v39 }
0x202c   : > { %9763 = vrsqrt.f32 %v7074_v10 }
0x2033   : > { %v9758_v24 = vpop.eup %9757 }
0x2034   : > { %v9760_v43 = vpop.eup %9759  ;;  %v7081_v47 = vmul.f32 %v9758_v24, %v7026_v36  ;;  %v9751_v36 = vld [vmem:[%s11025_s14 + $0x110] sm:$0xff]   ;;  %v7086_v24 = vld [vmem:[#allocation30] sm:$0xff] }
0x2035   : > { %v9762_v51 = vpop.eup %9761  ;;  %v7083_v32 = vmul.f32 %v9760_v43, %v12149_v59 }
0x2036   : > { %v9764_v5 = vpop.eup %9763  ;;  %v7082_v40 = vmul.f32 %v9762_v51, %v7027_v12  ;;  %v7087_v20 = vpack.c.bf16 %v7081_v47, %v7081_v47 }
0x2037   : > { %v7084_v26 = vmul.f32 %v9764_v5, %v7029_v9  ;;  %v7089_v60 = vpack.c.bf16 %v7083_v32, %v7083_v32 }
0x2038   : > { %v7088_v14 = vpack.c.bf16 %v7082_v40, %v7082_v40 }
0x2039   : > { %v7090_v34 = vpack.c.bf16 %v7084_v26, %v7084_v26 }
0x203a   : > { %7444 = vmatprep.mubr.bf16.mxu0 %v7088_v14  ;;  %v8398_v14 = vld [vmem:[#allocation29] ss:$0 sm:$0xff] (!%p8397_p10) }
0x203b   : > { %7484 = vmatprep.mubr.bf16.mxu1 %v7090_v34  ;;  %7445 = vmatmul.mubr.bf16.vlgmr.msra.gmra.mrb[12].mxu0 %v7087_v20 }
0x203c   : > { %7485 = vmatmul.mubr.bf16.vlgmr.msra.gmra.mrb[12].mxu1 %v7089_v60  ;;  %8739 = vmatpush3.bf16.msra.mxu0 %v9749_v30 }
0x203d   : > { %8740 = vmatprep.subr.bf16.mxu0 %v10413_v13  ;;  %8754 = vmatprep.mubr.msk.bf16.mxu0 %vm10414_vm12, %v10413_v13 }
0x2040   : > { %8741 = vmatpush3.bf16.msra.mxu0 %v9750_v46 }
0x2041   : > { %v8575_v59 = vpop.f32.mrb[8].mxu0  ;;  %8742 = vmatprep.subr.bf16.mxu0 %v10413_v13 }
0x2042   : > { %v8576_v12 = vpop.f32.mrb[9].mxu0 }
0x2043   : > { %v8577_v9 = vadd.f32 %v8576_v12, %v8575_v59  ;;  %v8578_v4 = vpop.f32.mrb[10].mxu0 }
0x2044   : > { %v8579_v57 = vpop.f32.mrb[11].mxu0  ;;  %8743 = vmatpush3.bf16.msra.mxu0 %v9751_v36 }
0x2045   : > { %v6930_v44 = vadd.f32 %v8577_v9, %v6890_v45  ;;  %8744 = vmatprep.subr.bf16.mxu0 %v10413_v13 }
0x2048   : > { %8745 = vmatpush3.bf16.msra.mxu0 %v9752_v49 }
0x2049   : > { %8746 = vmatprep.subr.bf16.mxu0 %v10413_v13 }
0x204c   : > { %8747 = vmatpush3.bf16.msra.mxu0 %v9753_v55 }
0x204d   : > { %8748 = vmatprep.subr.bf16.mxu0 %v10413_v13 }
0x2050   : > { %8749 = vmatpush3.bf16.msra.mxu0 %v9754_v23 }
0x2051   : > { %8750 = vmatprep.subr.bf16.mxu0 %v10413_v13 }
0x2054   : > { %8751 = vmatpush3.bf16.msra.mxu0 %v9755_v22 }
0x2055   : > { %8752 = vmatprep.subr.bf16.mxu0 %v10413_v13 }
0x2058   : > { %8753 = vmatpush3.bf16.msra.mxu0 %v9756_v15 }
0x205d   : > { %v6969_v17 = vpop.f32.mrb[8].mxu1 }
0x205e   : > { %v6970_v41 = vadd.f32 %v6969_v17, %v6930_v44  ;;  %v6971_v2 = vpop.f32.mrb[9].mxu1 }
0x205f   : > { %v6972_v54 = vpop.f32.mrb[10].mxu1 }
0x2060   : > { %vm6979_vm13 = vcmp.ge.f32.partialorder %v6970_v41, 0.0  ;;  %v6984_v31 = vmul.f32 0.01, %v6970_v41  ;;  %v6973_v0 = vpop.f32.mrb[11].mxu1 }
0x2062   : > { %v6989_v50 = vsel %vm6979_vm13, %v6970_v41, %v6984_v31 }
0x2063   : > { %v7014_v18 = vrot.slane %v6989_v50, 4 }
0x2065   : > { %v7015_v56 = vadd.f32 %v7014_v18, %v6989_v50 }
0x2067   : > { %v7016_v38 = vrot.slane %v7015_v56, 2 }
0x2069   : > { %v7017_v33 = vadd.f32 %v7016_v38, %v7015_v56 }
0x206b   : > { %v7018_v3 = vrot.slane %v7017_v33, 1 }
0x206d   : > { %v7019_v48 = vadd.f32 %v7018_v3, %v7017_v33 }
0x206f   : > { %v7025_v16 = vmul.f32 0.125, %v7019_v48 }
0x2071   : > { %v7030_v8 = vsub.f32 %v6989_v50, %v7025_v16 }
0x2073   : > { %v7035_v29 = vmul.f32 %v7030_v8, %v7030_v8 }
0x2075   : > { %v7060_v11 = vrot.slane %v7035_v29, 4 }
0x2077   : > { %v7061_v13 = vadd.f32 %v7060_v11, %v7035_v29 }
0x2079   : > { %v7062_v28 = vrot.slane %v7061_v13, 2 }
0x207b   : > { %v7063_v53 = vadd.f32 %v7062_v28, %v7061_v13 }
0x207d   : > { %v7064_v52 = vrot.slane %v7063_v53, 1 }
0x207f   : > { %v7065_v1 = vadd.f32 %v7064_v52, %v7063_v53 }
0x2081   : > { %v7070_v61 = vmul.f32 0.125, %v7065_v1 }
0x2083   : > { %v7075_v35 = vadd.f32 1e-05, %v7070_v61 }
0x2085   : > { %9765 = vrsqrt.f32 %v7075_v35 }
0x208f   : > { %v9766_v25 = vpop.eup %9765 }
0x2090   : > { %v7085_v27 = vmul.f32 %v9766_v25, %v7030_v8 }
0x2092   : > { %v7091_v19 = vpack.c.bf16 %v7085_v27, %v7085_v27 }
0x2094   : > { %8755 = vmatmul.mubr.bf16.vlgmr.msra.gmra.mrb[16].mxu0 %v7091_v19 }
0x210e   : > { %v8597_v21 = vpop.f32.mrb[12].mxu0 }
0x210f   : > { %v8619_v7 = vpop.f32.mrb[12].mxu1  ;;  %v8598_v58 = vpop.f32.mrb[13].mxu0 }
0x2110   : > { %v8599_v42 = vadd.f32 %v8598_v58, %v8597_v21  ;;  %v8620_v62 = vpop.f32.mrb[13].mxu1  ;;  %v8600_v6 = vpop.f32.mrb[14].mxu0 }
0x2111   : > { %v8621_v63 = vadd.f32 %v8620_v62, %v8619_v7  ;;  %v8622_v37 = vpop.f32.mrb[14].mxu1  ;;  %v8601_v45 = vpop.f32.mrb[15].mxu0 }
0x2112   : > { %v8623_v39 = vpop.f32.mrb[15].mxu1 }
0x2113   : > { %v7487_v10 = vadd.f32 %v8621_v63, %v8599_v42 }
0x2166   : > { %7537 = sbr.rel (%p8397_p10) target bundleno = 8617 (0x21a9), region = 176 }
0x2167   : > { %v7526_v43 = vpop.f32.mrb[16].mxu0 }
0x2168   : > { %v7527_v51 = vadd.f32 %v7526_v43, %v7487_v10  ;;  %v8756_v47 = vpop.f32.mrb[17].mxu0 }
0x2169   : > { %v7529_v5 = vpop.f32.mrb[18].mxu0 }
0x216a   : > { %v7532_v40 = vadd.f32 %v7527_v51, %v7086_v24  ;;  %v8757_v32 = vpop.f32.mrb[19].mxu0 }
0x216c   : > { %7533 = vst [vmem:[#allocation30] sm:$0xff] %v7532_v40 }
0x2173   : > { %v7538_v26 = vld [vmem:[#allocation30] sm:$0xff] }
0x2174   : > { %v7546_v30 = vadd.f32 %v8398_v14, %v7538_v26 }
0x2176   : > { %v7547_v34 = vrot.slane %v7546_v30, 4 }
0x2178   : > { %v7548_v20 = vadd.f32 %v7547_v34, %v7546_v30 }
0x217a   : > { %v7549_v60 = vrot.slane %v7548_v20, 2 }
0x217c   : > { %v7550_v46 = vadd.f32 %v7549_v60, %v7548_v20 }
0x217e   : > { %v7551_v36 = vrot.slane %v7550_v46, 1 }
0x2180   : > { %v7552_v59 = vadd.f32 %v7551_v36, %v7550_v46 }
0x2182   : > { %v7553_v12 = vmul.f32 0.125, %v7552_v59 }
0x2184   : > { %v7554_v9 = vsub.f32 %v7546_v30, %v7553_v12 }
0x2186   : > { %v7555_v4 = vmul.f32 %v7554_v9, %v7554_v9 }
0x2188   : > { %v7556_v57 = vrot.slane %v7555_v4, 4 }
0x218a   : > { %v7557_v49 = vadd.f32 %v7556_v57, %v7555_v4 }
0x218c   : > { %v7558_v44 = vrot.slane %v7557_v49, 2 }
0x218e   : > { %v7559_v55 = vadd.f32 %v7558_v44, %v7557_v49 }
0x2190   : > { %v7560_v23 = vrot.slane %v7559_v55, 1 }
0x2192   : > { %v7561_v22 = vadd.f32 %v7560_v23, %v7559_v55 }
0x2194   : > { %v7562_v15 = vmul.f32 0.125, %v7561_v22 }
0x2196   : > { %v7563_v17 = vadd.f32 1e-05, %v7562_v15 }
0x2198   : > { %9767 = vrsqrt.f32 %v7563_v17 }
0x21a2   : > { %v9768_v41 = vpop.eup %9767 }
0x21a3   : > { %v7565_v2 = vmul.f32 %v9768_v41, %v7554_v9 }
0x21a5   : > { %vm7566_vm14 = vcmp.ge.f32.partialorder %v7565_v2, 0.0  ;;  %v7567_v54 = vmul.f32 0.01, %v7565_v2 }
0x21a7   : > { %v7568_v31 = vsel %vm7566_vm14, %v7565_v2, %v7567_v54 }
0x21a8   : > { %7569 = vst [vmem:[#allocation30] sm:$0xff] %v7568_v31 }
0x21a9 PF: > { %s12354_s9 = sld [smem:[#allocation44_spill]]  ;;  %s10415_s26 = smov [#allocation30]  }
0x21aa   : > { %s7577_s22 = sshll.u32 %s10415_s26, 4  ;;  %s7578_s22 = int_to_ptr.vmem [resolvable:$true] %s7577_s22 }
0x21ab   : > { %s10279_s0 = scalar_lea.vmem %s7578_s22, 128  ;;  %p10286_p7 = scmp.lt.s32.totalorder %s7578_s22, %s7578_s22 }
0x21ac   : > { %p10280_p9 = scmp.ne.s32.totalorder %s7578_s22, %s10279_s0  ;;  %p10287_p4 = scmp.lt.s32.totalorder %s10279_s0, %s10279_s0 }
0x21ae   : > { %p10288_p12 = por %p10287_p4, %p10286_p7 }
0x21af   : > { %p8951_p8 = scmp.eq.s32.totalorder %s12354_s9, 3 }
0x21b1   : > { %p10281_p2 = pnand %p10280_p9, %p8951_p8 }
0x21b3   : > { %p10282_p1 = pneg %p10281_p2 }
0x21b5   : > { %p10289_p6 = pnand %p10288_p12, %p10282_p1 }
0x21b7   : > { %10292 = shalt.err (!%p10289_p6)
}
0x21b8   : > { %s12355_s8 = sld [smem:[#allocation66_spill]] }
0x21be   : > { %s10293_s23 = scalar_lea.hbm %s12355_s8, 128 }
0x21bf   : > { %p10294_p5 = scmp.ne.s32.totalorder %s12355_s8, %s10293_s23  ;;  %p10299_p13 = scmp.lt.u32.totalorder %s10293_s23, %s12355_s8 }
0x21c1   : > { %p10295_p3 = pnand %p10294_p5, %p8951_p8 }
0x21c3   : > { %p10296_p11 = pneg %p10295_p3 }
0x21c5   : > { %p10301_p0 = pnand %p10299_p13, %p10296_p11 }
0x21c7   : > { %10304 = shalt.err (!%p10301_p0)
}
0x21c8   : > { %8861 = dma.vmem_to_hbm [thread:$0]  (%p8951_p8), %s7578_s22, 128, %s12355_s8, [#allocation5]  }
0x21c9   : > { %10362 = dma.done.wait (%p8951_p8), [#allocation5], 128  }
0x21ca   : > { %10364 = vsyncadd (%p8951_p8), [#allocation5], 4294967168 }
0x21cb PF: > { %s12356_s21 = sld [smem:[#allocation46_spill]]  ;;  %s12357_s0 = sld [smem:[#allocation42_spill]] }
0x21cc   : > { %s12358_s30 = sld [smem:[#allocation43_spill]]  ;;  %s12359_s20 = sld [smem:[#allocation47_spill]] }
0x21d1   : > { %p35_p10 = scmp.ge.s32.totalorder %s12356_s21, 6  }
0x21d3   :  { %37 = sbr.rel (!%p35_p10) target bundleno = 29 (0x1d), region = 222 }
0x21da   :  { %7590 = vsyncpa [#allocation4], 1 }
0x21db   :  { %7592 = vsyncpa [#allocation4 + $0x1], 1 }
0x21dc   :  { %7593 = vsyncpa [#allocation7], 1 }
0x21dd   :  { %7594 = vsyncpa [#allocation10], 1 }
0x21de   :  { %7595 = vsyncpa [#allocation13], 1 }
0x21df   :  { %7596 = vsyncpa [#allocation16], 1 }
0x21e0   :  { %7597 = vsyncpa [#allocation19], 1 }
0x21e1   :  { %7598 = vsyncpa [#allocation22], 1 }
0x21e2   :  { %7599 = vsyncpa [#allocation25], 1 }
0x21e3   :  { %7600 = vsyncpa [#allocation5], 1 }
0x21e4   :  { %7602 = vsyncpa [#allocation5 + $0x1], 1 }

</bundles_post_ra>
